<compile_context>
chip_gen: v7x
topology: tpu7x:2x2x1
jax: 0.10.0
libtpu: 0.0.40
codegen_flags: <defaults>
</compile_context>

<pallas_src>
import functools

import jax
import jax.numpy as jnp
from jax.experimental import pallas as pl
from jax.experimental.pallas import tpu as pltpu


def _round_up(x, m):
    return (x + m - 1) // m * m


def _pick_tile(dim, max_tile, mult):
    """Largest multiple of `mult` that is <= max_tile and divides `dim`."""
    assert dim % mult == 0, (dim, mult)
    t = min(max_tile, dim)
    t -= t % mult
    while dim % t:
        t -= mult
    return t


def _fc_tile_config():
    """Per-generation fc tiling. v5e/v6e have 128 MiB VMEM -> 16 MiB weight
    blocks; v7x (64 MiB/TC) and unknown parts get the conservative 8 MiB
    blocks under the previously-validated 32 MiB scoped limit."""
    try:
        kind = jax.devices()[0].device_kind.lower()
    except Exception:  # pragma: no cover
        kind = ""
    if ("v5" in kind) or ("v6" in kind):
        return dict(tm=256, tn=1024, tk=8192, vmem_limit=64 * 1024 * 1024)
    return dict(tm=256, tn=512, tk=8192, vmem_limit=32 * 1024 * 1024)


# -----------------------------------------------------------------------------
# Kernel 1: Conv2d(3x3, stride=2, pad=1) as 9 accumulated tap-GEMMs.
# Tap windows arrive pre-gathered and contiguous: (B, 9, Ho*Wo, Cin).
# Accumulation lives in an f32 VMEM scratch across the tap grid axis.
# -----------------------------------------------------------------------------
def _conv_tap_kernel(x_ref, w_ref, b_ref, o_ref, acc_ref):
    # x_ref: (1, 1, Ho*Wo, Cin) bf16   one tap window of one batch element
    # w_ref: (1, Cin, Cout)     bf16
    # b_ref: (1, Cout)          f32
    # o_ref: (1, Ho*Wo, Cout)   bf16
    # acc_ref: (Ho*Wo, Cout)    f32 VMEM scratch
    t = pl.program_id(1)

    @pl.when(t == 0)
    def _():
        acc_ref[...] = jnp.zeros_like(acc_ref)

    acc_ref[...] += jnp.dot(x_ref[0, 0], w_ref[0],
                            preferred_element_type=jnp.float32)

    @pl.when(t == pl.num_programs(1) - 1)
    def _():
        o_ref[0] = (acc_ref[...] + b_ref[...]).astype(o_ref.dtype)


def conv3x3_s2_p1_pallas(x_nchw, w_taps, bias_1c, *, vmem_limit):
    """x: (B, Cin, H, W) f32, w_taps: (9, Cin, Cout) bf16, bias: (1, Cout) f32.

    Returns (B, Ho*Wo, Cout) bf16 with features in (h, w, c) flatten order.
    """
    B, Cin, H, W = x_nchw.shape
    Cout = w_taps.shape[-1]
    Ho = (H + 2 - 3) // 2 + 1
    Wo = (W + 2 - 3) // 2 + 1

    x = jnp.transpose(x_nchw.astype(jnp.bfloat16), (0, 2, 3, 1))  # NHWC, bf16
    xp = jnp.pad(x, ((0, 0), (1, 1), (1, 1), (0, 0)))
    # Pre-gather the 9 tap windows (contiguous GEMM operands; ~9x the small
    # conv input in HBM, negligible vs. the fc1 weight stream).
    taps = []
    for i in range(3):
        for j in range(3):
            win = xp[:, i::2, j::2, :][:, :Ho, :Wo, :]   # (B, Ho, Wo, Cin)
            taps.append(win.reshape(B, Ho * Wo, Cin))
    xtaps = jnp.stack(taps, axis=1)                       # (B, 9, Ho*Wo, Cin)

    return pl.pallas_call(
        _conv_tap_kernel,
        out_shape=jax.ShapeDtypeStruct((B, Ho * Wo, Cout), jnp.bfloat16),
        grid_spec=pltpu.PrefetchScalarGridSpec(
            num_scalar_prefetch=0,
            grid=(B, 9),
            in_specs=[
                pl.BlockSpec((1, 1, Ho * Wo, Cin), lambda b, t: (b, t, 0, 0)),
                pl.BlockSpec((1, Cin, Cout), lambda b, t: (t, 0, 0)),
                pl.BlockSpec((1, Cout), lambda b, t: (0, 0)),
            ],
            out_specs=pl.BlockSpec((1, Ho * Wo, Cout), lambda b, t: (b, 0, 0)),
            scratch_shapes=[pltpu.VMEM((Ho * Wo, Cout), jnp.float32)],
        ),
        compiler_params=pltpu.CompilerParams(
            dimension_semantics=("parallel", "arbitrary"),
            vmem_limit_bytes=vmem_limit,
        ),
    )(xtaps, w_taps, bias_1c)


# -----------------------------------------------------------------------------
# Kernel 2: tiled  out = relu?(A @ W + bias),  A/W bf16, f32 accumulator.
# Grid is (N-tiles, M-tiles, K-tiles): leading parallel axis has real extent
# even at batch=2, so megacore splits the weight stream across TensorCores.
# -----------------------------------------------------------------------------
def _linear_kernel(a_ref, w_ref, b_ref, o_ref, acc_ref, *, apply_relu):
    k = pl.program_id(2)

    @pl.when(k == 0)
    def _():
        acc_ref[...] = jnp.zeros_like(acc_ref)

    acc_ref[...] += jnp.dot(a_ref[...], w_ref[...],
                            preferred_element_type=jnp.float32)

    @pl.when(k == pl.num_programs(2) - 1)
    def _():
        out = acc_ref[...] + b_ref[...]          # (1, tn) bias broadcasts
        if apply_relu:
            out = jnp.maximum(out, 0.0)
        o_ref[...] = out.astype(o_ref.dtype)


def linear_pallas(a, w_kn, bias_1n, *, apply_relu=False, out_dtype=jnp.bfloat16,
                  tm=256, tn=512, tk=8192, vmem_limit=32 * 1024 * 1024):
    """a: (M, Ka) bf16; w_kn: (K, N) bf16 pre-padded (K, N multiples of 128,
    Ka <= K); bias: (1, N) f32.  Returns (M, N)."""
    M, Ka = a.shape
    K, N = w_kn.shape
    assert Ka <= K and K % 128 == 0 and N % 128 == 0

    tm_ = min(tm, _round_up(M, 16))          # bf16 sublane minimum is 16
    tn_ = _pick_tile(N, tn, 128)
    tk_ = _pick_tile(K, tk, 128)
    Mp = _round_up(M, tm_)

    a_p = jnp.pad(a, ((0, Mp - M), (0, K - Ka)))   # activation-only padding

    grid = (N // tn_, Mp // tm_, K // tk_)
    out = pl.pallas_call(
        functools.partial(_linear_kernel, apply_relu=apply_relu),
        out_shape=jax.ShapeDtypeStruct((Mp, N), out_dtype),
        grid_spec=pltpu.PrefetchScalarGridSpec(
            num_scalar_prefetch=0,
            grid=grid,
            in_specs=[
                pl.BlockSpec((tm_, tk_), lambda j, i, k: (i, k)),
                pl.BlockSpec((tk_, tn_), lambda j, i, k: (k, j)),
                pl.BlockSpec((1, tn_), lambda j, i, k: (0, j)),
            ],
            out_specs=pl.BlockSpec((tm_, tn_), lambda j, i, k: (i, j)),
            scratch_shapes=[pltpu.VMEM((tm_, tn_), jnp.float32)],
        ),
        compiler_params=pltpu.CompilerParams(
            dimension_semantics=("parallel", "parallel", "arbitrary"),
            vmem_limit_bytes=vmem_limit,
        ),
    )(a_p, w_kn, bias_1n)
    return out[:M]          # keep padded N columns (zeros) for the next layer


# -----------------------------------------------------------------------------
# Kernel 3: fused  fc3(relu(fc2(a)))  -- fc2 tiles never round-trip to HBM.
# Each N2-tile j emits its own fc3 partial (1, tm, n3p); partials are summed
# (tiny) outside the kernel, so the j axis is fully parallel / core-splittable.
# -----------------------------------------------------------------------------
def _fc2_fc3_kernel(a_ref, w2_ref, b2_ref, w3_ref, o_ref, acc2_ref):
    k = pl.program_id(2)

    @pl.when(k == 0)
    def _():
        acc2_ref[...] = jnp.zeros_like(acc2_ref)

    acc2_ref[...] += jnp.dot(a_ref[...], w2_ref[...],
                             preferred_element_type=jnp.float32)

    @pl.when(k == pl.num_programs(2) - 1)
    def _():
        h = jnp.maximum(acc2_ref[...] + b2_ref[...], 0.0)     # relu(fc2) tile
        o_ref[0] = jnp.dot(h.astype(w3_ref.dtype), w3_ref[...],
                           preferred_element_type=jnp.float32).astype(o_ref.dtype)


def fc2_fc3_fused_pallas(a, w2_kn, b2_1n, w3_kn, b3_1n, *,
                         tm=256, tn=512, tk=8192, vmem_limit=32 * 1024 * 1024):
    """a: (M, Ka) bf16; w2: (K, N2) bf16; w3: (N2, N3p) bf16 (all pre-padded to
    128-multiples); b2: (1, N2) f32; b3: (1, N3) f32 (unpadded)."""
    M, Ka = a.shape
    K, N2 = w2_kn.shape
    K3, N3p = w3_kn.shape
    N3 = b3_1n.shape[1]
    assert Ka <= K and N2 == K3
    assert K % 128 == 0 and N2 % 128 == 0 and N3p % 128 == 0

    tm_ = min(tm, _round_up(M, 16))
    tn_ = _pick_tile(N2, tn, 128)
    tk_ = _pick_tile(K, tk, 128)
    Mp = _round_up(M, tm_)
    nj = N2 // tn_

    a_p = jnp.pad(a, ((0, Mp - M), (0, K - Ka)))

    grid = (nj, Mp // tm_, K // tk_)
    partials = pl.pallas_call(
        _fc2_fc3_kernel,
        out_shape=jax.ShapeDtypeStruct((nj, Mp, N3p), jnp.float32),
        grid_spec=pltpu.PrefetchScalarGridSpec(
            num_scalar_prefetch=0,
            grid=grid,
            in_specs=[
                pl.BlockSpec((tm_, tk_), lambda j, i, k: (i, k)),
                pl.BlockSpec((tk_, tn_), lambda j, i, k: (k, j)),
                pl.BlockSpec((1, tn_), lambda j, i, k: (0, j)),
                pl.BlockSpec((tn_, N3p), lambda j, i, k: (j, 0)),
            ],
            out_specs=pl.BlockSpec((1, tm_, N3p), lambda j, i, k: (j, i, 0)),
            scratch_shapes=[pltpu.VMEM((tm_, tn_), jnp.float32)],
        ),
        compiler_params=pltpu.CompilerParams(
            dimension_semantics=("parallel", "parallel", "arbitrary"),
            vmem_limit_bytes=vmem_limit,
        ),
    )(a_p, w2_kn, b2_1n, w3_kn)
    # Tiny cross-tile reduction (nj x Mp x 128 f32) + fc3 bias, outside Pallas.
    return partials.sum(axis=0)[:M, :N3] + b3_1n


# -----------------------------------------------------------------------------
# One-time parameter preparation: layouts, bf16 cast AND all weight/bias padding
# (done once, outside the jitted forward).
# -----------------------------------------------------------------------------
def prepare_params(params, *, cout, ho, wo):
    bf16 = jnp.bfloat16
    f32 = jnp.float32
    hidden, flat = params["fc1_w"].shape
    assert flat == cout * ho * wo
    flat_p = _round_up(flat, 128)
    hidden_p = _round_up(hidden, 128)
    n_cls = params["fc3_w"].shape[0]
    n3p = _round_up(n_cls, 128)

    # PyTorch view(B,-1) flattens NCHW as (c, h, w); our activation is flattened
    # as (h, w, c).  Permute fc1's columns once so both index identical features.
    fc1_w = params["fc1_w"].reshape(hidden, cout, ho, wo)
    fc1_w = jnp.transpose(fc1_w, (2, 3, 1, 0)).reshape(flat, hidden)
    fc1_w = jnp.pad(fc1_w, ((0, flat_p - flat), (0, hidden_p - hidden)))

    fc2_w = jnp.pad(params["fc2_w"].T,
                    ((0, hidden_p - hidden), (0, hidden_p - hidden)))
    fc3_w = jnp.pad(params["fc3_w"].T,
                    ((0, hidden_p - hidden), (0, n3p - n_cls)))

    conv_w = jnp.transpose(params["conv_w"], (2, 3, 1, 0))      # (3,3,Cin,Cout)
    conv_w = conv_w.reshape(9, -1, cout)                        # (9, Cin, Cout)

    pad1 = lambda b, n: jnp.pad(b.reshape(1, -1), ((0, 0), (0, n))).astype(f32)
    return {
        "conv_w": conv_w.astype(bf16),
        "conv_b": params["conv_b"].reshape(1, -1).astype(f32),
        "fc1_w": fc1_w.astype(bf16),                  # (flat_p, hidden_p)
        "fc1_b": pad1(params["fc1_b"], hidden_p - hidden),
        "fc2_w": fc2_w.astype(bf16),                  # (hidden_p, hidden_p)
        "fc2_b": pad1(params["fc2_b"], hidden_p - hidden),
        "fc3_w": fc3_w.astype(bf16),                  # (hidden_p, n3p)
        "fc3_b": params["fc3_b"].reshape(1, -1).astype(f32),    # (1, n_cls)
    }


# -----------------------------------------------------------------------------
# Full Clsout forward (conv -> flatten -> fc1+relu -> [fc2+relu -> fc3] fused)
# -----------------------------------------------------------------------------
def clsout_forward(x_nchw, prep, *, cfg):
    y = conv3x3_s2_p1_pallas(x_nchw, prep["conv_w"], prep["conv_b"],
                             vmem_limit=cfg["vmem_limit"])      # (B, Ho*Wo, C)
    y = y.reshape(y.shape[0], -1)   # NHWC flatten; fc1 rows pre-permuted to match
    y = linear_pallas(y, prep["fc1_w"], prep["fc1_b"], apply_relu=True,
                      out_dtype=jnp.bfloat16, tm=cfg["tm"], tn=cfg["tn"],
                      tk=cfg["tk"], vmem_limit=cfg["vmem_limit"])
    # TODO(synk): Dropout omitted (eval-mode identity; no train-mode RNG mask here).
    y = fc2_fc3_fused_pallas(y, prep["fc2_w"], prep["fc2_b"],
                             prep["fc3_w"], prep["fc3_b"],
                             tm=cfg["tm"], tn=cfg["tn"], tk=cfg["tk"],
                             vmem_limit=cfg["vmem_limit"])
    return y


# -----------------------------------------------------------------------------
# Pure-JAX reference (f32 math on the same bf16-quantized values)
# -----------------------------------------------------------------------------
def clsout_reference(x_nchw, params):
    f32 = jnp.float32
    hp = jax.lax.Precision.HIGHEST
    bf = lambda a: a.astype(jnp.bfloat16).astype(f32)
    y = jax.lax.conv_general_dilated(
        bf(x_nchw), bf(params["conv_w"]),
        window_strides=(2, 2), padding=((1, 1), (1, 1)),
        dimension_numbers=("NCHW", "OIHW", "NCHW"), precision=hp,
    ) + params["conv_b"][None, :, None, None]
    y = bf(y)                                   # conv activation stored in bf16
    y = y.reshape(y.shape[0], -1)
    y = jnp.maximum(jnp.dot(y, bf(params["fc1_w"]).T, precision=hp)
                    + params["fc1_b"], 0.0)
    y = bf(y)                                   # fc1 activation stored in bf16
    y = jnp.maximum(jnp.dot(y, bf(params["fc2_w"]).T, precision=hp)
                    + params["fc2_b"], 0.0)
    y = bf(y)                                   # fused kernel casts relu(fc2) to bf16
    y = jnp.dot(y, bf(params["fc3_w"]).T, precision=hp) + params["fc3_b"]
    return y


# -----------------------------------------------------------------------------
# Deterministic synthetic parameters (PyTorch layouts, f32)
# -----------------------------------------------------------------------------
def init_params(key, cin, cout, flat, hidden, n_cls):
    ks = jax.random.split(key, 8)

    def w(k, shape, fan_in):
        return jax.random.normal(k, shape, jnp.float32) / jnp.sqrt(fan_in)

    return {
        "conv_w": w(ks[0], (cout, cin, 3, 3), cin * 9),
        "conv_b": w(ks[1], (cout,), cin * 9),
        "fc1_w": w(ks[2], (hidden, flat), flat),       # PyTorch Linear: (out, in)
        "fc1_b": w(ks[3], (hidden,), flat),
        "fc2_w": w(ks[4], (hidden, hidden), hidden),
        "fc2_b": w(ks[5], (hidden,), hidden),
        "fc3_w": w(ks[6], (n_cls, hidden), hidden),
        "fc3_b": w(ks[7], (n_cls,), hidden),
    }


if __name__ == "__main__":
    # Real spatial dims (32x32 -> 16x16), scaled-down channels / hidden.
    # Full module: CIN=COUT=256, FLAT=65536, HIDDEN=4096.
    B, CIN, COUT, H, W = 2, 32, 32, 32, 32
    HO, WO = H // 2, W // 2
    FLAT = COUT * HO * WO            # 8192
    HIDDEN = 256
    N_CLS = 12

    key = jax.random.PRNGKey(0)
    kx, kp = jax.random.split(key)
    x = jax.random.normal(kx, (B, CIN, H, W), jnp.float32)
    params = init_params(kp, CIN, COUT, FLAT, HIDDEN, N_CLS)
    prep = prepare_params(params, cout=COUT, ho=HO, wo=WO)
    cfg = _fc_tile_config()

    fwd = jax.jit(functools.partial(clsout_forward, cfg=cfg))
    out = jax.block_until_ready(fwd(x, prep))
    ref = jax.block_until_ready(clsout_reference(x, params))

    assert out.shape == (B, N_CLS), out.shape
    max_err = float(jnp.max(jnp.abs(out - ref)))
    assert jnp.allclose(out, ref, rtol=2e-2, atol=2e-2), max_err
    print("KERNEL_OK")
</pallas_src>

<mosaic_0001>
module attributes {stable_mosaic.version = 11 : i64} {
  func.func @_conv_tap_kernel(%arg0: i32, %arg1: i32, %arg2: memref<1x1x256x32xbf16, #tpu.memory_space<vmem>>, %arg3: memref<1x32x32xbf16, #tpu.memory_space<vmem>>, %arg4: memref<1x32xf32, #tpu.memory_space<vmem>>, %arg5: memref<1x256x32xbf16, #tpu.memory_space<vmem>>, %arg6: memref<256x32xf32, #tpu.memory_space<vmem>>) attributes {dimension_semantics = [#tpu.dimension_semantics<parallel>, #tpu.dimension_semantics<arbitrary>], iteration_bounds = array<i64: 2, 9>, scalar_prefetch = 0 : i64, scratch_operands = 1 : i64, tpu.core_type = #tpu.core_type<tc>, window_params = [{transform_indices = @transform_0, window_bounds = array<i64: 1, 1, 256, 32>}, {transform_indices = @transform_1, window_bounds = array<i64: 1, 32, 32>}, {pipeline_mode = #tpu.pipeline_mode<synchronous>, transform_indices = @transform_2, window_bounds = array<i64: 1, 32>}, {transform_indices = @transform_3, window_bounds = array<i64: 1, 256, 32>}]} {
    %c0_i32 = arith.constant 0 : i32
    %0 = arith.cmpi eq, %arg1, %c0_i32 : i32
    %1 = arith.extui %0 : i1 to i32
    %c0_i32_0 = arith.constant 0 : i32
    %2 = arith.cmpi ne, %1, %c0_i32_0 : i32
    scf.if %2 {
      %cst_12 = arith.constant 0.000000e+00 : f32
      %14 = vector.broadcast %cst_12 : f32 to vector<256x32xf32>
      %c0_13 = arith.constant 0 : index
      %c0_14 = arith.constant 0 : index
      %15 = vector.load %arg6[%c0_13, %c0_14] : memref<256x32xf32, #tpu.memory_space<vmem>>, vector<256x32xf32>
      tpu.vector_store %arg6[%c0_13, %c0_14], %14 {strides = array<i32>} : memref<256x32xf32, #tpu.memory_space<vmem>>, vector<256x32xf32>,
    } else {
    }
    %c0 = arith.constant 0 : index
    %c0_1 = arith.constant 0 : index
    %3 = vector.load %arg6[%c0, %c0_1] : memref<256x32xf32, #tpu.memory_space<vmem>>, vector<256x32xf32>
    %c0_2 = arith.constant 0 : index
    %c0_3 = arith.constant 0 : index
    %c0_4 = arith.constant 0 : index
    %c0_5 = arith.constant 0 : index
    %4 = vector.load %arg2[%c0_2, %c0_3, %c0_4, %c0_5] : memref<1x1x256x32xbf16, #tpu.memory_space<vmem>>, vector<1x1x256x32xbf16>
    %5 = vector.shape_cast %4 : vector<1x1x256x32xbf16> to vector<256x32xbf16>
    %c0_6 = arith.constant 0 : index
    %c0_7 = arith.constant 0 : index
    %c0_8 = arith.constant 0 : index
    %6 = vector.load %arg3[%c0_6, %c0_7, %c0_8] : memref<1x32x32xbf16, #tpu.memory_space<vmem>>, vector<1x32x32xbf16>
    %7 = vector.shape_cast %6 : vector<1x32x32xbf16> to vector<32x32xbf16>
    %cst = arith.constant dense<0.000000e+00> : vector<256x32xf32>
    %8 = tpu.matmul %5, %7, %cst {dimension_numbers = #tpu.dot_dimension_numbers<[1], [0], [0], [1], [0, 0, 1, 1], [], []>} : vector<256x32xbf16>, vector<32x32xbf16>, vector<256x32xf32> -> vector<256x32xf32>
    %9 = arith.addf %3, %8 : vector<256x32xf32>
    %c0_9 = arith.constant 0 : index
    %c0_10 = arith.constant 0 : index
    %10 = vector.load %arg6[%c0_9, %c0_10] : memref<256x32xf32, #tpu.memory_space<vmem>>, vector<256x32xf32>
    tpu.vector_store %arg6[%c0_9, %c0_10], %9 {strides = array<i32>} : memref<256x32xf32, #tpu.memory_space<vmem>>, vector<256x32xf32>,
    %c8_i32 = arith.constant 8 : i32
    %11 = arith.cmpi eq, %arg1, %c8_i32 : i32
    %12 = arith.extui %11 : i1 to i32
    %c0_i32_11 = arith.constant 0 : i32
    %13 = arith.cmpi ne, %12, %c0_i32_11 : i32
    scf.if %13 {
      %c0_12 = arith.constant 0 : index
      %c0_13 = arith.constant 0 : index
      %14 = vector.load %arg6[%c0_12, %c0_13] : memref<256x32xf32, #tpu.memory_space<vmem>>, vector<256x32xf32>
      %c0_14 = arith.constant 0 : index
      %c0_15 = arith.constant 0 : index
      %15 = vector.load %arg4[%c0_14, %c0_15] : memref<1x32xf32, #tpu.memory_space<vmem>>, vector<1x32xf32>
      %16 = vector.broadcast %15 : vector<1x32xf32> to vector<256x32xf32>
      %17 = arith.addf %14, %16 : vector<256x32xf32>
      %18 = arith.truncf %17 : vector<256x32xf32> to vector<256x32xbf16>
      %c0_16 = arith.constant 0 : index
      %c0_17 = arith.constant 0 : index
      %c0_18 = arith.constant 0 : index
      %19 = vector.load %arg5[%c0_16, %c0_17, %c0_18] : memref<1x256x32xbf16, #tpu.memory_space<vmem>>, vector<1x256x32xbf16>
      %20 = vector.shape_cast %19 : vector<1x256x32xbf16> to vector<256x32xbf16>
      %21 = vector.shape_cast %18 : vector<256x32xbf16> to vector<1x256x32xbf16>
      tpu.vector_store %arg5[%c0_16, %c0_17, %c0_18], %21 {strides = array<i32>} : memref<1x256x32xbf16, #tpu.memory_space<vmem>>, vector<1x256x32xbf16>,
    } else {
    }
    return
  }
  func.func @transform_0(%arg0: i32, %arg1: i32) -> (i32, i32, i32, i32) {
    %c0_i32 = arith.constant 0 : i32
    %c0_i32_0 = arith.constant 0 : i32
    %c0_i32_1 = arith.constant 0 : i32
    return %arg0, %arg1, %c0_i32, %c0_i32_0 : i32, i32, i32, i32
  }
  func.func @transform_1(%arg0: i32, %arg1: i32) -> (i32, i32, i32) {
    %c0_i32 = arith.constant 0 : i32
    %c0_i32_0 = arith.constant 0 : i32
    %c0_i32_1 = arith.constant 0 : i32
    return %arg1, %c0_i32, %c0_i32_0 : i32, i32, i32
  }
  func.func @transform_2(%arg0: i32, %arg1: i32) -> (i32, i32) {
    %c0_i32 = arith.constant 0 : i32
    %c0_i32_0 = arith.constant 0 : i32
    %c0_i32_1 = arith.constant 0 : i32
    return %c0_i32, %c0_i32_0 : i32, i32
  }
  func.func @transform_3(%arg0: i32, %arg1: i32) -> (i32, i32, i32) {
    %c0_i32 = arith.constant 0 : i32
    %c0_i32_0 = arith.constant 0 : i32
    %c0_i32_1 = arith.constant 0 : i32
    return %arg0, %c0_i32, %c0_i32_0 : i32, i32, i32
  }
}

module attributes {stable_mosaic.version = 11 : i64} {
  func.func @_linear_kernel(%arg0: i32, %arg1: i32, %arg2: i32, %arg3: memref<16x8192xbf16, #tpu.memory_space<vmem>>, %arg4: memref<8192x256xbf16, #tpu.memory_space<vmem>>, %arg5: memref<1x256xf32, #tpu.memory_space<vmem>>, %arg6: memref<16x256xbf16, #tpu.memory_space<vmem>>, %arg7: memref<16x256xf32, #tpu.memory_space<vmem>>) attributes {dimension_semantics = [#tpu.dimension_semantics<parallel>, #tpu.dimension_semantics<parallel>, #tpu.dimension_semantics<arbitrary>], iteration_bounds = array<i64: 1, 1, 1>, scalar_prefetch = 0 : i64, scratch_operands = 1 : i64, tpu.core_type = #tpu.core_type<tc>, window_params = [{transform_indices = @transform_0, window_bounds = array<i64: 16, 8192>}, {transform_indices = @transform_1, window_bounds = array<i64: 8192, 256>}, {transform_indices = @transform_2, window_bounds = array<i64: 1, 256>}, {transform_indices = @transform_3, window_bounds = array<i64: 16, 256>}]} {
    %c0_i32 = arith.constant 0 : i32
    %0 = arith.cmpi eq, %arg2, %c0_i32 : i32
    %1 = arith.extui %0 : i1 to i32
    %c0_i32_0 = arith.constant 0 : i32
    %2 = arith.cmpi ne, %1, %c0_i32_0 : i32
    scf.if %2 {
      %cst_10 = arith.constant 0.000000e+00 : f32
      %12 = vector.broadcast %cst_10 : f32 to vector<16x256xf32>
      %c0_11 = arith.constant 0 : index
      %c0_12 = arith.constant 0 : index
      %13 = vector.load %arg7[%c0_11, %c0_12] : memref<16x256xf32, #tpu.memory_space<vmem>>, vector<16x256xf32>
      tpu.vector_store %arg7[%c0_11, %c0_12], %12 {strides = array<i32>} : memref<16x256xf32, #tpu.memory_space<vmem>>, vector<16x256xf32>,
    } else {
    }
    %c0 = arith.constant 0 : index
    %c0_1 = arith.constant 0 : index
    %3 = vector.load %arg7[%c0, %c0_1] : memref<16x256xf32, #tpu.memory_space<vmem>>, vector<16x256xf32>
    %c0_2 = arith.constant 0 : index
    %c0_3 = arith.constant 0 : index
    %4 = vector.load %arg3[%c0_2, %c0_3] : memref<16x8192xbf16, #tpu.memory_space<vmem>>, vector<16x8192xbf16>
    %c0_4 = arith.constant 0 : index
    %c0_5 = arith.constant 0 : index
    %5 = vector.load %arg4[%c0_4, %c0_5] : memref<8192x256xbf16, #tpu.memory_space<vmem>>, vector<8192x256xbf16>
    %cst = arith.constant dense<0.000000e+00> : vector<16x256xf32>
    %6 = tpu.matmul %4, %5, %cst {dimension_numbers = #tpu.dot_dimension_numbers<[1], [0], [0], [1], [0, 0, 1, 1], [], []>} : vector<16x8192xbf16>, vector<8192x256xbf16>, vector<16x256xf32> -> vector<16x256xf32>
    %7 = arith.addf %3, %6 : vector<16x256xf32>
    %c0_6 = arith.constant 0 : index
    %c0_7 = arith.constant 0 : index
    %8 = vector.load %arg7[%c0_6, %c0_7] : memref<16x256xf32, #tpu.memory_space<vmem>>, vector<16x256xf32>
    tpu.vector_store %arg7[%c0_6, %c0_7], %7 {strides = array<i32>} : memref<16x256xf32, #tpu.memory_space<vmem>>, vector<16x256xf32>,
    %c0_i32_8 = arith.constant 0 : i32
    %9 = arith.cmpi eq, %arg2, %c0_i32_8 : i32
    %10 = arith.extui %9 : i1 to i32
    %c0_i32_9 = arith.constant 0 : i32
    %11 = arith.cmpi ne, %10, %c0_i32_9 : i32
    scf.if %11 {
      %c0_10 = arith.constant 0 : index
      %c0_11 = arith.constant 0 : index
      %12 = vector.load %arg7[%c0_10, %c0_11] : memref<16x256xf32, #tpu.memory_space<vmem>>, vector<16x256xf32>
      %c0_12 = arith.constant 0 : index
      %c0_13 = arith.constant 0 : index
      %13 = vector.load %arg5[%c0_12, %c0_13] : memref<1x256xf32, #tpu.memory_space<vmem>>, vector<1x256xf32>
      %14 = vector.broadcast %13 : vector<1x256xf32> to vector<16x256xf32>
      %15 = arith.addf %12, %14 : vector<16x256xf32>
      %cst_14 = arith.constant 0.000000e+00 : f32
      %16 = vector.broadcast %cst_14 : f32 to vector<16x256xf32>
      %17 = arith.maximumf %15, %16 : vector<16x256xf32>
      %18 = arith.truncf %17 : vector<16x256xf32> to vector<16x256xbf16>
      %c0_15 = arith.constant 0 : index
      %c0_16 = arith.constant 0 : index
      %19 = vector.load %arg6[%c0_15, %c0_16] : memref<16x256xbf16, #tpu.memory_space<vmem>>, vector<16x256xbf16>
      tpu.vector_store %arg6[%c0_15, %c0_16], %18 {strides = array<i32>} : memref<16x256xbf16, #tpu.memory_space<vmem>>, vector<16x256xbf16>,
    } else {
    }
    return
  }
  func.func @transform_0(%arg0: i32, %arg1: i32, %arg2: i32) -> (i32, i32) {
    %c0_i32 = arith.constant 0 : i32
    return %arg1, %arg2 : i32, i32
  }
  func.func @transform_1(%arg0: i32, %arg1: i32, %arg2: i32) -> (i32, i32) {
    %c0_i32 = arith.constant 0 : i32
    return %arg2, %arg0 : i32, i32
  }
  func.func @transform_2(%arg0: i32, %arg1: i32, %arg2: i32) -> (i32, i32) {
    %c0_i32 = arith.constant 0 : i32
    %c0_i32_0 = arith.constant 0 : i32
    return %c0_i32, %arg0 : i32, i32
  }
  func.func @transform_3(%arg0: i32, %arg1: i32, %arg2: i32) -> (i32, i32) {
    %c0_i32 = arith.constant 0 : i32
    return %arg1, %arg0 : i32, i32
  }
}

module attributes {stable_mosaic.version = 11 : i64} {
  func.func @_fc2_fc3_kernel(%arg0: i32, %arg1: i32, %arg2: i32, %arg3: memref<16x256xbf16, #tpu.memory_space<vmem>>, %arg4: memref<256x256xbf16, #tpu.memory_space<vmem>>, %arg5: memref<1x256xf32, #tpu.memory_space<vmem>>, %arg6: memref<256x128xbf16, #tpu.memory_space<vmem>>, %arg7: memref<1x16x128xf32, #tpu.memory_space<vmem>>, %arg8: memref<16x256xf32, #tpu.memory_space<vmem>>) attributes {dimension_semantics = [#tpu.dimension_semantics<parallel>, #tpu.dimension_semantics<parallel>, #tpu.dimension_semantics<arbitrary>], iteration_bounds = array<i64: 1, 1, 1>, scalar_prefetch = 0 : i64, scratch_operands = 1 : i64, tpu.core_type = #tpu.core_type<tc>, window_params = [{transform_indices = @transform_0, window_bounds = array<i64: 16, 256>}, {transform_indices = @transform_1, window_bounds = array<i64: 256, 256>}, {transform_indices = @transform_2, window_bounds = array<i64: 1, 256>}, {transform_indices = @transform_3, window_bounds = array<i64: 256, 128>}, {transform_indices = @transform_4, window_bounds = array<i64: 1, 16, 128>}]} {
    %c0_i32 = arith.constant 0 : i32
    %0 = arith.cmpi eq, %arg2, %c0_i32 : i32
    %1 = arith.extui %0 : i1 to i32
    %c0_i32_0 = arith.constant 0 : i32
    %2 = arith.cmpi ne, %1, %c0_i32_0 : i32
    scf.if %2 {
      %cst_10 = arith.constant 0.000000e+00 : f32
      %12 = vector.broadcast %cst_10 : f32 to vector<16x256xf32>
      %c0_11 = arith.constant 0 : index
      %c0_12 = arith.constant 0 : index
      %13 = vector.load %arg8[%c0_11, %c0_12] : memref<16x256xf32, #tpu.memory_space<vmem>>, vector<16x256xf32>
      tpu.vector_store %arg8[%c0_11, %c0_12], %12 {strides = array<i32>} : memref<16x256xf32, #tpu.memory_space<vmem>>, vector<16x256xf32>,
    } else {
    }
    %c0 = arith.constant 0 : index
    %c0_1 = arith.constant 0 : index
    %3 = vector.load %arg8[%c0, %c0_1] : memref<16x256xf32, #tpu.memory_space<vmem>>, vector<16x256xf32>
    %c0_2 = arith.constant 0 : index
    %c0_3 = arith.constant 0 : index
    %4 = vector.load %arg3[%c0_2, %c0_3] : memref<16x256xbf16, #tpu.memory_space<vmem>>, vector<16x256xbf16>
    %c0_4 = arith.constant 0 : index
    %c0_5 = arith.constant 0 : index
    %5 = vector.load %arg4[%c0_4, %c0_5] : memref<256x256xbf16, #tpu.memory_space<vmem>>, vector<256x256xbf16>
    %cst = arith.constant dense<0.000000e+00> : vector<16x256xf32>
    %6 = tpu.matmul %4, %5, %cst {dimension_numbers = #tpu.dot_dimension_numbers<[1], [0], [0], [1], [0, 0, 1, 1], [], []>} : vector<16x256xbf16>, vector<256x256xbf16>, vector<16x256xf32> -> vector<16x256xf32>
    %7 = arith.addf %3, %6 : vector<16x256xf32>
    %c0_6 = arith.constant 0 : index
    %c0_7 = arith.constant 0 : index
    %8 = vector.load %arg8[%c0_6, %c0_7] : memref<16x256xf32, #tpu.memory_space<vmem>>, vector<16x256xf32>
    tpu.vector_store %arg8[%c0_6, %c0_7], %7 {strides = array<i32>} : memref<16x256xf32, #tpu.memory_space<vmem>>, vector<16x256xf32>,
    %c0_i32_8 = arith.constant 0 : i32
    %9 = arith.cmpi eq, %arg2, %c0_i32_8 : i32
    %10 = arith.extui %9 : i1 to i32
    %c0_i32_9 = arith.constant 0 : i32
    %11 = arith.cmpi ne, %10, %c0_i32_9 : i32
    scf.if %11 {
      %c0_10 = arith.constant 0 : index
      %c0_11 = arith.constant 0 : index
      %12 = vector.load %arg8[%c0_10, %c0_11] : memref<16x256xf32, #tpu.memory_space<vmem>>, vector<16x256xf32>
      %c0_12 = arith.constant 0 : index
      %c0_13 = arith.constant 0 : index
      %13 = vector.load %arg5[%c0_12, %c0_13] : memref<1x256xf32, #tpu.memory_space<vmem>>, vector<1x256xf32>
      %14 = vector.broadcast %13 : vector<1x256xf32> to vector<16x256xf32>
      %15 = arith.addf %12, %14 : vector<16x256xf32>
      %cst_14 = arith.constant 0.000000e+00 : f32
      %16 = vector.broadcast %cst_14 : f32 to vector<16x256xf32>
      %17 = arith.maximumf %15, %16 : vector<16x256xf32>
      %18 = arith.truncf %17 : vector<16x256xf32> to vector<16x256xbf16>
      %c0_15 = arith.constant 0 : index
      %c0_16 = arith.constant 0 : index
      %19 = vector.load %arg6[%c0_15, %c0_16] : memref<256x128xbf16, #tpu.memory_space<vmem>>, vector<256x128xbf16>
      %cst_17 = arith.constant dense<0.000000e+00> : vector<16x128xf32>
      %20 = tpu.matmul %18, %19, %cst_17 {dimension_numbers = #tpu.dot_dimension_numbers<[1], [0], [0], [1], [0, 0, 1, 1], [], []>} : vector<16x256xbf16>, vector<256x128xbf16>, vector<16x128xf32> -> vector<16x128xf32>
      %c0_18 = arith.constant 0 : index
      %c0_19 = arith.constant 0 : index
      %c0_20 = arith.constant 0 : index
      %21 = vector.load %arg7[%c0_18, %c0_19, %c0_20] : memref<1x16x128xf32, #tpu.memory_space<vmem>>, vector<1x16x128xf32>
      %22 = vector.shape_cast %21 : vector<1x16x128xf32> to vector<16x128xf32>
      %23 = vector.shape_cast %20 : vector<16x128xf32> to vector<1x16x128xf32>
      tpu.vector_store %arg7[%c0_18, %c0_19, %c0_20], %23 {strides = array<i32>} : memref<1x16x128xf32, #tpu.memory_space<vmem>>, vector<1x16x128xf32>,
    } else {
    }
    return
  }
  func.func @transform_0(%arg0: i32, %arg1: i32, %arg2: i32) -> (i32, i32) {
    %c0_i32 = arith.constant 0 : i32
    return %arg1, %arg2 : i32, i32
  }
  func.func @transform_1(%arg0: i32, %arg1: i32, %arg2: i32) -> (i32, i32) {
    %c0_i32 = arith.constant 0 : i32
    return %arg2, %arg0 : i32, i32
  }
  func.func @transform_2(%arg0: i32, %arg1: i32, %arg2: i32) -> (i32, i32) {
    %c0_i32 = arith.constant 0 : i32
    %c0_i32_0 = arith.constant 0 : i32
    return %c0_i32, %arg0 : i32, i32
  }
  func.func @transform_3(%arg0: i32, %arg1: i32, %arg2: i32) -> (i32, i32) {
    %c0_i32 = arith.constant 0 : i32
    %c0_i32_0 = arith.constant 0 : i32
    return %arg0, %c0_i32 : i32, i32
  }
  func.func @transform_4(%arg0: i32, %arg1: i32, %arg2: i32) -> (i32, i32, i32) {
    %c0_i32 = arith.constant 0 : i32
    %c0_i32_0 = arith.constant 0 : i32
    return %arg0, %arg1, %c0_i32 : i32, i32, i32
  }
}

</mosaic_0001>

<bundles_post_ra>
// kernel: clsout_forward.3
= control target key start
LH: loop header
LB: loop body
LE: loop exit
PB: predicated region body
PF: predicated region fallthrough
CT: control target
= control target key end

     0   :  { %s1307_s12 = smov 0   ;;  %s1309_s13 = smov 0   ;;  %s1572_s0 = inlined_call_operand.vmem [shape: bf16[2,9,256,32], index: 0, kind: input, shape index: {}]   ;;  %s1573_s1 = inlined_call_operand.vmem [shape: bf16[9,32,32], index: 1, kind: input, shape index: {}]   ;;  %s1574_s2 = inlined_call_operand.vmem [shape: f32[1,32], index: 2, kind: input, shape index: {}]   ;;  %s1575_s3 = inlined_call_operand.vmem [shape: bf16[2,256,32], index: 3, kind: output, shape index: {}]  }
   0x1   :  { %s1311_s14 = smov 0   ;;  %s1313_s15 = smov 0  }
   0x2   :  { %s1315_s16 = smov 0  }
   0x3 LB: > { %s22_s17 = sadd.s32 1, %s1276_s14  ;;  %s25_s18 = sadd.s32 1, %s1280_s15  ;;  %s1284_s16 = sphi %s1315_s16, %s13_s16   ;;  %s1280_s15 = sphi %s1313_s15, %s1579_s15   ;;  %s1276_s14 = sphi %s1311_s14, %s1578_s14   ;;  %s1272_s13 = sphi %s1309_s13, %s1577_s13   ;;  %s1268_s12 = sphi %s1307_s12, %s1576_s12  }
   0x4   : > { %p23_p0 = scmp.ge.s32.totalorder %s22_s17, 9  ;;  %p1016_p1 = scmp.ge.s32.totalorder %s1284_s16, 1 }
   0x5   : > { %p165_p2 = scmp.lt.s32.totalorder %s1284_s16, 19 }
   0x6   : > { %s1581_s17 = smov (%p23_p0, %s22_s17), 0  ;;  %s1583_s18 = smov (!%p23_p0, %s25_s18), %s1280_s15 }
   0x7   : > { %p166_p3 = pnand %p1016_p1, %p165_p2  ;;  %p27_p4 = scmp.ge.s32.totalorder %s1583_s18, 2 }
   0x8   : > { %p198_p5 = scmp.lt.s32.totalorder (!%p166_p3), %s1272_s13, 1  ;;  %p200_p6 = scmp.lt.s32.totalorder (!%p166_p3), %s1268_s12, 8 }
   0x9   : > { %s1585_s18 = smov (%p27_p4, %s1583_s18), 0  ;;  %169 = sbr.rel (%p166_p3) target bundleno = 301 (0x12d), region = 32 }
   0xa   : > { %p1023_p7 = scmp.ne.s32.totalorder (!%p166_p3), %s1268_s12, 0 }
  0x10   : > { %s1587_s13 = smov (!%p198_p5, %s1272_s13), 1  ;;  %221 = sbr.rel (%p1023_p7) target bundleno = 35 (0x23), region = 36 }
  0x11   : > { %s201_s19 = scalar_select %p200_p6, %s1268_s12, 8 }
  0x12   : > { %s1186_s20 = smul.u32 288, %s1587_s13  ;;  %s1095_s21 = sshll.u32 %s1587_s13, 7  ;;  %vm222_vm0 = vcmask (!%p1023_p7), 261120   ;;  %v1286_v0 = vmov (!%p1023_p7), 0.0  }
  0x13   : > { %s1017_s22 = sshll.u32 %s201_s19, 5  ;;  %s1094_s23 = sshll.u32 %s201_s19, 4  ;;  %223 = vst.msk [vmem:[#allocation2] sm:$0xff] (!%p1023_p7), %vm222_vm0, %v1286_v0  ;;  %224 = vst.msk [vmem:[#allocation2 + $0x8] sm:$0xff] (!%p1023_p7), %vm222_vm0, %v1286_v0 }
  0x14   : > { %s204_s24 = sadd.s32 %s1186_s20, %s1017_s22  ;;  %s1344_s27 = scalar_lea.vmem %s1573_s1, %s1094_s23  ;;  %225 = vst.msk [vmem:[#allocation2 + $0x10] sm:$0xff] (!%p1023_p7), %vm222_vm0, %v1286_v0  ;;  %226 = vst.msk [vmem:[#allocation2 + $0x18] sm:$0xff] (!%p1023_p7), %vm222_vm0, %v1286_v0 }
  0x15   : > { %s1018_s28 = sshll.u32 %s204_s24, 2  ;;  %s1349_s4 = scalar_lea.vmem %s1575_s3, %s1095_s21  ;;  %227 = vst.msk [vmem:[#allocation2 + $0x20] sm:$0xff] (!%p1023_p7), %vm222_vm0, %v1286_v0  ;;  %228 = vst.msk [vmem:[#allocation2 + $0x28] sm:$0xff] (!%p1023_p7), %vm222_vm0, %v1286_v0 }
  0x16   : > { %s1354_s7 = scalar_lea.vmem %s1572_s0, %s1018_s28  ;;  %229 = vst.msk [vmem:[#allocation2 + $0x30] sm:$0xff] (!%p1023_p7), %vm222_vm0, %v1286_v0  ;;  %230 = vst.msk [vmem:[#allocation2 + $0x38] sm:$0xff] (!%p1023_p7), %vm222_vm0, %v1286_v0 }
  0x17   : > { %231 = vst.msk [vmem:[#allocation2 + $0x40] sm:$0xff] %vm222_vm0, %v1286_v0  ;;  %232 = vst.msk [vmem:[#allocation2 + $0x48] sm:$0xff] %vm222_vm0, %v1286_v0 }
  0x18   : > { %233 = vst.msk [vmem:[#allocation2 + $0x50] sm:$0xff] %vm222_vm0, %v1286_v0  ;;  %234 = vst.msk [vmem:[#allocation2 + $0x58] sm:$0xff] %vm222_vm0, %v1286_v0 }
  0x19   : > { %235 = vst.msk [vmem:[#allocation2 + $0x60] sm:$0xff] %vm222_vm0, %v1286_v0  ;;  %236 = vst.msk [vmem:[#allocation2 + $0x68] sm:$0xff] %vm222_vm0, %v1286_v0 }
  0x1a   : > { %237 = vst.msk [vmem:[#allocation2 + $0x70] sm:$0xff] %vm222_vm0, %v1286_v0  ;;  %238 = vst.msk [vmem:[#allocation2 + $0x78] sm:$0xff] %vm222_vm0, %v1286_v0 }
  0x1b   : > { %239 = vst.msk [vmem:[#allocation2 + $0x80] sm:$0xff] %vm222_vm0, %v1286_v0  ;;  %240 = vst.msk [vmem:[#allocation2 + $0x88] sm:$0xff] %vm222_vm0, %v1286_v0 }
  0x1c   : > { %241 = vst.msk [vmem:[#allocation2 + $0x90] sm:$0xff] %vm222_vm0, %v1286_v0  ;;  %242 = vst.msk [vmem:[#allocation2 + $0x98] sm:$0xff] %vm222_vm0, %v1286_v0 }
  0x1d   : > { %243 = vst.msk [vmem:[#allocation2 + $0xa0] sm:$0xff] %vm222_vm0, %v1286_v0  ;;  %244 = vst.msk [vmem:[#allocation2 + $0xa8] sm:$0xff] %vm222_vm0, %v1286_v0 }
  0x1e   : > { %245 = vst.msk [vmem:[#allocation2 + $0xb0] sm:$0xff] %vm222_vm0, %v1286_v0  ;;  %246 = vst.msk [vmem:[#allocation2 + $0xb8] sm:$0xff] %vm222_vm0, %v1286_v0 }
  0x1f   : > { %247 = vst.msk [vmem:[#allocation2 + $0xc0] sm:$0xff] %vm222_vm0, %v1286_v0  ;;  %248 = vst.msk [vmem:[#allocation2 + $0xc8] sm:$0xff] %vm222_vm0, %v1286_v0 }
  0x20   : > { %249 = vst.msk [vmem:[#allocation2 + $0xd0] sm:$0xff] %vm222_vm0, %v1286_v0  ;;  %250 = vst.msk [vmem:[#allocation2 + $0xd8] sm:$0xff] %vm222_vm0, %v1286_v0 }
  0x21   : > { %251 = vst.msk [vmem:[#allocation2 + $0xe0] sm:$0xff] %vm222_vm0, %v1286_v0  ;;  %252 = vst.msk [vmem:[#allocation2 + $0xe8] sm:$0xff] %vm222_vm0, %v1286_v0 }
  0x22   : > { %253 = vst.msk [vmem:[#allocation2 + $0xf0] sm:$0xff] %vm222_vm0, %v1286_v0  ;;  %254 = vst.msk [vmem:[#allocation2 + $0xf8] sm:$0xff] %vm222_vm0, %v1286_v0 }
  0x23 PF: > { %v1228_v1 = vld [vmem:[%s1344_s27] sm:$0xff]   ;;  %v1229_v2 = vld [vmem:[%s1344_s27 + $0x8] sm:$0xff]   ;;  %vm415_vm1 = vcmask 261120   ;;  %v1234_v7 = vld [vmem:[%s1354_s7 + $0x10] sm:$0xff]   ;;  %p1058_p8 = scmp.ne.s32.totalorder %s1268_s12, 8 }
  0x24   : > { %1146 = vmatprep.subr.bf16.mxu0 %v1228_v1  ;;  %1182 = vmatprep.subr.bf16.mxu1 %v1228_v1  ;;  %v1230_v3 = vld [vmem:[%s1354_s7] sm:$0xff]   ;;  %v1232_v5 = vld [vmem:[%s1354_s7 + $0x8] sm:$0xff]   ;;  %v1235_v8 = vld [vmem:[%s1354_s7 + $0x50] sm:$0xff]   ;;  %vm892_vm2 = vcmask (!%p1058_p8), 257024  }
  0x25   : > { %1147 = vmatpush3.bf16.msra.mxu0 %v1228_v1  ;;  %1184 = vmatpush3.bf16.msra.mxu1 %v1228_v1  ;;  %v1231_v4 = vld [vmem:[%s1354_s7 + $0x40] sm:$0xff]   ;;  %v1233_v6 = vld [vmem:[%s1354_s7 + $0x48] sm:$0xff]   ;;  %v1236_v9 = vld [vmem:[%s1354_s7 + $0x18] sm:$0xff]  }
  0x26   : > { %1148 = vmatprep.subr.bf16.mxu0 %v1229_v2  ;;  %1183 = vmatprep.subr.bf16.mxu1 %v1229_v2  ;;  %v1237_v10 = vld [vmem:[%s1354_s7 + $0x58] sm:$0xff]   ;;  %v1238_v11 = vld [vmem:[%s1354_s7 + $0x20] sm:$0xff]   ;;  %v1240_v13 = vld [vmem:[%s1354_s7 + $0x28] sm:$0xff]  }
  0x27   : > { %1150 = vmatprep.mubr.msk.bf16.mxu0 %vm415_vm1, %v1230_v3  ;;  %1166 = vmatprep.mubr.msk.bf16.mxu1 %vm415_vm1, %v1231_v4  ;;  %v1239_v12 = vld [vmem:[%s1354_s7 + $0x60] sm:$0xff]   ;;  %v1241_v14 = vld [vmem:[%s1354_s7 + $0x68] sm:$0xff]   ;;  %v1242_v15 = vld [vmem:[%s1354_s7 + $0x30] sm:$0xff]  }
  0x28   : > { %v1243_v16 = vld [vmem:[%s1354_s7 + $0x70] sm:$0xff]   ;;  %v1244_v17 = vld [vmem:[%s1354_s7 + $0x38] sm:$0xff]   ;;  %v255_v21 = vld [vmem:[#allocation2] sm:$0xff] }
  0x29   : > { %1149 = vmatpush3.bf16.msra.mxu0 %v1229_v2  ;;  %1185 = vmatpush3.bf16.msra.mxu1 %v1229_v2  ;;  %v1245_v18 = vld [vmem:[%s1354_s7 + $0x78] sm:$0xff]   ;;  %v257_v19 = vld [vmem:[#allocation2 + $0x10] sm:$0xff]  ;;  %v271_v22 = vld [vmem:[#allocation2 + $0x80] sm:$0xff] }
  0x2a   : > { %v273_v20 = vld [vmem:[#allocation2 + $0x90] sm:$0xff]  ;;  %v258_v25 = vld [vmem:[#allocation2 + $0x18] sm:$0xff]  ;;  %v256_v31 = vld [vmem:[#allocation2 + $0x8] sm:$0xff] }
  0x2b   : > { %v274_v26 = vld [vmem:[#allocation2 + $0x98] sm:$0xff]  ;;  %v272_v32 = vld [vmem:[#allocation2 + $0x88] sm:$0xff]  ;;  %v261_v43 = vld [vmem:[#allocation2 + $0x30] sm:$0xff] }
  0x2c   : > { %1151 = vmatmul.mubr.msk.bf16.vlgmr.msra.gmra.mrb[0].mxu0 %vm415_vm1, %v1232_v5  ;;  %1167 = vmatmul.mubr.msk.bf16.vlgmr.msra.gmra.mrb[0].mxu1 %vm415_vm1, %v1233_v6  ;;  %v277_v44 = vld [vmem:[#allocation2 + $0xb0] sm:$0xff]  ;;  %v259_v45 = vld [vmem:[#allocation2 + $0x20] sm:$0xff]  ;;  %v262_v49 = vld [vmem:[#allocation2 + $0x38] sm:$0xff] }
  0x2d   : > { %1154 = vmatprep.mubr.msk.bf16.mxu0 %vm415_vm1, %v1234_v7  ;;  %1170 = vmatprep.mubr.msk.bf16.mxu1 %vm415_vm1, %v1235_v8  ;;  %v275_v46 = vld [vmem:[#allocation2 + $0xa0] sm:$0xff]  ;;  %v278_v50 = vld [vmem:[#allocation2 + $0xb8] sm:$0xff]  ;;  %v260_v55 = vld [vmem:[#allocation2 + $0x28] sm:$0xff] }
  0x2e   : > { %v276_v56 = vld [vmem:[#allocation2 + $0xa8] sm:$0xff]  ;;  %v265_v3 = vld [vmem:[#allocation2 + $0x50] sm:$0xff]  ;;  %v263_v5 = vld [vmem:[#allocation2 + $0x40] sm:$0xff] }
  0x2f   : > { %v281_v4 = vld [vmem:[#allocation2 + $0xd0] sm:$0xff]  ;;  %v279_v6 = vld [vmem:[#allocation2 + $0xc0] sm:$0xff] }
  0x34   : > { %1155 = vmatmul.mubr.msk.bf16.gmra.mrb[4].mxu0 %vm415_vm1, %v1236_v9  ;;  %1171 = vmatmul.mubr.msk.bf16.gmra.mrb[4].mxu1 %vm415_vm1, %v1237_v10  ;;  %v266_v9 = vld [vmem:[#allocation2 + $0x58] sm:$0xff] }
  0x35   : > { %1158 = vmatprep.mubr.msk.bf16.mxu0 %vm415_vm1, %v1238_v11  ;;  %1174 = vmatprep.mubr.msk.bf16.mxu1 %vm415_vm1, %v1239_v12  ;;  %v282_v10 = vld [vmem:[#allocation2 + $0xd8] sm:$0xff] }
  0x3c   : > { %1159 = vmatmul.mubr.msk.bf16.gmra.mrb[8].mxu0 %vm415_vm1, %v1240_v13  ;;  %1175 = vmatmul.mubr.msk.bf16.gmra.mrb[8].mxu1 %vm415_vm1, %v1241_v14 }
  0x3d   : > { %1162 = vmatprep.mubr.msk.bf16.mxu0 %vm415_vm1, %v1242_v15  ;;  %1178 = vmatprep.mubr.msk.bf16.mxu1 %vm415_vm1, %v1243_v16  ;;  %v264_v15 = vld [vmem:[#allocation2 + $0x48] sm:$0xff] }
  0x3e   : > { %v280_v16 = vld [vmem:[#allocation2 + $0xc8] sm:$0xff] }
  0x44   : > { %1163 = vmatmul.mubr.msk.bf16.gmra.mrb[12].mxu0 %vm415_vm1, %v1244_v17  ;;  %1179 = vmatmul.mubr.msk.bf16.gmra.mrb[12].mxu1 %vm415_vm1, %v1245_v18 }
  0xff   : > { %v1152_v23 = vpop.f32.mrb[0].mxu0  ;;  %v1168_v24 = vpop.f32.mrb[0].mxu1 }
 0x100   : > { %v627_v27 = vadd.f32 %v1152_v23, %v257_v19  ;;  %v643_v28 = vadd.f32 %v1168_v24, %v273_v20  ;;  %v498_v29 = vpop.f32.mrb[1].mxu0  ;;  %v562_v30 = vpop.f32.mrb[1].mxu1 }
 0x101   : > { %v625_v33 = vadd.f32 %v498_v29, %v255_v21  ;;  %v641_v34 = vadd.f32 %v562_v30, %v271_v22  ;;  %v1153_v35 = vpop.f32.mrb[2].mxu0  ;;  %v1169_v36 = vpop.f32.mrb[2].mxu1  ;;  %v267_v29 = vld [vmem:[#allocation2 + $0x60] sm:$0xff] }
 0x102   : > { %659 = vst.msk [vmem:[#allocation2 + $0x10] sm:$0xff] %vm415_vm1, %v627_v27  ;;  %675 = vst.msk [vmem:[#allocation2 + $0x90] sm:$0xff] %vm415_vm1, %v643_v28  ;;  %v628_v37 = vadd.f32 %v1153_v35, %v258_v25  ;;  %v644_v38 = vadd.f32 %v1169_v36, %v274_v26  ;;  %v501_v39 = vpop.f32.mrb[3].mxu0  ;;  %v565_v40 = vpop.f32.mrb[3].mxu1  ;;  %v269_v27 = vld [vmem:[#allocation2 + $0x70] sm:$0xff]  ;;  %v283_v30 = vld [vmem:[#allocation2 + $0xe0] sm:$0xff] }
 0x103   : > { %657 = vst.msk [vmem:[#allocation2] sm:$0xff] %vm415_vm1, %v625_v33  ;;  %673 = vst.msk [vmem:[#allocation2 + $0x80] sm:$0xff] %vm415_vm1, %v641_v34  ;;  %v626_v41 = vadd.f32 %v501_v39, %v256_v31  ;;  %v642_v42 = vadd.f32 %v565_v40, %v272_v32  ;;  %v285_v28 = vld [vmem:[#allocation2 + $0xf0] sm:$0xff]  ;;  %v270_v33 = vld [vmem:[#allocation2 + $0x78] sm:$0xff] }
 0x104   : > { %660 = vst.msk [vmem:[#allocation2 + $0x18] sm:$0xff] %vm415_vm1, %v628_v37  ;;  %676 = vst.msk [vmem:[#allocation2 + $0x98] sm:$0xff] %vm415_vm1, %v644_v38  ;;  %v286_v34 = vld [vmem:[#allocation2 + $0xf8] sm:$0xff]  ;;  %v268_v39 = vld [vmem:[#allocation2 + $0x68] sm:$0xff] }
 0x105   : > { %658 = vst.msk [vmem:[#allocation2 + $0x8] sm:$0xff] %vm415_vm1, %v626_v41  ;;  %674 = vst.msk [vmem:[#allocation2 + $0x88] sm:$0xff] %vm415_vm1, %v642_v42  ;;  %v284_v40 = vld [vmem:[#allocation2 + $0xe8] sm:$0xff] }
 0x107   : > { %v1156_v47 = vpop.f32.mrb[4].mxu0  ;;  %v1172_v48 = vpop.f32.mrb[4].mxu1 }
 0x108   : > { %v631_v51 = vadd.f32 %v1156_v47, %v261_v43  ;;  %v647_v52 = vadd.f32 %v1172_v48, %v277_v44  ;;  %v514_v53 = vpop.f32.mrb[5].mxu0  ;;  %v578_v54 = vpop.f32.mrb[5].mxu1 }
 0x109   : > { %v629_v57 = vadd.f32 %v514_v53, %v259_v45  ;;  %v645_v58 = vadd.f32 %v578_v54, %v275_v46  ;;  %v1157_v59 = vpop.f32.mrb[6].mxu0  ;;  %v1173_v60 = vpop.f32.mrb[6].mxu1 }
 0x10a   : > { %663 = vst.msk [vmem:[#allocation2 + $0x30] sm:$0xff] %vm415_vm1, %v631_v51  ;;  %679 = vst.msk [vmem:[#allocation2 + $0xb0] sm:$0xff] %vm415_vm1, %v647_v52  ;;  %v632_v61 = vadd.f32 %v1157_v59, %v262_v49  ;;  %v648_v62 = vadd.f32 %v1173_v60, %v278_v50  ;;  %v517_v63 = vpop.f32.mrb[7].mxu0  ;;  %v581_v0 = vpop.f32.mrb[7].mxu1  ;;  %v693_v51 = vld [vmem:[#allocation2] sm:$0xff] (!%p1058_p8) }
 0x10b   : > { %661 = vst.msk [vmem:[#allocation2 + $0x20] sm:$0xff] %vm415_vm1, %v629_v57  ;;  %677 = vst.msk [vmem:[#allocation2 + $0xa0] sm:$0xff] %vm415_vm1, %v645_v58  ;;  %v630_v1 = vadd.f32 %v517_v63, %v260_v55  ;;  %v646_v2 = vadd.f32 %v581_v0, %v276_v56  ;;  %v1459_v52 = vld [vmem:[%s1574_s2] ss:$0 sm:$0xff] (!%p1058_p8)  ;;  %v695_v56 = vld [vmem:[#allocation2 + $0x10] sm:$0xff] (!%p1058_p8) }
 0x10c   : > { %664 = vst.msk [vmem:[#allocation2 + $0x38] sm:$0xff] %vm415_vm1, %v632_v61  ;;  %680 = vst.msk [vmem:[#allocation2 + $0xb8] sm:$0xff] %vm415_vm1, %v648_v62  ;;  %v694_v53 = vld [vmem:[#allocation2 + $0x8] sm:$0xff] (!%p1058_p8)  ;;  %v732_v54 = vadd.f32 (!%p1058_p8), %v1459_v52, %v693_v51  ;;  %v696_v57 = vld [vmem:[#allocation2 + $0x18] sm:$0xff] (!%p1058_p8)  ;;  %v734_v59 = vadd.f32 (!%p1058_p8), %v1459_v52, %v695_v56 }
 0x10d   : > { %662 = vst.msk [vmem:[#allocation2 + $0x28] sm:$0xff] %vm415_vm1, %v630_v1  ;;  %678 = vst.msk [vmem:[#allocation2 + $0xa8] sm:$0xff] %vm415_vm1, %v646_v2  ;;  %v733_v55 = vadd.f32 (!%p1058_p8), %v1459_v52, %v694_v53  ;;  %v735_v60 = vadd.f32 (!%p1058_p8), %v1459_v52, %v696_v57 }
 0x10e   : > { %v1096_v1 = vpack.c.bf16 (!%p1058_p8), %v732_v54, %v732_v54 }
 0x10f   : > { %v1160_v7 = vpop.f32.mrb[8].mxu0  ;;  %v1176_v8 = vpop.f32.mrb[8].mxu1  ;;  %v1097_v2 = vpack.c.bf16 (!%p1058_p8), %v733_v55, %v733_v55 }
 0x110   : > { %v635_v11 = vadd.f32 %v1160_v7, %v265_v3  ;;  %v651_v12 = vadd.f32 %v1176_v8, %v281_v4  ;;  %v530_v13 = vpop.f32.mrb[9].mxu0  ;;  %v594_v14 = vpop.f32.mrb[9].mxu1  ;;  %v1098_v8 = vpack.c.bf16 (!%p1058_p8), %v734_v59, %v734_v59  ;;  %893 = vst.msk [vmem:[%s1349_s4] sm:$0xf] (!%p1058_p8), %vm892_vm2, %v1096_v1 }
 0x111   : > { %v633_v17 = vadd.f32 %v530_v13, %v263_v5  ;;  %v649_v18 = vadd.f32 %v594_v14, %v279_v6  ;;  %v1161_v19 = vpop.f32.mrb[10].mxu0  ;;  %v1177_v20 = vpop.f32.mrb[10].mxu1  ;;  %v699_v63 = vld [vmem:[#allocation2 + $0x30] sm:$0xff] (!%p1058_p8)  ;;  %894 = vst.msk [vmem:[%s1349_s4 + $0x4] sm:$0xf] (!%p1058_p8), %vm892_vm2, %v1097_v2 }
 0x112   : > { %667 = vst.msk [vmem:[#allocation2 + $0x50] sm:$0xff] %vm415_vm1, %v635_v11  ;;  %683 = vst.msk [vmem:[#allocation2 + $0xd0] sm:$0xff] %vm415_vm1, %v651_v12  ;;  %v636_v21 = vadd.f32 %v1161_v19, %v266_v9  ;;  %v652_v22 = vadd.f32 %v1177_v20, %v282_v10  ;;  %v533_v23 = vpop.f32.mrb[11].mxu0  ;;  %v597_v24 = vpop.f32.mrb[11].mxu1  ;;  %v697_v58 = vld [vmem:[#allocation2 + $0x20] sm:$0xff] (!%p1058_p8)  ;;  %v738_v4 = vadd.f32 (!%p1058_p8), %v1459_v52, %v699_v63 }
 0x113   : > { %665 = vst.msk [vmem:[#allocation2 + $0x40] sm:$0xff] %vm415_vm1, %v633_v17  ;;  %681 = vst.msk [vmem:[#allocation2 + $0xc0] sm:$0xff] %vm415_vm1, %v649_v18  ;;  %v634_v25 = vadd.f32 %v533_v23, %v264_v15  ;;  %v650_v26 = vadd.f32 %v597_v24, %v280_v16  ;;  %v736_v61 = vadd.f32 (!%p1058_p8), %v1459_v52, %v697_v58  ;;  %v700_v0 = vld [vmem:[#allocation2 + $0x38] sm:$0xff] (!%p1058_p8) }
 0x114   : > { %668 = vst.msk [vmem:[#allocation2 + $0x58] sm:$0xff] %vm415_vm1, %v636_v21  ;;  %684 = vst.msk [vmem:[#allocation2 + $0xd8] sm:$0xff] %vm415_vm1, %v652_v22  ;;  %v698_v62 = vld [vmem:[#allocation2 + $0x28] sm:$0xff] (!%p1058_p8)  ;;  %v1099_v9 = vpack.c.bf16 (!%p1058_p8), %v735_v60, %v735_v60  ;;  %v739_v11 = vadd.f32 (!%p1058_p8), %v1459_v52, %v700_v0  ;;  %v1102_v16 = vpack.c.bf16 (!%p1058_p8), %v738_v4, %v738_v4 }
 0x115   : > { %666 = vst.msk [vmem:[#allocation2 + $0x48] sm:$0xff] %vm415_vm1, %v634_v25  ;;  %682 = vst.msk [vmem:[#allocation2 + $0xc8] sm:$0xff] %vm415_vm1, %v650_v26  ;;  %v737_v3 = vadd.f32 (!%p1058_p8), %v1459_v52, %v698_v62  ;;  %v1100_v10 = vpack.c.bf16 (!%p1058_p8), %v736_v61, %v736_v61  ;;  %v709_v25 = vld [vmem:[#allocation2 + $0x80] sm:$0xff] (!%p1058_p8)  ;;  %v710_v26 = vld [vmem:[#allocation2 + $0x88] sm:$0xff] (!%p1058_p8) }
 0x116   : > { %895 = vst.msk [vmem:[%s1349_s4 + $0x8] sm:$0xf] (!%p1058_p8), %vm892_vm2, %v1098_v8  ;;  %896 = vst.msk [vmem:[%s1349_s4 + $0xc] sm:$0xf] (!%p1058_p8), %vm892_vm2, %v1099_v9  ;;  %v1103_v21 = vpack.c.bf16 (!%p1058_p8), %v739_v11, %v739_v11 }
 0x117   : > { %v1164_v31 = vpop.f32.mrb[12].mxu0  ;;  %v1180_v32 = vpop.f32.mrb[12].mxu1  ;;  %692 = sbr.rel (%p1058_p8) target bundleno = 301 (0x12d), region = 40  ;;  %v1101_v15 = vpack.c.bf16 (!%p1058_p8), %v737_v3, %v737_v3  ;;  %897 = vst.msk [vmem:[%s1349_s4 + $0x10] sm:$0xf] (!%p1058_p8), %vm892_vm2, %v1100_v10 }
 0x118   : > { %v639_v35 = vadd.f32 %v1164_v31, %v269_v27  ;;  %v655_v36 = vadd.f32 %v1180_v32, %v285_v28  ;;  %v546_v37 = vpop.f32.mrb[13].mxu0  ;;  %v610_v38 = vpop.f32.mrb[13].mxu1  ;;  %899 = vst.msk [vmem:[%s1349_s4 + $0x18] sm:$0xf] (!%p1058_p8), %vm892_vm2, %v1102_v16  ;;  %v711_v31 = vld [vmem:[#allocation2 + $0x90] sm:$0xff] (!%p1058_p8)  ;;  %v712_v32 = vld [vmem:[#allocation2 + $0x98] sm:$0xff] (!%p1058_p8) }
 0x119   : > { %v637_v41 = vadd.f32 %v546_v37, %v267_v29  ;;  %v653_v42 = vadd.f32 %v610_v38, %v283_v30  ;;  %v1165_v43 = vpop.f32.mrb[14].mxu0  ;;  %v1181_v44 = vpop.f32.mrb[14].mxu1  ;;  %v703_v7 = vld [vmem:[#allocation2 + $0x50] sm:$0xff] (!%p1058_p8)  ;;  %898 = vst.msk [vmem:[%s1349_s4 + $0x14] sm:$0xf] (!%p1058_p8), %vm892_vm2, %v1101_v15  ;;  %v714_v38 = vld [vmem:[#allocation2 + $0xa8] sm:$0xff] (!%p1058_p8) }
 0x11a   : > { %671 = vst.msk [vmem:[#allocation2 + $0x70] sm:$0xff] %vm415_vm1, %v639_v35  ;;  %687 = vst.msk [vmem:[#allocation2 + $0xf0] sm:$0xff] %vm415_vm1, %v655_v36  ;;  %v640_v45 = vadd.f32 %v1165_v43, %v270_v33  ;;  %v656_v46 = vadd.f32 %v1181_v44, %v286_v34  ;;  %v549_v47 = vpop.f32.mrb[15].mxu0  ;;  %v613_v48 = vpop.f32.mrb[15].mxu1  ;;  %v701_v5 = vld [vmem:[#allocation2 + $0x40] sm:$0xff] (!%p1058_p8)  ;;  %v742_v22 = vadd.f32 (!%p1058_p8), %v1459_v52, %v703_v7  ;;  %v716_v44 = vld [vmem:[#allocation2 + $0xb8] sm:$0xff] (!%p1058_p8) }
 0x11b   : > { %669 = vst.msk [vmem:[#allocation2 + $0x60] sm:$0xff] %vm415_vm1, %v637_v41  ;;  %685 = vst.msk [vmem:[#allocation2 + $0xe0] sm:$0xff] %vm415_vm1, %v653_v42  ;;  %v638_v49 = vadd.f32 %v549_v47, %v268_v39  ;;  %v654_v50 = vadd.f32 %v613_v48, %v284_v40  ;;  %v704_v12 = vld [vmem:[#allocation2 + $0x58] sm:$0xff] (!%p1058_p8)  ;;  %v740_v17 = vadd.f32 (!%p1058_p8), %v1459_v52, %v701_v5  ;;  %v713_v33 = vld [vmem:[#allocation2 + $0xa0] sm:$0xff] (!%p1058_p8) }
 0x11c   : > { %672 = vst.msk [vmem:[#allocation2 + $0x78] sm:$0xff] %vm415_vm1, %v640_v45  ;;  %688 = vst.msk [vmem:[#allocation2 + $0xf8] sm:$0xff] %vm415_vm1, %v656_v46  ;;  %v702_v6 = vld [vmem:[#allocation2 + $0x48] sm:$0xff] (!%p1058_p8)  ;;  %v743_v23 = vadd.f32 (!%p1058_p8), %v1459_v52, %v704_v12  ;;  %v1106_v34 = vpack.c.bf16 (!%p1058_p8), %v742_v22, %v742_v22  ;;  %v715_v39 = vld [vmem:[#allocation2 + $0xb0] sm:$0xff] (!%p1058_p8)  ;;  %v748_v42 = vadd.f32 (!%p1058_p8), %v1459_v52, %v709_v25 }
 0x11d   : > { %670 = vst.msk [vmem:[#allocation2 + $0x68] sm:$0xff] %vm415_vm1, %v638_v49  ;;  %686 = vst.msk [vmem:[#allocation2 + $0xe8] sm:$0xff] %vm415_vm1, %v654_v50  ;;  %v741_v18 = vadd.f32 (!%p1058_p8), %v1459_v52, %v702_v6  ;;  %v1104_v27 = vpack.c.bf16 (!%p1058_p8), %v740_v17, %v740_v17  ;;  %v749_v43 = vadd.f32 (!%p1058_p8), %v1459_v52, %v710_v26  ;;  %v717_v49 = vld [vmem:[#allocation2 + $0xc0] sm:$0xff] (!%p1058_p8)  ;;  %v718_v50 = vld [vmem:[#allocation2 + $0xc8] sm:$0xff] (!%p1058_p8) }
 0x11e   : > { %900 = vst.msk [vmem:[%s1349_s4 + $0x1c] sm:$0xf] %vm892_vm2, %v1103_v21  ;;  %v1107_v35 = vpack.c.bf16 %v743_v23, %v743_v23  ;;  %903 = vst.msk [vmem:[%s1349_s4 + $0x28] sm:$0xf] %vm892_vm2, %v1106_v34  ;;  %v750_v46 = vadd.f32 %v1459_v52, %v711_v31  ;;  %v751_v47 = vadd.f32 %v1459_v52, %v712_v32  ;;  %v719_v56 = vld [vmem:[#allocation2 + $0xd0] sm:$0xff]  ;;  %v720_v57 = vld [vmem:[#allocation2 + $0xd8] sm:$0xff] }
 0x11f   : > { %v1105_v28 = vpack.c.bf16 %v741_v18, %v741_v18  ;;  %901 = vst.msk [vmem:[%s1349_s4 + $0x20] sm:$0xf] %vm892_vm2, %v1104_v27  ;;  %v752_v48 = vadd.f32 %v1459_v52, %v713_v33  ;;  %v1112_v51 = vpack.c.bf16 %v748_v42, %v748_v42  ;;  %v1113_v53 = vpack.c.bf16 %v749_v43, %v749_v43 }
 0x120   : > { %904 = vst.msk [vmem:[%s1349_s4 + $0x2c] sm:$0xf] %vm892_vm2, %v1107_v35  ;;  %v753_v54 = vadd.f32 %v1459_v52, %v714_v38  ;;  %v754_v55 = vadd.f32 %v1459_v52, %v715_v39  ;;  %v1114_v59 = vpack.c.bf16 %v750_v46, %v750_v46  ;;  %v1115_v60 = vpack.c.bf16 %v751_v47, %v751_v47 }
 0x121   : > { %v707_v19 = vld [vmem:[#allocation2 + $0x70] sm:$0xff]  ;;  %902 = vst.msk [vmem:[%s1349_s4 + $0x24] sm:$0xf] %vm892_vm2, %v1105_v28  ;;  %v1116_v61 = vpack.c.bf16 %v752_v48, %v752_v48  ;;  %v755_v62 = vadd.f32 %v1459_v52, %v716_v44  ;;  %909 = vst.msk [vmem:[%s1349_s4 + $0x40] sm:$0xf] %vm892_vm2, %v1112_v51  ;;  %v756_v3 = vadd.f32 %v1459_v52, %v717_v49 }
 0x122   : > { %v705_v13 = vld [vmem:[#allocation2 + $0x60] sm:$0xff]  ;;  %v746_v30 = vadd.f32 %v1459_v52, %v707_v19  ;;  %v723_v0 = vld [vmem:[#allocation2 + $0xf0] sm:$0xff]  ;;  %910 = vst.msk [vmem:[%s1349_s4 + $0x44] sm:$0xf] %vm892_vm2, %v1113_v53  ;;  %v1117_v1 = vpack.c.bf16 %v753_v54, %v753_v54  ;;  %v1118_v2 = vpack.c.bf16 %v754_v55, %v754_v55  ;;  %v757_v4 = vadd.f32 %v1459_v52, %v718_v50 }
 0x123   : > { %v708_v20 = vld [vmem:[#allocation2 + $0x78] sm:$0xff]  ;;  %v744_v24 = vadd.f32 %v1459_v52, %v705_v13  ;;  %v721_v58 = vld [vmem:[#allocation2 + $0xe0] sm:$0xff]  ;;  %911 = vst.msk [vmem:[%s1349_s4 + $0x48] sm:$0xf] %vm892_vm2, %v1114_v59  ;;  %912 = vst.msk [vmem:[%s1349_s4 + $0x4c] sm:$0xf] %vm892_vm2, %v1115_v60  ;;  %v1119_v6 = vpack.c.bf16 %v755_v62, %v755_v62  ;;  %v758_v7 = vadd.f32 %v1459_v52, %v719_v56 }
 0x124   : > { %v706_v14 = vld [vmem:[#allocation2 + $0x68] sm:$0xff]  ;;  %v747_v37 = vadd.f32 %v1459_v52, %v708_v20  ;;  %v1110_v41 = vpack.c.bf16 %v746_v30, %v746_v30  ;;  %v724_v5 = vld [vmem:[#allocation2 + $0xf8] sm:$0xff]  ;;  %913 = vst.msk [vmem:[%s1349_s4 + $0x50] sm:$0xf] %vm892_vm2, %v1116_v61  ;;  %v759_v8 = vadd.f32 %v1459_v52, %v720_v57  ;;  %v760_v9 = vadd.f32 %v1459_v52, %v721_v58 }
 0x125   : > { %v745_v29 = vadd.f32 %v1459_v52, %v706_v14  ;;  %v1108_v36 = vpack.c.bf16 %v744_v24, %v744_v24  ;;  %v722_v63 = vld [vmem:[#allocation2 + $0xe8] sm:$0xff]  ;;  %914 = vst.msk [vmem:[%s1349_s4 + $0x54] sm:$0xf] %vm892_vm2, %v1117_v1  ;;  %915 = vst.msk [vmem:[%s1349_s4 + $0x58] sm:$0xf] %vm892_vm2, %v1118_v2  ;;  %v1120_v10 = vpack.c.bf16 %v756_v3, %v756_v3 }
 0x126   : > { %v1111_v45 = vpack.c.bf16 %v747_v37, %v747_v37  ;;  %907 = vst.msk [vmem:[%s1349_s4 + $0x38] sm:$0xf] %vm892_vm2, %v1110_v41  ;;  %v1121_v11 = vpack.c.bf16 %v757_v4, %v757_v4  ;;  %v761_v12 = vadd.f32 %v1459_v52, %v722_v63  ;;  %v762_v13 = vadd.f32 %v1459_v52, %v723_v0 }
 0x127   : > { %v1109_v40 = vpack.c.bf16 %v745_v29, %v745_v29  ;;  %905 = vst.msk [vmem:[%s1349_s4 + $0x30] sm:$0xf] %vm892_vm2, %v1108_v36  ;;  %916 = vst.msk [vmem:[%s1349_s4 + $0x5c] sm:$0xf] %vm892_vm2, %v1119_v6  ;;  %v1122_v14 = vpack.c.bf16 %v758_v7, %v758_v7  ;;  %v1123_v15 = vpack.c.bf16 %v759_v8, %v759_v8 }
 0x128   : > { %908 = vst.msk [vmem:[%s1349_s4 + $0x3c] sm:$0xf] %vm892_vm2, %v1111_v45  ;;  %v1124_v16 = vpack.c.bf16 %v760_v9, %v760_v9  ;;  %v763_v17 = vadd.f32 %v1459_v52, %v724_v5  ;;  %917 = vst.msk [vmem:[%s1349_s4 + $0x60] sm:$0xf] %vm892_vm2, %v1120_v10  ;;  %v1125_v18 = vpack.c.bf16 %v761_v12, %v761_v12 }
 0x129   : > { %906 = vst.msk [vmem:[%s1349_s4 + $0x34] sm:$0xf] %vm892_vm2, %v1109_v40  ;;  %918 = vst.msk [vmem:[%s1349_s4 + $0x64] sm:$0xf] %vm892_vm2, %v1121_v11  ;;  %v1126_v19 = vpack.c.bf16 %v762_v13, %v762_v13 }
 0x12a   : > { %919 = vst.msk [vmem:[%s1349_s4 + $0x68] sm:$0xf] %vm892_vm2, %v1122_v14  ;;  %920 = vst.msk [vmem:[%s1349_s4 + $0x6c] sm:$0xf] %vm892_vm2, %v1123_v15  ;;  %v1127_v20 = vpack.c.bf16 %v763_v17, %v763_v17 }
 0x12b   : > { %921 = vst.msk [vmem:[%s1349_s4 + $0x70] sm:$0xf] %vm892_vm2, %v1124_v16  ;;  %922 = vst.msk [vmem:[%s1349_s4 + $0x74] sm:$0xf] %vm892_vm2, %v1125_v18 }
 0x12c   : > { %923 = vst.msk [vmem:[%s1349_s4 + $0x78] sm:$0xf] %vm892_vm2, %v1126_v19  ;;  %924 = vst.msk [vmem:[%s1349_s4 + $0x7c] sm:$0xf] %vm892_vm2, %v1127_v20 }
 0x12d PF: > { %s13_s16 = sadd.s32 1, %s1284_s16   ;;  %s1576_s12 = smov %s1276_s14 }
 0x12e   : > { %p10_p9 = scmp.ge.s32.totalorder %s13_s16, 20   ;;  %s1577_s13 = smov %s1280_s15 }
 0x12f   : > { %s1578_s14 = smov %s1581_s17  ;;  %s1579_s15 = smov %s1585_s18 }
 0x130   :  { %12 = sbr.rel (!%p10_p9) target bundleno = 3 (0x3), region = 73 }

// kernel: clsout_forward.5
= control target key start
LH: loop header
LB: loop body
LE: loop exit
PB: predicated region body
PF: predicated region fallthrough
CT: control target
= control target key end

     0   :  { %v294_v50 = vlaneseq  ;;  %s812_s1 = inlined_call_operand.vmem [shape: bf16[256,256], index: 1, kind: input, shape index: {}]   ;;  %s813_s0 = inlined_call_operand.vmem [shape: bf16[16,256], index: 0, kind: input, shape index: {}]   ;;  %s814_s3 = inlined_call_operand.vmem [shape: bf16[256,128], index: 3, kind: input, shape index: {}]   ;;  %s815_s2 = inlined_call_operand.vmem [shape: f32[1,256], index: 2, kind: input, shape index: {}]   ;;  %s816_s4 = inlined_call_operand.vmem [shape: f32[1,16,128], index: 4, kind: output, shape index: {}]  }
   0x1   :  { %v561_v0 = vld [vmem:[%s812_s1 + $0x4] ss:$8 sps:$4 sm:$0xff]   ;;  %v563_v1 = vld [vmem:[%s812_s1] ss:$8 sps:$4 sm:$0xff]   ;;  %v564_v2 = vld [vmem:[%s812_s1 + $0x14] ss:$8 sps:$4 sm:$0xff]  }
   0x2   :  { %234 = vmatprep.subr.bf16.mxu0 %v561_v0  ;;  %v566_v3 = vld [vmem:[%s812_s1 + $0x10] ss:$8 sps:$4 sm:$0xff]   ;;  %v567_v4 = vld [vmem:[%s812_s1 + $0x24] ss:$8 sps:$4 sm:$0xff]   ;;  %v569_v5 = vld [vmem:[%s812_s1 + $0x20] ss:$8 sps:$4 sm:$0xff]  }
   0x3   :  { %235 = vmatpush1.bf16.msra.mxu0 %v563_v1  ;;  %v570_v6 = vld [vmem:[%s812_s1 + $0x34] ss:$8 sps:$4 sm:$0xff]   ;;  %v572_v7 = vld [vmem:[%s812_s1 + $0x30] ss:$8 sps:$4 sm:$0xff]   ;;  %v573_v8 = vld [vmem:[%s812_s1 + $0x44] ss:$8 sps:$4 sm:$0xff]  }
   0x4   :  { %236 = vmatprep.subr.bf16.mxu0 %v564_v2  ;;  %v575_v9 = vld [vmem:[%s812_s1 + $0x40] ss:$8 sps:$4 sm:$0xff]   ;;  %v576_v10 = vld [vmem:[%s812_s1 + $0x54] ss:$8 sps:$4 sm:$0xff]   ;;  %v578_v11 = vld [vmem:[%s812_s1 + $0x50] ss:$8 sps:$4 sm:$0xff]  }
   0x5   :  { %v579_v12 = vld [vmem:[%s812_s1 + $0x64] ss:$8 sps:$4 sm:$0xff]   ;;  %v581_v13 = vld [vmem:[%s812_s1 + $0x60] ss:$8 sps:$4 sm:$0xff]   ;;  %v582_v14 = vld [vmem:[%s812_s1 + $0x74] ss:$8 sps:$4 sm:$0xff]  }
   0x6   :  { %v611_v15 = vld [vmem:[%s813_s0 + $0x4] ss:$8 sps:$4 sm:$0xff]   ;;  %v584_v18 = vld [vmem:[%s812_s1 + $0x70] ss:$8 sps:$4 sm:$0xff]   ;;  %v587_v23 = vld [vmem:[%s812_s1 + $0x80] ss:$8 sps:$4 sm:$0xff]  }
   0x7   :  { %237 = vmatpush1.bf16.msra.mxu0 %v566_v3  ;;  %v612_v16 = vld [vmem:[%s814_s3 + $0x40] sm:$0xff]   ;;  %266 = vmatprep.mubr.bf16.mxu0 %v611_v15  ;;  %v614_v19 = vld [vmem:[%s814_s3 + $0x48] sm:$0xff]   ;;  %v616_v21 = vld [vmem:[%s814_s3 + $0x50] sm:$0xff]   ;;  %v295_v51 = vshrl.u32 %v294_v50, 7 }
   0x8   :  { %238 = vmatprep.subr.bf16.mxu0 %v567_v4  ;;  %v613_v17 = vld [vmem:[%s814_s3] sm:$0xff]   ;;  %539 = vmatprep.subr.bf16.mxu1 %v612_v16  ;;  %v615_v20 = vld [vmem:[%s814_s3 + $0x8] sm:$0xff]   ;;  %v588_v24 = vld [vmem:[%s812_s1 + $0x94] ss:$8 sps:$4 sm:$0xff]  }
   0x9   :  { %540 = vmatpush3.bf16.msra.mxu1 %v613_v17  ;;  %v585_v22 = vld [vmem:[%s812_s1 + $0x84] ss:$8 sps:$4 sm:$0xff]   ;;  %v617_v25 = vld [vmem:[%s814_s3 + $0x10] sm:$0xff]   ;;  %v618_v26 = vld [vmem:[%s814_s3 + $0x58] sm:$0xff]   ;;  %v296_v52 = vsub.s32 0, %v295_v51  ;;  %v300_v54 = vsub.s32 1, %v295_v51 }
   0xa   :  { %541 = vmatprep.subr.bf16.mxu1 %v614_v19  ;;  %v619_v27 = vld [vmem:[%s814_s3 + $0x18] sm:$0xff]   ;;  %v620_v29 = vld [vmem:[%s814_s3 + $0x60] sm:$0xff]   ;;  %v622_v33 = vld [vmem:[%s814_s3 + $0x68] sm:$0xff]  }
   0xb   :  { %239 = vmatpush1.bf16.msra.mxu0 %v569_v5  ;;  %v590_v28 = vld [vmem:[%s812_s1 + $0x90] ss:$8 sps:$4 sm:$0xff]   ;;  %v591_v30 = vld [vmem:[%s812_s1 + $0xa4] ss:$8 sps:$4 sm:$0xff]   ;;  %v593_v32 = vld [vmem:[%s812_s1 + $0xa0] ss:$8 sps:$4 sm:$0xff]  }
   0xc   :  { %240 = vmatprep.subr.bf16.mxu0 %v570_v6  ;;  %v621_v31 = vld [vmem:[%s814_s3 + $0x20] sm:$0xff]   ;;  %v594_v34 = vld [vmem:[%s812_s1 + $0xb4] ss:$8 sps:$4 sm:$0xff]   ;;  %v596_v35 = vld [vmem:[%s812_s1 + $0xb0] ss:$8 sps:$4 sm:$0xff]  }
   0xd   :  { %542 = vmatpush3.bf16.msra.mxu1 %v615_v20  ;;  %v597_v36 = vld [vmem:[%s812_s1 + $0xc4] ss:$8 sps:$4 sm:$0xff]   ;;  %v599_v37 = vld [vmem:[%s812_s1 + $0xc0] ss:$8 sps:$4 sm:$0xff]   ;;  %v600_v38 = vld [vmem:[%s812_s1 + $0xd4] ss:$8 sps:$4 sm:$0xff]  }
   0xe   :  { %543 = vmatprep.subr.bf16.mxu1 %v616_v21  ;;  %v602_v39 = vld [vmem:[%s812_s1 + $0xd0] ss:$8 sps:$4 sm:$0xff]   ;;  %v603_v40 = vld [vmem:[%s812_s1 + $0xe4] ss:$8 sps:$4 sm:$0xff]   ;;  %v605_v41 = vld [vmem:[%s812_s1 + $0xe0] ss:$8 sps:$4 sm:$0xff]  }
   0xf   :  { %241 = vmatpush1.bf16.msra.mxu0 %v572_v7  ;;  %v606_v42 = vld [vmem:[%s812_s1 + $0xf4] ss:$8 sps:$4 sm:$0xff]   ;;  %v608_v43 = vld [vmem:[%s812_s1 + $0xf0] ss:$8 sps:$4 sm:$0xff]   ;;  %v609_v44 = vld [vmem:[%s813_s0] ss:$8 sps:$4 sm:$0xff]  }
  0x10   :  { %242 = vmatprep.subr.bf16.mxu0 %v573_v8  ;;  %v623_v45 = vld [vmem:[%s814_s3 + $0x28] sm:$0xff]   ;;  %v624_v46 = vld [vmem:[%s814_s3 + $0x70] sm:$0xff]   ;;  %v626_v48 = vld [vmem:[%s814_s3 + $0x78] sm:$0xff]  }
  0x11   :  { %544 = vmatpush3.bf16.msra.mxu1 %v617_v25  ;;  %v625_v47 = vld [vmem:[%s814_s3 + $0x30] sm:$0xff]   ;;  %v627_v49 = vld [vmem:[%s814_s3 + $0x38] sm:$0xff]   ;;  %v292_v53 = vld [vmem:[%s815_s2] sm:$0x3] }
  0x12   :  { %545 = vmatprep.subr.bf16.mxu1 %v618_v26  ;;  %v297_v55 = vrot.slane %v292_v53, %v296_v52  ;;  %v301_v56 = vrot.slane %v292_v53, %v300_v54 }
  0x13   :  { %243 = vmatpush1.bf16.msra.mxu0 %v575_v9 }
  0x14   :  { %244 = vmatprep.subr.bf16.mxu0 %v576_v10 }
  0x15   :  { %546 = vmatpush3.bf16.msra.mxu1 %v619_v27 }
  0x16   :  { %547 = vmatprep.subr.bf16.mxu1 %v620_v29 }
  0x17   :  { %245 = vmatpush1.bf16.msra.mxu0 %v578_v11 }
  0x18   :  { %246 = vmatprep.subr.bf16.mxu0 %v579_v12 }
  0x19   :  { %548 = vmatpush3.bf16.msra.mxu1 %v621_v31 }
  0x1a   :  { %549 = vmatprep.subr.bf16.mxu1 %v622_v33 }
  0x1b   :  { %247 = vmatpush1.bf16.msra.mxu0 %v581_v13 }
  0x1c   :  { %248 = vmatprep.subr.bf16.mxu0 %v582_v14 }
  0x1d   :  { %550 = vmatpush3.bf16.msra.mxu1 %v623_v45 }
  0x1e   :  { %551 = vmatprep.subr.bf16.mxu1 %v624_v46 }
  0x1f   :  { %249 = vmatpush1.bf16.msra.mxu0 %v584_v18 }
  0x20   :  { %250 = vmatprep.subr.bf16.mxu0 %v585_v22 }
  0x21   :  { %552 = vmatpush3.bf16.msra.mxu1 %v625_v47 }
  0x22   :  { %553 = vmatprep.subr.bf16.mxu1 %v626_v48 }
  0x23   :  { %251 = vmatpush1.bf16.msra.mxu0 %v587_v23 }
  0x24   :  { %252 = vmatprep.subr.bf16.mxu0 %v588_v24 }
  0x25   :  { %554 = vmatpush3.bf16.msra.mxu1 %v627_v49 }
  0x27   :  { %253 = vmatpush1.bf16.msra.mxu0 %v590_v28 }
  0x28   :  { %254 = vmatprep.subr.bf16.mxu0 %v591_v30 }
  0x2b   :  { %255 = vmatpush1.bf16.msra.mxu0 %v593_v32 }
  0x2c   :  { %256 = vmatprep.subr.bf16.mxu0 %v594_v34 }
  0x2f   :  { %257 = vmatpush1.bf16.msra.mxu0 %v596_v35 }
  0x30   :  { %258 = vmatprep.subr.bf16.mxu0 %v597_v36 }
  0x33   :  { %259 = vmatpush1.bf16.msra.mxu0 %v599_v37 }
  0x34   :  { %260 = vmatprep.subr.bf16.mxu0 %v600_v38 }
  0x37   :  { %261 = vmatpush1.bf16.msra.mxu0 %v602_v39 }
  0x38   :  { %262 = vmatprep.subr.bf16.mxu0 %v603_v40 }
  0x3b   :  { %263 = vmatpush1.bf16.msra.mxu0 %v605_v41 }
  0x3c   :  { %264 = vmatprep.subr.bf16.mxu0 %v606_v42 }
  0x3f   :  { %265 = vmatpush1.bf16.msra.mxu0 %v608_v43 }
  0x42   :  { %267 = vmatmul.mubr.bf16.vlgmr.msra.gmra.mrb[0].mxu0 %v609_v44 }
 0x115   :  { %v268_v57 = vpop.f32.mrb[0].mxu0 }
 0x116   :  { %v304_v58 = vadd.f32 %v297_v55, %v268_v57  ;;  %v270_v59 = vpop.f32.mrb[1].mxu0 }
 0x117   :  { %v305_v60 = vadd.f32 %v301_v56, %v270_v59  ;;  %v272_v61 = vpop.f32.mrb[2].mxu0 }
 0x118   :  { %v306_v62 = vadd.f32 %v297_v55, %v272_v61  ;;  %v274_v63 = vpop.f32.mrb[3].mxu0  ;;  %v308_v1 = vmax.f32 %v304_v58, 0.0 }
 0x119   :  { %v307_v0 = vadd.f32 %v301_v56, %v274_v63  ;;  %v309_v3 = vmax.f32 %v305_v60, 0.0 }
 0x11a   :  { %v310_v2 = vmax.f32 %v306_v62, 0.0 }
 0x11b   :  { %v311_v4 = vmax.f32 %v307_v0, 0.0 }
 0x11c   :  { %v312_v5 = vpack.c.bf16 %v310_v2, %v308_v1 }
 0x11d   :  { %v313_v6 = vpack.c.bf16 %v311_v4, %v309_v3 }
 0x11f   :  { %474 = vmatprep.mubr.bf16.mxu1 %v313_v6 }
 0x120   :  { %475 = vmatmul.mubr.bf16.vlgmr.msra.gmra.mrb[0].mxu1 %v312_v5 }
 0x1f3   :  { %v555_v7 = vpop.f32.mrb[0].mxu1 }
 0x1f4   :  { %v556_v8 = vpop.f32.mrb[1].mxu1 }
 0x1f5   :  { %v557_v9 = vadd.f32 %v556_v8, %v555_v7  ;;  %v558_v10 = vpop.f32.mrb[2].mxu1 }
 0x1f6   :  { %v559_v11 = vpop.f32.mrb[3].mxu1 }
 0x1f7   :  { %483 = vst [vmem:[%s816_s4] sm:$0xff] %v557_v9  ;;  %v560_v12 = vadd.f32 %v559_v11, %v558_v10 }
 0x1f9   :  { %484 = vst [vmem:[%s816_s4 + $0x8] sm:$0xff] %v560_v12 }

// kernel: clsout_forward.4
= control target key start
LH: loop header
LB: loop body
LE: loop exit
PB: predicated region body
PF: predicated region fallthrough
CT: control target
= control target key end

     0   :  { %s14268_s1 = inlined_call_operand.vmem [shape: bf16[8192,256], index: 1, kind: input, shape index: {}]   ;;  %s14269_s0 = inlined_call_operand.vmem [shape: bf16[16,8192], index: 0, kind: input, shape index: {}]   ;;  %s14270_s2 = inlined_call_operand.vmem [shape: f32[1,256], index: 2, kind: input, shape index: {}]   ;;  %s14271_s3 = inlined_call_operand.vmem [shape: bf16[16,256], index: 3, kind: output, shape index: {}]  }
   0x1   :  { %v9199_v0 = vld [vmem:[%s14268_s1 + $0x4] ss:$8 sps:$4 sm:$0xff]   ;;  %v9203_v2 = vld [vmem:[%s14268_s1] ss:$8 sps:$4 sm:$0xff]   ;;  %v9205_v4 = vld [vmem:[%s14268_s1 + $0x14] ss:$8 sps:$4 sm:$0xff]  }
   0x2   :  { %v9201_v1 = vld [vmem:[%s14268_s1 + $0x1004] ss:$8 sps:$4 sm:$0xff]   ;;  %6554 = vmatprep.subr.bf16.mxu1 %v9199_v0  ;;  %v9204_v3 = vld [vmem:[%s14268_s1 + $0x1000] ss:$8 sps:$4 sm:$0xff]   ;;  %v9207_v5 = vld [vmem:[%s14268_s1 + $0x1014] ss:$8 sps:$4 sm:$0xff]  }
   0x3   :  { %7242 = vmatprep.subr.bf16.mxu0 %v9201_v1  ;;  %6555 = vmatpush1.bf16.msra.mxu1 %v9203_v2  ;;  %v9209_v6 = vld [vmem:[%s14268_s1 + $0x10] ss:$8 sps:$4 sm:$0xff]   ;;  %v9211_v8 = vld [vmem:[%s14268_s1 + $0x24] ss:$8 sps:$4 sm:$0xff]   ;;  %v9215_v10 = vld [vmem:[%s14268_s1 + $0x20] ss:$8 sps:$4 sm:$0xff]  }
   0x4   :  { %7243 = vmatpush1.bf16.msra.mxu0 %v9204_v3  ;;  %6556 = vmatprep.subr.bf16.mxu1 %v9205_v4  ;;  %v9210_v7 = vld [vmem:[%s14268_s1 + $0x1010] ss:$8 sps:$4 sm:$0xff]   ;;  %v9213_v9 = vld [vmem:[%s14268_s1 + $0x1024] ss:$8 sps:$4 sm:$0xff]   ;;  %v9216_v11 = vld [vmem:[%s14268_s1 + $0x1020] ss:$8 sps:$4 sm:$0xff]  }
   0x5   :  { %7244 = vmatprep.subr.bf16.mxu0 %v9207_v5  ;;  %v9217_v12 = vld [vmem:[%s14268_s1 + $0x34] ss:$8 sps:$4 sm:$0xff]   ;;  %v9221_v14 = vld [vmem:[%s14268_s1 + $0x30] ss:$8 sps:$4 sm:$0xff]   ;;  %v9223_v16 = vld [vmem:[%s14268_s1 + $0x44] ss:$8 sps:$4 sm:$0xff]  }
   0x6   :  { %v9219_v13 = vld [vmem:[%s14268_s1 + $0x1034] ss:$8 sps:$4 sm:$0xff]   ;;  %v9222_v15 = vld [vmem:[%s14268_s1 + $0x1030] ss:$8 sps:$4 sm:$0xff]   ;;  %v9225_v17 = vld [vmem:[%s14268_s1 + $0x1044] ss:$8 sps:$4 sm:$0xff]  }
   0x7   :  { %6557 = vmatpush1.bf16.msra.mxu1 %v9209_v6  ;;  %v9227_v18 = vld [vmem:[%s14268_s1 + $0x40] ss:$8 sps:$4 sm:$0xff]   ;;  %v9229_v20 = vld [vmem:[%s14268_s1 + $0x54] ss:$8 sps:$4 sm:$0xff]   ;;  %v9233_v22 = vld [vmem:[%s14268_s1 + $0x50] ss:$8 sps:$4 sm:$0xff]  }
   0x8   :  { %7245 = vmatpush1.bf16.msra.mxu0 %v9210_v7  ;;  %6558 = vmatprep.subr.bf16.mxu1 %v9211_v8  ;;  %v9228_v19 = vld [vmem:[%s14268_s1 + $0x1040] ss:$8 sps:$4 sm:$0xff]   ;;  %v9231_v21 = vld [vmem:[%s14268_s1 + $0x1054] ss:$8 sps:$4 sm:$0xff]   ;;  %v9234_v23 = vld [vmem:[%s14268_s1 + $0x1050] ss:$8 sps:$4 sm:$0xff]  }
   0x9   :  { %7246 = vmatprep.subr.bf16.mxu0 %v9213_v9  ;;  %v9235_v24 = vld [vmem:[%s14268_s1 + $0x64] ss:$8 sps:$4 sm:$0xff]   ;;  %v9239_v26 = vld [vmem:[%s14268_s1 + $0x60] ss:$8 sps:$4 sm:$0xff]   ;;  %v9241_v28 = vld [vmem:[%s14268_s1 + $0x74] ss:$8 sps:$4 sm:$0xff]  }
   0xa   :  { %v9237_v25 = vld [vmem:[%s14268_s1 + $0x1064] ss:$8 sps:$4 sm:$0xff]   ;;  %v9240_v27 = vld [vmem:[%s14268_s1 + $0x1060] ss:$8 sps:$4 sm:$0xff]   ;;  %v9243_v29 = vld [vmem:[%s14268_s1 + $0x1074] ss:$8 sps:$4 sm:$0xff]  }
   0xb   :  { %6559 = vmatpush1.bf16.msra.mxu1 %v9215_v10  ;;  %v9245_v30 = vld [vmem:[%s14268_s1 + $0x70] ss:$8 sps:$4 sm:$0xff]   ;;  %v9247_v32 = vld [vmem:[%s14268_s1 + $0x84] ss:$8 sps:$4 sm:$0xff]   ;;  %v9251_v34 = vld [vmem:[%s14268_s1 + $0x80] ss:$8 sps:$4 sm:$0xff]  }
   0xc   :  { %7247 = vmatpush1.bf16.msra.mxu0 %v9216_v11  ;;  %6560 = vmatprep.subr.bf16.mxu1 %v9217_v12  ;;  %v9246_v31 = vld [vmem:[%s14268_s1 + $0x1070] ss:$8 sps:$4 sm:$0xff]   ;;  %v9249_v33 = vld [vmem:[%s14268_s1 + $0x1084] ss:$8 sps:$4 sm:$0xff]   ;;  %v9252_v35 = vld [vmem:[%s14268_s1 + $0x1080] ss:$8 sps:$4 sm:$0xff]  }
   0xd   :  { %7248 = vmatprep.subr.bf16.mxu0 %v9219_v13  ;;  %v9253_v36 = vld [vmem:[%s14268_s1 + $0x94] ss:$8 sps:$4 sm:$0xff]   ;;  %v9257_v38 = vld [vmem:[%s14268_s1 + $0x90] ss:$8 sps:$4 sm:$0xff]   ;;  %v9259_v40 = vld [vmem:[%s14268_s1 + $0xa4] ss:$8 sps:$4 sm:$0xff]  }
   0xe   :  { %v9255_v37 = vld [vmem:[%s14268_s1 + $0x1094] ss:$8 sps:$4 sm:$0xff]   ;;  %v9258_v39 = vld [vmem:[%s14268_s1 + $0x1090] ss:$8 sps:$4 sm:$0xff]   ;;  %v9261_v41 = vld [vmem:[%s14268_s1 + $0x10a4] ss:$8 sps:$4 sm:$0xff]  }
   0xf   :  { %6561 = vmatpush1.bf16.msra.mxu1 %v9221_v14  ;;  %v9263_v42 = vld [vmem:[%s14268_s1 + $0xa0] ss:$8 sps:$4 sm:$0xff]   ;;  %v9265_v44 = vld [vmem:[%s14268_s1 + $0xb4] ss:$8 sps:$4 sm:$0xff]   ;;  %v9269_v46 = vld [vmem:[%s14268_s1 + $0xb0] ss:$8 sps:$4 sm:$0xff]  }
  0x10   :  { %7249 = vmatpush1.bf16.msra.mxu0 %v9222_v15  ;;  %6562 = vmatprep.subr.bf16.mxu1 %v9223_v16  ;;  %v9264_v43 = vld [vmem:[%s14268_s1 + $0x10a0] ss:$8 sps:$4 sm:$0xff]   ;;  %v9267_v45 = vld [vmem:[%s14268_s1 + $0x10b4] ss:$8 sps:$4 sm:$0xff]   ;;  %v9270_v47 = vld [vmem:[%s14268_s1 + $0x10b0] ss:$8 sps:$4 sm:$0xff]  }
  0x11   :  { %7250 = vmatprep.subr.bf16.mxu0 %v9225_v17  ;;  %v26_v48 = vld [vmem:[%s14269_s0] sm:$0xff]  ;;  %v9277_v58 = vld [vmem:[%s14268_s1 + $0xd4] ss:$8 sps:$4 sm:$0xff]   ;;  %v9281_v60 = vld [vmem:[%s14268_s1 + $0xd0] ss:$8 sps:$4 sm:$0xff]  }
  0x12   :  { %v58_v49 = vld [vmem:[%s14269_s0 + $0x100] sm:$0xff]  ;;  %v9279_v59 = vld [vmem:[%s14268_s1 + $0x10d4] ss:$8 sps:$4 sm:$0xff]   ;;  %v9282_v61 = vld [vmem:[%s14268_s1 + $0x10d0] ss:$8 sps:$4 sm:$0xff]  }
  0x13   :  { %6563 = vmatpush1.bf16.msra.mxu1 %v9227_v18  ;;  %v9271_v50 = vld [vmem:[%s14268_s1 + $0xc4] ss:$8 sps:$4 sm:$0xff]   ;;  %v7984_v52 = vcombine.high %v26_v48, %v58_v49  ;;  %v9275_v56 = vld [vmem:[%s14268_s1 + $0xc0] ss:$8 sps:$4 sm:$0xff]   ;;  %v9289_v2 = vld [vmem:[%s14268_s1 + $0xf4] ss:$8 sps:$4 sm:$0xff]   ;;  %v7983_v8 = vcombine.low %v26_v48, %v58_v49 }
  0x14   :  { %7251 = vmatpush1.bf16.msra.mxu0 %v9228_v19  ;;  %6564 = vmatprep.subr.bf16.mxu1 %v9229_v20  ;;  %v9273_v51 = vld [vmem:[%s14268_s1 + $0x10c4] ss:$8 sps:$4 sm:$0xff]   ;;  %v9276_v57 = vld [vmem:[%s14268_s1 + $0x10c0] ss:$8 sps:$4 sm:$0xff]   ;;  %v9291_v3 = vld [vmem:[%s14268_s1 + $0x10f4] ss:$8 sps:$4 sm:$0xff]  }
  0x15   :  { %7252 = vmatprep.subr.bf16.mxu0 %v9231_v21  ;;  %v42_v53 = vld [vmem:[%s14269_s0 + $0x80] sm:$0xff]  ;;  %6586 = vmatprep.mubr.bf16.mxu1 %v7984_v52  ;;  %v9293_v4 = vld [vmem:[%s14268_s1 + $0xf0] ss:$8 sps:$4 sm:$0xff]   ;;  %v9303_v12 = vld [vmem:[%s14268_s1 + $0x114] ss:$8 sps:$4 sm:$0xff]  }
  0x16   :  { %v74_v54 = vld [vmem:[%s14269_s0 + $0x180] sm:$0xff]  ;;  %v9294_v5 = vld [vmem:[%s14268_s1 + $0x10f0] ss:$8 sps:$4 sm:$0xff]   ;;  %v9306_v13 = vld [vmem:[%s14268_s1 + $0x1114] ss:$8 sps:$4 sm:$0xff]  }
  0x17   :  { %6565 = vmatpush1.bf16.msra.mxu1 %v9233_v22  ;;  %v8016_v55 = vcombine.high %v42_v53, %v74_v54  ;;  %v9283_v62 = vld [vmem:[%s14268_s1 + $0xe4] ss:$8 sps:$4 sm:$0xff]   ;;  %v9287_v0 = vld [vmem:[%s14268_s1 + $0xe0] ss:$8 sps:$4 sm:$0xff]   ;;  %v8015_v10 = vcombine.low %v42_v53, %v74_v54  ;;  %v9301_v14 = vld [vmem:[%s14268_s1 + $0x110] ss:$8 sps:$4 sm:$0xff]  }
  0x18   :  { %7253 = vmatpush1.bf16.msra.mxu0 %v9234_v23  ;;  %6566 = vmatprep.subr.bf16.mxu1 %v9235_v24  ;;  %v9285_v63 = vld [vmem:[%s14268_s1 + $0x10e4] ss:$8 sps:$4 sm:$0xff]   ;;  %v9288_v1 = vld [vmem:[%s14268_s1 + $0x10e0] ss:$8 sps:$4 sm:$0xff]   ;;  %v9304_v15 = vld [vmem:[%s14268_s1 + $0x1110] ss:$8 sps:$4 sm:$0xff]  }
  0x19   :  { %7254 = vmatprep.subr.bf16.mxu0 %v9237_v25  ;;  %7274 = vmatprep.mubr.bf16.mxu0 %v8016_v55  ;;  %v9297_v6 = vld [vmem:[%s14268_s1 + $0x104] ss:$8 sps:$4 sm:$0xff]   ;;  %v9295_v9 = vld [vmem:[%s14268_s1 + $0x100] ss:$8 sps:$4 sm:$0xff]   ;;  %v9315_v20 = vld [vmem:[%s14268_s1 + $0x134] ss:$8 sps:$4 sm:$0xff]  }
  0x1a   :  { %v9300_v7 = vld [vmem:[%s14268_s1 + $0x1104] ss:$8 sps:$4 sm:$0xff]   ;;  %v9298_v11 = vld [vmem:[%s14268_s1 + $0x1100] ss:$8 sps:$4 sm:$0xff]   ;;  %v9318_v21 = vld [vmem:[%s14268_s1 + $0x1134] ss:$8 sps:$4 sm:$0xff]  }
  0x1b   :  { %6567 = vmatpush1.bf16.msra.mxu1 %v9239_v26  ;;  %v9309_v16 = vld [vmem:[%s14268_s1 + $0x124] ss:$8 sps:$4 sm:$0xff]   ;;  %v9307_v18 = vld [vmem:[%s14268_s1 + $0x120] ss:$8 sps:$4 sm:$0xff]   ;;  %v9313_v22 = vld [vmem:[%s14268_s1 + $0x130] ss:$8 sps:$4 sm:$0xff]  }
  0x1c   :  { %7255 = vmatpush1.bf16.msra.mxu0 %v9240_v27  ;;  %6568 = vmatprep.subr.bf16.mxu1 %v9241_v28  ;;  %v9312_v17 = vld [vmem:[%s14268_s1 + $0x1124] ss:$8 sps:$4 sm:$0xff]   ;;  %v9310_v19 = vld [vmem:[%s14268_s1 + $0x1120] ss:$8 sps:$4 sm:$0xff]   ;;  %v9316_v23 = vld [vmem:[%s14268_s1 + $0x1130] ss:$8 sps:$4 sm:$0xff]  }
  0x1d   :  { %7256 = vmatprep.subr.bf16.mxu0 %v9243_v29  ;;  %v9321_v24 = vld [vmem:[%s14268_s1 + $0x144] ss:$8 sps:$4 sm:$0xff]   ;;  %v9319_v26 = vld [vmem:[%s14268_s1 + $0x140] ss:$8 sps:$4 sm:$0xff]   ;;  %v9327_v28 = vld [vmem:[%s14268_s1 + $0x154] ss:$8 sps:$4 sm:$0xff]  }
  0x1e   :  { %v9324_v25 = vld [vmem:[%s14268_s1 + $0x1144] ss:$8 sps:$4 sm:$0xff]   ;;  %v9322_v27 = vld [vmem:[%s14268_s1 + $0x1140] ss:$8 sps:$4 sm:$0xff]   ;;  %v9330_v29 = vld [vmem:[%s14268_s1 + $0x1154] ss:$8 sps:$4 sm:$0xff]  }
  0x1f   :  { %6569 = vmatpush1.bf16.msra.mxu1 %v9245_v30  ;;  %v9325_v30 = vld [vmem:[%s14268_s1 + $0x150] ss:$8 sps:$4 sm:$0xff]   ;;  %v9343_v48 = vld [vmem:[%s14268_s1 + $0x180] ss:$8 sps:$4 sm:$0xff]   ;;  %v9357_v54 = vld [vmem:[%s14268_s1 + $0x1a4] ss:$8 sps:$4 sm:$0xff]  }
  0x20   :  { %7257 = vmatpush1.bf16.msra.mxu0 %v9246_v31  ;;  %6570 = vmatprep.subr.bf16.mxu1 %v9247_v32  ;;  %v9328_v31 = vld [vmem:[%s14268_s1 + $0x1150] ss:$8 sps:$4 sm:$0xff]   ;;  %v9333_v32 = vld [vmem:[%s14268_s1 + $0x164] ss:$8 sps:$4 sm:$0xff]   ;;  %v9346_v49 = vld [vmem:[%s14268_s1 + $0x1180] ss:$8 sps:$4 sm:$0xff]  }
  0x21   :  { %7258 = vmatprep.subr.bf16.mxu0 %v9249_v33  ;;  %v9336_v33 = vld [vmem:[%s14268_s1 + $0x1164] ss:$8 sps:$4 sm:$0xff]   ;;  %v9349_v52 = vld [vmem:[%s14268_s1 + $0x190] ss:$8 sps:$4 sm:$0xff]  }
  0x22   :  { %v9352_v53 = vld [vmem:[%s14268_s1 + $0x1190] ss:$8 sps:$4 sm:$0xff]   ;;  %v9360_v55 = vld [vmem:[%s14268_s1 + $0x11a4] ss:$8 sps:$4 sm:$0xff]  }
  0x23   :  { %6571 = vmatpush1.bf16.msra.mxu1 %v9251_v34  ;;  %v9331_v34 = vld [vmem:[%s14268_s1 + $0x160] ss:$8 sps:$4 sm:$0xff]  }
  0x24   :  { %7259 = vmatpush1.bf16.msra.mxu0 %v9252_v35  ;;  %6572 = vmatprep.subr.bf16.mxu1 %v9253_v36  ;;  %v9334_v35 = vld [vmem:[%s14268_s1 + $0x1160] ss:$8 sps:$4 sm:$0xff]  }
  0x25   :  { %7260 = vmatprep.subr.bf16.mxu0 %v9255_v37  ;;  %v11046_v36 = vld [vmem:[%s14269_s0 + $0x8] sm:$0xff] }
  0x26   :  { %v11051_v37 = vld [vmem:[%s14269_s0 + $0x108] sm:$0xff] }
  0x27   :  { %6573 = vmatpush1.bf16.msra.mxu1 %v9257_v38  ;;  %v9339_v38 = vld [vmem:[%s14268_s1 + $0x174] ss:$8 sps:$4 sm:$0xff]  }
  0x28   :  { %7261 = vmatpush1.bf16.msra.mxu0 %v9258_v39  ;;  %6574 = vmatprep.subr.bf16.mxu1 %v9259_v40  ;;  %v9342_v39 = vld [vmem:[%s14268_s1 + $0x1174] ss:$8 sps:$4 sm:$0xff]   ;;  %v7986_v40 = vcombine.high %v11046_v36, %v11051_v37 }
  0x29   :  { %7262 = vmatprep.subr.bf16.mxu0 %v9261_v41  ;;  %v11064_v41 = vld [vmem:[%s14269_s0 + $0x88] sm:$0xff] }
  0x2b   :  { %6575 = vmatpush1.bf16.msra.mxu1 %v9263_v42  ;;  %v11069_v42 = vld [vmem:[%s14269_s0 + $0x188] sm:$0xff] }
  0x2c   :  { %7263 = vmatpush1.bf16.msra.mxu0 %v9264_v43  ;;  %6576 = vmatprep.subr.bf16.mxu1 %v9265_v44  ;;  %v8018_v43 = vcombine.high %v11064_v41, %v11069_v42  ;;  %v9337_v44 = vld [vmem:[%s14268_s1 + $0x170] ss:$8 sps:$4 sm:$0xff]  }
  0x2d   :  { %7264 = vmatprep.subr.bf16.mxu0 %v9267_v45  ;;  %v9340_v45 = vld [vmem:[%s14268_s1 + $0x1170] ss:$8 sps:$4 sm:$0xff]  }
  0x2f   :  { %6577 = vmatpush1.bf16.msra.mxu1 %v9269_v46  ;;  %v9345_v46 = vld [vmem:[%s14268_s1 + $0x184] ss:$8 sps:$4 sm:$0xff]  }
  0x30   :  { %7265 = vmatpush1.bf16.msra.mxu0 %v9270_v47  ;;  %6578 = vmatprep.subr.bf16.mxu1 %v9271_v50  ;;  %v9348_v47 = vld [vmem:[%s14268_s1 + $0x1184] ss:$8 sps:$4 sm:$0xff]   ;;  %v9351_v50 = vld [vmem:[%s14268_s1 + $0x194] ss:$8 sps:$4 sm:$0xff]  }
  0x31   :  { %7266 = vmatprep.subr.bf16.mxu0 %v9273_v51  ;;  %v9354_v51 = vld [vmem:[%s14268_s1 + $0x1194] ss:$8 sps:$4 sm:$0xff]  }
  0x33   :  { %6579 = vmatpush1.bf16.msra.mxu1 %v9275_v56  ;;  %v9355_v56 = vld [vmem:[%s14268_s1 + $0x1a0] ss:$8 sps:$4 sm:$0xff]  }
  0x34   :  { %7267 = vmatpush1.bf16.msra.mxu0 %v9276_v57  ;;  %6580 = vmatprep.subr.bf16.mxu1 %v9277_v58  ;;  %v9358_v57 = vld [vmem:[%s14268_s1 + $0x11a0] ss:$8 sps:$4 sm:$0xff]   ;;  %v9363_v58 = vld [vmem:[%s14268_s1 + $0x1b4] ss:$8 sps:$4 sm:$0xff]  }
  0x35   :  { %7268 = vmatprep.subr.bf16.mxu0 %v9279_v59  ;;  %v9366_v59 = vld [vmem:[%s14268_s1 + $0x11b4] ss:$8 sps:$4 sm:$0xff]  }
  0x37   :  { %6581 = vmatpush1.bf16.msra.mxu1 %v9281_v60  ;;  %v9361_v60 = vld [vmem:[%s14268_s1 + $0x1b0] ss:$8 sps:$4 sm:$0xff]  }
  0x38   :  { %7269 = vmatpush1.bf16.msra.mxu0 %v9282_v61  ;;  %6582 = vmatprep.subr.bf16.mxu1 %v9283_v62  ;;  %v9364_v61 = vld [vmem:[%s14268_s1 + $0x11b0] ss:$8 sps:$4 sm:$0xff]   ;;  %v9369_v62 = vld [vmem:[%s14268_s1 + $0x1c4] ss:$8 sps:$4 sm:$0xff]  }
  0x39   :  { %7270 = vmatprep.subr.bf16.mxu0 %v9285_v63  ;;  %v9372_v63 = vld [vmem:[%s14268_s1 + $0x11c4] ss:$8 sps:$4 sm:$0xff]  }
  0x3b   :  { %6583 = vmatpush1.bf16.msra.mxu1 %v9287_v0  ;;  %v9367_v0 = vld [vmem:[%s14268_s1 + $0x1c0] ss:$8 sps:$4 sm:$0xff]  }
  0x3c   :  { %7271 = vmatpush1.bf16.msra.mxu0 %v9288_v1  ;;  %6584 = vmatprep.subr.bf16.mxu1 %v9289_v2  ;;  %v9370_v1 = vld [vmem:[%s14268_s1 + $0x11c0] ss:$8 sps:$4 sm:$0xff]   ;;  %v9375_v2 = vld [vmem:[%s14268_s1 + $0x1d4] ss:$8 sps:$4 sm:$0xff]  }
  0x3d   :  { %7272 = vmatprep.subr.bf16.mxu0 %v9291_v3  ;;  %v9378_v3 = vld [vmem:[%s14268_s1 + $0x11d4] ss:$8 sps:$4 sm:$0xff]  }
  0x3f   :  { %6585 = vmatpush1.bf16.msra.mxu1 %v9293_v4  ;;  %v9373_v4 = vld [vmem:[%s14268_s1 + $0x1d0] ss:$8 sps:$4 sm:$0xff]  }
  0x40   :  { %7273 = vmatpush1.bf16.msra.mxu0 %v9294_v5  ;;  %6597 = vmatprep.subr.bf16.mxu1 %v9297_v6  ;;  %v9376_v5 = vld [vmem:[%s14268_s1 + $0x11d0] ss:$8 sps:$4 sm:$0xff]   ;;  %v9381_v6 = vld [vmem:[%s14268_s1 + $0x1e4] ss:$8 sps:$4 sm:$0xff]  }
  0x41   :  { %7285 = vmatprep.subr.bf16.mxu0 %v9300_v7  ;;  %v9384_v7 = vld [vmem:[%s14268_s1 + $0x11e4] ss:$8 sps:$4 sm:$0xff]  }
  0x42   :  { %6587 = vmatmul.mubr.bf16.vlgmr.msra.gmra.mrb[0].mxu1 %v7983_v8  ;;  %v9379_v8 = vld [vmem:[%s14268_s1 + $0x1e0] ss:$8 sps:$4 sm:$0xff]  }
  0x43   :  { %7275 = vmatmul.mubr.bf16.vlgmr.msra.gmra.mrb[0].mxu0 %v8015_v10  ;;  %6598 = vmatpush1.bf16.msra.mxu1 %v9295_v9  ;;  %v9382_v9 = vld [vmem:[%s14268_s1 + $0x11e0] ss:$8 sps:$4 sm:$0xff]   ;;  %v9387_v10 = vld [vmem:[%s14268_s1 + $0x1f4] ss:$8 sps:$4 sm:$0xff]  }
  0x44   :  { %7286 = vmatpush1.bf16.msra.mxu0 %v9298_v11  ;;  %6599 = vmatprep.subr.bf16.mxu1 %v9303_v12  ;;  %v9390_v11 = vld [vmem:[%s14268_s1 + $0x11f4] ss:$8 sps:$4 sm:$0xff]   ;;  %v9385_v12 = vld [vmem:[%s14268_s1 + $0x1f0] ss:$8 sps:$4 sm:$0xff]  }
  0x45   :  { %7287 = vmatprep.subr.bf16.mxu0 %v9306_v13  ;;  %6629 = vmatprep.mubr.bf16.mxu1 %v7986_v40  ;;  %v9388_v13 = vld [vmem:[%s14268_s1 + $0x11f0] ss:$8 sps:$4 sm:$0xff]   ;;  %v9415_v40 = vld [vmem:[%s14268_s1 + $0x240] ss:$8 sps:$4 sm:$0xff]  }
  0x46   :  { %7317 = vmatprep.mubr.bf16.mxu0 %v8018_v43  ;;  %v9426_v43 = vld [vmem:[%s14268_s1 + $0x1254] ss:$8 sps:$4 sm:$0xff]  }
  0x47   :  { %6600 = vmatpush1.bf16.msra.mxu1 %v9301_v14  ;;  %v9393_v14 = vld [vmem:[%s14268_s1 + $0x204] ss:$8 sps:$4 sm:$0xff]  }
  0x48   :  { %7288 = vmatpush1.bf16.msra.mxu0 %v9304_v15  ;;  %6601 = vmatprep.subr.bf16.mxu1 %v9309_v16  ;;  %v9396_v15 = vld [vmem:[%s14268_s1 + $0x1204] ss:$8 sps:$4 sm:$0xff]   ;;  %v7985_v16 = vcombine.low %v11046_v36, %v11051_v37  ;;  %v9409_v36 = vld [vmem:[%s14268_s1 + $0x230] ss:$8 sps:$4 sm:$0xff]  }
  0x49   :  { %7289 = vmatprep.subr.bf16.mxu0 %v9312_v17  ;;  %v9391_v17 = vld [vmem:[%s14268_s1 + $0x200] ss:$8 sps:$4 sm:$0xff]   ;;  %v9412_v37 = vld [vmem:[%s14268_s1 + $0x1230] ss:$8 sps:$4 sm:$0xff]  }
  0x4b   :  { %6602 = vmatpush1.bf16.msra.mxu1 %v9307_v18  ;;  %v8017_v18 = vcombine.low %v11064_v41, %v11069_v42  ;;  %v9418_v41 = vld [vmem:[%s14268_s1 + $0x1240] ss:$8 sps:$4 sm:$0xff]   ;;  %v9423_v42 = vld [vmem:[%s14268_s1 + $0x254] ss:$8 sps:$4 sm:$0xff]  }
  0x4c   :  { %7290 = vmatpush1.bf16.msra.mxu0 %v9310_v19  ;;  %6603 = vmatprep.subr.bf16.mxu1 %v9315_v20  ;;  %v9394_v19 = vld [vmem:[%s14268_s1 + $0x1200] ss:$8 sps:$4 sm:$0xff]   ;;  %v9399_v20 = vld [vmem:[%s14268_s1 + $0x214] ss:$8 sps:$4 sm:$0xff]  }
  0x4d   :  { %7291 = vmatprep.subr.bf16.mxu0 %v9318_v21  ;;  %v9402_v21 = vld [vmem:[%s14268_s1 + $0x1214] ss:$8 sps:$4 sm:$0xff]  }
  0x4f   :  { %6604 = vmatpush1.bf16.msra.mxu1 %v9313_v22  ;;  %v9397_v22 = vld [vmem:[%s14268_s1 + $0x210] ss:$8 sps:$4 sm:$0xff]  }
  0x50   :  { %7292 = vmatpush1.bf16.msra.mxu0 %v9316_v23  ;;  %6605 = vmatprep.subr.bf16.mxu1 %v9321_v24  ;;  %v9400_v23 = vld [vmem:[%s14268_s1 + $0x1210] ss:$8 sps:$4 sm:$0xff]  }
  0x51   :  { %7293 = vmatprep.subr.bf16.mxu0 %v9324_v25  ;;  %v11206_v24 = vld [vmem:[%s14269_s0 + $0x10] sm:$0xff] }
  0x52   :  { %v11211_v25 = vld [vmem:[%s14269_s0 + $0x110] sm:$0xff] }
  0x53   :  { %6606 = vmatpush1.bf16.msra.mxu1 %v9319_v26  ;;  %v9405_v26 = vld [vmem:[%s14268_s1 + $0x224] ss:$8 sps:$4 sm:$0xff]  }
  0x54   :  { %7294 = vmatpush1.bf16.msra.mxu0 %v9322_v27  ;;  %6607 = vmatprep.subr.bf16.mxu1 %v9327_v28  ;;  %v9408_v27 = vld [vmem:[%s14268_s1 + $0x1224] ss:$8 sps:$4 sm:$0xff]   ;;  %v7988_v28 = vcombine.high %v11206_v24, %v11211_v25 }
  0x55   :  { %7295 = vmatprep.subr.bf16.mxu0 %v9330_v29  ;;  %v11224_v29 = vld [vmem:[%s14269_s0 + $0x90] sm:$0xff] }
  0x57   :  { %6608 = vmatpush1.bf16.msra.mxu1 %v9325_v30  ;;  %v11229_v30 = vld [vmem:[%s14269_s0 + $0x190] sm:$0xff] }
  0x58   :  { %7296 = vmatpush1.bf16.msra.mxu0 %v9328_v31  ;;  %6609 = vmatprep.subr.bf16.mxu1 %v9333_v32  ;;  %v8020_v31 = vcombine.high %v11224_v29, %v11229_v30  ;;  %v9403_v32 = vld [vmem:[%s14268_s1 + $0x220] ss:$8 sps:$4 sm:$0xff]  }
  0x59   :  { %7297 = vmatprep.subr.bf16.mxu0 %v9336_v33  ;;  %v9406_v33 = vld [vmem:[%s14268_s1 + $0x1220] ss:$8 sps:$4 sm:$0xff]  }
  0x5b   :  { %6610 = vmatpush1.bf16.msra.mxu1 %v9331_v34  ;;  %v9411_v34 = vld [vmem:[%s14268_s1 + $0x234] ss:$8 sps:$4 sm:$0xff]  }
  0x5c   :  { %7298 = vmatpush1.bf16.msra.mxu0 %v9334_v35  ;;  %6611 = vmatprep.subr.bf16.mxu1 %v9339_v38  ;;  %v9414_v35 = vld [vmem:[%s14268_s1 + $0x1234] ss:$8 sps:$4 sm:$0xff]   ;;  %v9417_v38 = vld [vmem:[%s14268_s1 + $0x244] ss:$8 sps:$4 sm:$0xff]  }
  0x5d   :  { %7299 = vmatprep.subr.bf16.mxu0 %v9342_v39  ;;  %v9420_v39 = vld [vmem:[%s14268_s1 + $0x1244] ss:$8 sps:$4 sm:$0xff]  }
  0x5f   :  { %6612 = vmatpush1.bf16.msra.mxu1 %v9337_v44  ;;  %v9421_v44 = vld [vmem:[%s14268_s1 + $0x250] ss:$8 sps:$4 sm:$0xff]  }
  0x60   :  { %7300 = vmatpush1.bf16.msra.mxu0 %v9340_v45  ;;  %6613 = vmatprep.subr.bf16.mxu1 %v9345_v46  ;;  %v9424_v45 = vld [vmem:[%s14268_s1 + $0x1250] ss:$8 sps:$4 sm:$0xff]   ;;  %v9429_v46 = vld [vmem:[%s14268_s1 + $0x264] ss:$8 sps:$4 sm:$0xff]  }
  0x61   :  { %7301 = vmatprep.subr.bf16.mxu0 %v9348_v47  ;;  %v9432_v47 = vld [vmem:[%s14268_s1 + $0x1264] ss:$8 sps:$4 sm:$0xff]  }
  0x63   :  { %6614 = vmatpush1.bf16.msra.mxu1 %v9343_v48  ;;  %v9427_v48 = vld [vmem:[%s14268_s1 + $0x260] ss:$8 sps:$4 sm:$0xff]  }
  0x64   :  { %7302 = vmatpush1.bf16.msra.mxu0 %v9346_v49  ;;  %6615 = vmatprep.subr.bf16.mxu1 %v9351_v50  ;;  %v9430_v49 = vld [vmem:[%s14268_s1 + $0x1260] ss:$8 sps:$4 sm:$0xff]   ;;  %v9435_v50 = vld [vmem:[%s14268_s1 + $0x274] ss:$8 sps:$4 sm:$0xff]  }
  0x65   :  { %7303 = vmatprep.subr.bf16.mxu0 %v9354_v51  ;;  %v9438_v51 = vld [vmem:[%s14268_s1 + $0x1274] ss:$8 sps:$4 sm:$0xff]  }
  0x67   :  { %6616 = vmatpush1.bf16.msra.mxu1 %v9349_v52  ;;  %v9433_v52 = vld [vmem:[%s14268_s1 + $0x270] ss:$8 sps:$4 sm:$0xff]  }
  0x68   :  { %7304 = vmatpush1.bf16.msra.mxu0 %v9352_v53  ;;  %6617 = vmatprep.subr.bf16.mxu1 %v9357_v54  ;;  %v9436_v53 = vld [vmem:[%s14268_s1 + $0x1270] ss:$8 sps:$4 sm:$0xff]   ;;  %v9441_v54 = vld [vmem:[%s14268_s1 + $0x284] ss:$8 sps:$4 sm:$0xff]  }
  0x69   :  { %7305 = vmatprep.subr.bf16.mxu0 %v9360_v55  ;;  %v9444_v55 = vld [vmem:[%s14268_s1 + $0x1284] ss:$8 sps:$4 sm:$0xff]  }
  0x6b   :  { %6618 = vmatpush1.bf16.msra.mxu1 %v9355_v56  ;;  %v9439_v56 = vld [vmem:[%s14268_s1 + $0x280] ss:$8 sps:$4 sm:$0xff]  }
  0x6c   :  { %7306 = vmatpush1.bf16.msra.mxu0 %v9358_v57  ;;  %6619 = vmatprep.subr.bf16.mxu1 %v9363_v58  ;;  %v9442_v57 = vld [vmem:[%s14268_s1 + $0x1280] ss:$8 sps:$4 sm:$0xff]   ;;  %v9447_v58 = vld [vmem:[%s14268_s1 + $0x294] ss:$8 sps:$4 sm:$0xff]  }
  0x6d   :  { %7307 = vmatprep.subr.bf16.mxu0 %v9366_v59  ;;  %v9450_v59 = vld [vmem:[%s14268_s1 + $0x1294] ss:$8 sps:$4 sm:$0xff]  }
  0x6f   :  { %6620 = vmatpush1.bf16.msra.mxu1 %v9361_v60  ;;  %v9445_v60 = vld [vmem:[%s14268_s1 + $0x290] ss:$8 sps:$4 sm:$0xff]  }
  0x70   :  { %7308 = vmatpush1.bf16.msra.mxu0 %v9364_v61  ;;  %6621 = vmatprep.subr.bf16.mxu1 %v9369_v62  ;;  %v9448_v61 = vld [vmem:[%s14268_s1 + $0x1290] ss:$8 sps:$4 sm:$0xff]   ;;  %v9453_v62 = vld [vmem:[%s14268_s1 + $0x2a4] ss:$8 sps:$4 sm:$0xff]  }
  0x71   :  { %7309 = vmatprep.subr.bf16.mxu0 %v9372_v63  ;;  %v9456_v63 = vld [vmem:[%s14268_s1 + $0x12a4] ss:$8 sps:$4 sm:$0xff]  }
  0x73   :  { %6622 = vmatpush1.bf16.msra.mxu1 %v9367_v0  ;;  %v9451_v0 = vld [vmem:[%s14268_s1 + $0x2a0] ss:$8 sps:$4 sm:$0xff]  }
  0x74   :  { %7310 = vmatpush1.bf16.msra.mxu0 %v9370_v1  ;;  %6623 = vmatprep.subr.bf16.mxu1 %v9375_v2  ;;  %v9454_v1 = vld [vmem:[%s14268_s1 + $0x12a0] ss:$8 sps:$4 sm:$0xff]   ;;  %v9459_v2 = vld [vmem:[%s14268_s1 + $0x2b4] ss:$8 sps:$4 sm:$0xff]  }
  0x75   :  { %7311 = vmatprep.subr.bf16.mxu0 %v9378_v3  ;;  %v9462_v3 = vld [vmem:[%s14268_s1 + $0x12b4] ss:$8 sps:$4 sm:$0xff]  }
  0x77   :  { %6624 = vmatpush1.bf16.msra.mxu1 %v9373_v4  ;;  %v9457_v4 = vld [vmem:[%s14268_s1 + $0x2b0] ss:$8 sps:$4 sm:$0xff]  }
  0x78   :  { %7312 = vmatpush1.bf16.msra.mxu0 %v9376_v5  ;;  %6625 = vmatprep.subr.bf16.mxu1 %v9381_v6  ;;  %v9460_v5 = vld [vmem:[%s14268_s1 + $0x12b0] ss:$8 sps:$4 sm:$0xff]   ;;  %v9465_v6 = vld [vmem:[%s14268_s1 + $0x2c4] ss:$8 sps:$4 sm:$0xff]  }
  0x79   :  { %7313 = vmatprep.subr.bf16.mxu0 %v9384_v7  ;;  %v9468_v7 = vld [vmem:[%s14268_s1 + $0x12c4] ss:$8 sps:$4 sm:$0xff]  }
  0x7b   :  { %6626 = vmatpush1.bf16.msra.mxu1 %v9379_v8  ;;  %v9463_v8 = vld [vmem:[%s14268_s1 + $0x2c0] ss:$8 sps:$4 sm:$0xff]  }
  0x7c   :  { %7314 = vmatpush1.bf16.msra.mxu0 %v9382_v9  ;;  %6627 = vmatprep.subr.bf16.mxu1 %v9387_v10  ;;  %v9466_v9 = vld [vmem:[%s14268_s1 + $0x12c0] ss:$8 sps:$4 sm:$0xff]   ;;  %v9471_v10 = vld [vmem:[%s14268_s1 + $0x2d4] ss:$8 sps:$4 sm:$0xff]  }
  0x7d   :  { %7315 = vmatprep.subr.bf16.mxu0 %v9390_v11  ;;  %v9474_v11 = vld [vmem:[%s14268_s1 + $0x12d4] ss:$8 sps:$4 sm:$0xff]  }
  0x7f   :  { %6628 = vmatpush1.bf16.msra.mxu1 %v9385_v12  ;;  %v9469_v12 = vld [vmem:[%s14268_s1 + $0x2d0] ss:$8 sps:$4 sm:$0xff]  }
  0x80   :  { %7316 = vmatpush1.bf16.msra.mxu0 %v9388_v13  ;;  %6640 = vmatprep.subr.bf16.mxu1 %v9393_v14  ;;  %v9472_v13 = vld [vmem:[%s14268_s1 + $0x12d0] ss:$8 sps:$4 sm:$0xff]   ;;  %v9477_v14 = vld [vmem:[%s14268_s1 + $0x2e4] ss:$8 sps:$4 sm:$0xff]  }
  0x81   :  { %7328 = vmatprep.subr.bf16.mxu0 %v9396_v15  ;;  %v9480_v15 = vld [vmem:[%s14268_s1 + $0x12e4] ss:$8 sps:$4 sm:$0xff]  }
  0x82   :  { %6630 = vmatmul.mubr.bf16.vlgmr.msra.gmra.mrb[0].mxu1 %v7985_v16  ;;  %v9475_v16 = vld [vmem:[%s14268_s1 + $0x2e0] ss:$8 sps:$4 sm:$0xff]  }
  0x83   :  { %7318 = vmatmul.mubr.bf16.vlgmr.msra.gmra.mrb[0].mxu0 %v8017_v18  ;;  %6641 = vmatpush1.bf16.msra.mxu1 %v9391_v17  ;;  %v9478_v17 = vld [vmem:[%s14268_s1 + $0x12e0] ss:$8 sps:$4 sm:$0xff]   ;;  %v9483_v18 = vld [vmem:[%s14268_s1 + $0x2f4] ss:$8 sps:$4 sm:$0xff]  }
  0x84   :  { %7329 = vmatpush1.bf16.msra.mxu0 %v9394_v19  ;;  %6642 = vmatprep.subr.bf16.mxu1 %v9399_v20  ;;  %v9486_v19 = vld [vmem:[%s14268_s1 + $0x12f4] ss:$8 sps:$4 sm:$0xff]   ;;  %v9481_v20 = vld [vmem:[%s14268_s1 + $0x2f0] ss:$8 sps:$4 sm:$0xff]  }
  0x85   :  { %7330 = vmatprep.subr.bf16.mxu0 %v9402_v21  ;;  %6672 = vmatprep.mubr.bf16.mxu1 %v7988_v28  ;;  %v9484_v21 = vld [vmem:[%s14268_s1 + $0x12f0] ss:$8 sps:$4 sm:$0xff]  }
  0x86   :  { %7360 = vmatprep.mubr.bf16.mxu0 %v8020_v31  ;;  %v11410_v28 = vld [vmem:[%s14269_s0 + $0x18] sm:$0xff] }
  0x87   :  { %6643 = vmatpush1.bf16.msra.mxu1 %v9397_v22  ;;  %v9489_v22 = vld [vmem:[%s14268_s1 + $0x304] ss:$8 sps:$4 sm:$0xff]   ;;  %v11415_v31 = vld [vmem:[%s14269_s0 + $0x118] sm:$0xff] }
  0x88   :  { %7331 = vmatpush1.bf16.msra.mxu0 %v9400_v23  ;;  %6644 = vmatprep.subr.bf16.mxu1 %v9405_v26  ;;  %v9492_v23 = vld [vmem:[%s14268_s1 + $0x1304] ss:$8 sps:$4 sm:$0xff]   ;;  %v9487_v26 = vld [vmem:[%s14268_s1 + $0x300] ss:$8 sps:$4 sm:$0xff]  }
  0x89   :  { %7332 = vmatprep.subr.bf16.mxu0 %v9408_v27  ;;  %v9490_v27 = vld [vmem:[%s14268_s1 + $0x1300] ss:$8 sps:$4 sm:$0xff]  }
  0x8b   :  { %6645 = vmatpush1.bf16.msra.mxu1 %v9403_v32  ;;  %v7987_v32 = vcombine.low %v11206_v24, %v11211_v25  ;;  %v9498_v24 = vld [vmem:[%s14268_s1 + $0x1314] ss:$8 sps:$4 sm:$0xff]   ;;  %v7990_v25 = vcombine.high %v11410_v28, %v11415_v31 }
  0x8c   :  { %7333 = vmatpush1.bf16.msra.mxu0 %v9406_v33  ;;  %6646 = vmatprep.subr.bf16.mxu1 %v9411_v34  ;;  %v8019_v33 = vcombine.low %v11224_v29, %v11229_v30  ;;  %v11424_v34 = vld [vmem:[%s14269_s0 + $0x98] sm:$0xff] }
  0x8d   :  { %7334 = vmatprep.subr.bf16.mxu0 %v9414_v35  ;;  %v11429_v35 = vld [vmem:[%s14269_s0 + $0x198] sm:$0xff] }
  0x8e   :  { %v8022_v29 = vcombine.high %v11424_v34, %v11429_v35  ;;  %v9493_v30 = vld [vmem:[%s14268_s1 + $0x310] ss:$8 sps:$4 sm:$0xff]  }
  0x8f   :  { %6647 = vmatpush1.bf16.msra.mxu1 %v9409_v36  ;;  %v9495_v36 = vld [vmem:[%s14268_s1 + $0x314] ss:$8 sps:$4 sm:$0xff]  }
  0x90   :  { %7335 = vmatpush1.bf16.msra.mxu0 %v9412_v37  ;;  %6648 = vmatprep.subr.bf16.mxu1 %v9417_v38  ;;  %v9496_v37 = vld [vmem:[%s14268_s1 + $0x1310] ss:$8 sps:$4 sm:$0xff]   ;;  %v9501_v38 = vld [vmem:[%s14268_s1 + $0x324] ss:$8 sps:$4 sm:$0xff]  }
  0x91   :  { %7336 = vmatprep.subr.bf16.mxu0 %v9420_v39  ;;  %v9504_v39 = vld [vmem:[%s14268_s1 + $0x1324] ss:$8 sps:$4 sm:$0xff]  }
  0x93   :  { %6649 = vmatpush1.bf16.msra.mxu1 %v9415_v40  ;;  %v9499_v40 = vld [vmem:[%s14268_s1 + $0x320] ss:$8 sps:$4 sm:$0xff]  }
  0x94   :  { %7337 = vmatpush1.bf16.msra.mxu0 %v9418_v41  ;;  %6650 = vmatprep.subr.bf16.mxu1 %v9423_v42  ;;  %v9502_v41 = vld [vmem:[%s14268_s1 + $0x1320] ss:$8 sps:$4 sm:$0xff]   ;;  %v9507_v42 = vld [vmem:[%s14268_s1 + $0x334] ss:$8 sps:$4 sm:$0xff]  }
  0x95   :  { %7338 = vmatprep.subr.bf16.mxu0 %v9426_v43  ;;  %v9510_v43 = vld [vmem:[%s14268_s1 + $0x1334] ss:$8 sps:$4 sm:$0xff]  }
  0x97   :  { %6651 = vmatpush1.bf16.msra.mxu1 %v9421_v44  ;;  %v9505_v44 = vld [vmem:[%s14268_s1 + $0x330] ss:$8 sps:$4 sm:$0xff]  }
  0x98   :  { %7339 = vmatpush1.bf16.msra.mxu0 %v9424_v45  ;;  %6652 = vmatprep.subr.bf16.mxu1 %v9429_v46  ;;  %v9508_v45 = vld [vmem:[%s14268_s1 + $0x1330] ss:$8 sps:$4 sm:$0xff]   ;;  %v9513_v46 = vld [vmem:[%s14268_s1 + $0x344] ss:$8 sps:$4 sm:$0xff]  }
  0x99   :  { %7340 = vmatprep.subr.bf16.mxu0 %v9432_v47  ;;  %v9516_v47 = vld [vmem:[%s14268_s1 + $0x1344] ss:$8 sps:$4 sm:$0xff]  }
  0x9b   :  { %6653 = vmatpush1.bf16.msra.mxu1 %v9427_v48  ;;  %v9511_v48 = vld [vmem:[%s14268_s1 + $0x340] ss:$8 sps:$4 sm:$0xff]  }
  0x9c   :  { %7341 = vmatpush1.bf16.msra.mxu0 %v9430_v49  ;;  %6654 = vmatprep.subr.bf16.mxu1 %v9435_v50  ;;  %v9514_v49 = vld [vmem:[%s14268_s1 + $0x1340] ss:$8 sps:$4 sm:$0xff]   ;;  %v9519_v50 = vld [vmem:[%s14268_s1 + $0x354] ss:$8 sps:$4 sm:$0xff]  }
  0x9d   :  { %7342 = vmatprep.subr.bf16.mxu0 %v9438_v51  ;;  %v9522_v51 = vld [vmem:[%s14268_s1 + $0x1354] ss:$8 sps:$4 sm:$0xff]  }
  0x9f   :  { %6655 = vmatpush1.bf16.msra.mxu1 %v9433_v52  ;;  %v9517_v52 = vld [vmem:[%s14268_s1 + $0x350] ss:$8 sps:$4 sm:$0xff]  }
  0xa0   :  { %7343 = vmatpush1.bf16.msra.mxu0 %v9436_v53  ;;  %6656 = vmatprep.subr.bf16.mxu1 %v9441_v54  ;;  %v9520_v53 = vld [vmem:[%s14268_s1 + $0x1350] ss:$8 sps:$4 sm:$0xff]   ;;  %v9525_v54 = vld [vmem:[%s14268_s1 + $0x364] ss:$8 sps:$4 sm:$0xff]  }
  0xa1   :  { %7344 = vmatprep.subr.bf16.mxu0 %v9444_v55  ;;  %v9528_v55 = vld [vmem:[%s14268_s1 + $0x1364] ss:$8 sps:$4 sm:$0xff]  }
  0xa3   :  { %6657 = vmatpush1.bf16.msra.mxu1 %v9439_v56  ;;  %v9523_v56 = vld [vmem:[%s14268_s1 + $0x360] ss:$8 sps:$4 sm:$0xff]  }
  0xa4   :  { %7345 = vmatpush1.bf16.msra.mxu0 %v9442_v57  ;;  %6658 = vmatprep.subr.bf16.mxu1 %v9447_v58  ;;  %v9526_v57 = vld [vmem:[%s14268_s1 + $0x1360] ss:$8 sps:$4 sm:$0xff]   ;;  %v9531_v58 = vld [vmem:[%s14268_s1 + $0x374] ss:$8 sps:$4 sm:$0xff]  }
  0xa5   :  { %7346 = vmatprep.subr.bf16.mxu0 %v9450_v59  ;;  %v9534_v59 = vld [vmem:[%s14268_s1 + $0x1374] ss:$8 sps:$4 sm:$0xff]  }
  0xa7   :  { %6659 = vmatpush1.bf16.msra.mxu1 %v9445_v60  ;;  %v9529_v60 = vld [vmem:[%s14268_s1 + $0x370] ss:$8 sps:$4 sm:$0xff]  }
  0xa8   :  { %7347 = vmatpush1.bf16.msra.mxu0 %v9448_v61  ;;  %6660 = vmatprep.subr.bf16.mxu1 %v9453_v62  ;;  %v9532_v61 = vld [vmem:[%s14268_s1 + $0x1370] ss:$8 sps:$4 sm:$0xff]   ;;  %v9537_v62 = vld [vmem:[%s14268_s1 + $0x384] ss:$8 sps:$4 sm:$0xff]  }
  0xa9   :  { %7348 = vmatprep.subr.bf16.mxu0 %v9456_v63  ;;  %v9540_v63 = vld [vmem:[%s14268_s1 + $0x1384] ss:$8 sps:$4 sm:$0xff]  }
  0xab   :  { %6661 = vmatpush1.bf16.msra.mxu1 %v9451_v0  ;;  %v9535_v0 = vld [vmem:[%s14268_s1 + $0x380] ss:$8 sps:$4 sm:$0xff]  }
  0xac   :  { %7349 = vmatpush1.bf16.msra.mxu0 %v9454_v1  ;;  %6662 = vmatprep.subr.bf16.mxu1 %v9459_v2  ;;  %v9538_v1 = vld [vmem:[%s14268_s1 + $0x1380] ss:$8 sps:$4 sm:$0xff]   ;;  %v9543_v2 = vld [vmem:[%s14268_s1 + $0x394] ss:$8 sps:$4 sm:$0xff]  }
  0xad   :  { %7350 = vmatprep.subr.bf16.mxu0 %v9462_v3  ;;  %v9546_v3 = vld [vmem:[%s14268_s1 + $0x1394] ss:$8 sps:$4 sm:$0xff]  }
  0xaf   :  { %6663 = vmatpush1.bf16.msra.mxu1 %v9457_v4  ;;  %v9541_v4 = vld [vmem:[%s14268_s1 + $0x390] ss:$8 sps:$4 sm:$0xff]  }
  0xb0   :  { %7351 = vmatpush1.bf16.msra.mxu0 %v9460_v5  ;;  %6664 = vmatprep.subr.bf16.mxu1 %v9465_v6  ;;  %v9544_v5 = vld [vmem:[%s14268_s1 + $0x1390] ss:$8 sps:$4 sm:$0xff]   ;;  %v9549_v6 = vld [vmem:[%s14268_s1 + $0x3a4] ss:$8 sps:$4 sm:$0xff]  }
  0xb1   :  { %7352 = vmatprep.subr.bf16.mxu0 %v9468_v7  ;;  %v9552_v7 = vld [vmem:[%s14268_s1 + $0x13a4] ss:$8 sps:$4 sm:$0xff]  }
  0xb3   :  { %6665 = vmatpush1.bf16.msra.mxu1 %v9463_v8  ;;  %v9547_v8 = vld [vmem:[%s14268_s1 + $0x3a0] ss:$8 sps:$4 sm:$0xff]  }
  0xb4   :  { %7353 = vmatpush1.bf16.msra.mxu0 %v9466_v9  ;;  %6666 = vmatprep.subr.bf16.mxu1 %v9471_v10  ;;  %v9550_v9 = vld [vmem:[%s14268_s1 + $0x13a0] ss:$8 sps:$4 sm:$0xff]   ;;  %v9555_v10 = vld [vmem:[%s14268_s1 + $0x3b4] ss:$8 sps:$4 sm:$0xff]  }
  0xb5   :  { %7354 = vmatprep.subr.bf16.mxu0 %v9474_v11  ;;  %v9558_v11 = vld [vmem:[%s14268_s1 + $0x13b4] ss:$8 sps:$4 sm:$0xff]  }
  0xb7   :  { %6667 = vmatpush1.bf16.msra.mxu1 %v9469_v12  ;;  %v9553_v12 = vld [vmem:[%s14268_s1 + $0x3b0] ss:$8 sps:$4 sm:$0xff]  }
  0xb8   :  { %7355 = vmatpush1.bf16.msra.mxu0 %v9472_v13  ;;  %6668 = vmatprep.subr.bf16.mxu1 %v9477_v14  ;;  %v9556_v13 = vld [vmem:[%s14268_s1 + $0x13b0] ss:$8 sps:$4 sm:$0xff]   ;;  %v9561_v14 = vld [vmem:[%s14268_s1 + $0x3c4] ss:$8 sps:$4 sm:$0xff]  }
  0xb9   :  { %7356 = vmatprep.subr.bf16.mxu0 %v9480_v15  ;;  %v9564_v15 = vld [vmem:[%s14268_s1 + $0x13c4] ss:$8 sps:$4 sm:$0xff]  }
  0xbb   :  { %6669 = vmatpush1.bf16.msra.mxu1 %v9475_v16  ;;  %v9559_v16 = vld [vmem:[%s14268_s1 + $0x3c0] ss:$8 sps:$4 sm:$0xff]  }
  0xbc   :  { %7357 = vmatpush1.bf16.msra.mxu0 %v9478_v17  ;;  %6670 = vmatprep.subr.bf16.mxu1 %v9483_v18  ;;  %v9562_v17 = vld [vmem:[%s14268_s1 + $0x13c0] ss:$8 sps:$4 sm:$0xff]   ;;  %v9567_v18 = vld [vmem:[%s14268_s1 + $0x3d4] ss:$8 sps:$4 sm:$0xff]  }
  0xbd   :  { %7358 = vmatprep.subr.bf16.mxu0 %v9486_v19  ;;  %v9570_v19 = vld [vmem:[%s14268_s1 + $0x13d4] ss:$8 sps:$4 sm:$0xff]  }
  0xbf   :  { %6671 = vmatpush1.bf16.msra.mxu1 %v9481_v20  ;;  %v9565_v20 = vld [vmem:[%s14268_s1 + $0x3d0] ss:$8 sps:$4 sm:$0xff]  }
  0xc0   :  { %7359 = vmatpush1.bf16.msra.mxu0 %v9484_v21  ;;  %6683 = vmatprep.subr.bf16.mxu1 %v9489_v22  ;;  %v9568_v21 = vld [vmem:[%s14268_s1 + $0x13d0] ss:$8 sps:$4 sm:$0xff]   ;;  %v9573_v22 = vld [vmem:[%s14268_s1 + $0x3e4] ss:$8 sps:$4 sm:$0xff]  }
  0xc1   :  { %7371 = vmatprep.subr.bf16.mxu0 %v9492_v23  ;;  %v9576_v23 = vld [vmem:[%s14268_s1 + $0x13e4] ss:$8 sps:$4 sm:$0xff]  }
  0xc2   :  { %6673 = vmatmul.mubr.bf16.vlgmr.msra.gmra.mrb[0].mxu1 %v7987_v32  ;;  %v9579_v32 = vld [vmem:[%s14268_s1 + $0x3f4] ss:$8 sps:$4 sm:$0xff]  }
  0xc3   :  { %7361 = vmatmul.mubr.bf16.vlgmr.msra.gmra.mrb[0].mxu0 %v8019_v33  ;;  %6684 = vmatpush1.bf16.msra.mxu1 %v9487_v26  ;;  %v9571_v26 = vld [vmem:[%s14268_s1 + $0x3e0] ss:$8 sps:$4 sm:$0xff]   ;;  %v9582_v33 = vld [vmem:[%s14268_s1 + $0x13f4] ss:$8 sps:$4 sm:$0xff]  }
  0xc4   :  { %7372 = vmatpush1.bf16.msra.mxu0 %v9490_v27  ;;  %6685 = vmatprep.subr.bf16.mxu1 %v9495_v36  ;;  %v9574_v27 = vld [vmem:[%s14268_s1 + $0x13e0] ss:$8 sps:$4 sm:$0xff]   ;;  %v9577_v36 = vld [vmem:[%s14268_s1 + $0x3f0] ss:$8 sps:$4 sm:$0xff]  }
  0xc5   :  { %7373 = vmatprep.subr.bf16.mxu0 %v9498_v24  ;;  %6715 = vmatprep.mubr.bf16.mxu1 %v7990_v25  ;;  %v9580_v24 = vld [vmem:[%s14268_s1 + $0x13f0] ss:$8 sps:$4 sm:$0xff]   ;;  %v9585_v25 = vld [vmem:[%s14268_s1 + $0x404] ss:$8 sps:$4 sm:$0xff]  }
  0xc6   :  { %7403 = vmatprep.mubr.bf16.mxu0 %v8022_v29  ;;  %v9588_v29 = vld [vmem:[%s14268_s1 + $0x1404] ss:$8 sps:$4 sm:$0xff]  }
  0xc7   :  { %6686 = vmatpush1.bf16.msra.mxu1 %v9493_v30  ;;  %v9583_v30 = vld [vmem:[%s14268_s1 + $0x400] ss:$8 sps:$4 sm:$0xff]  }
  0xc8   :  { %7374 = vmatpush1.bf16.msra.mxu0 %v9496_v37  ;;  %6687 = vmatprep.subr.bf16.mxu1 %v9501_v38  ;;  %v9586_v37 = vld [vmem:[%s14268_s1 + $0x1400] ss:$8 sps:$4 sm:$0xff]  }
  0xc9   :  { %7375 = vmatprep.subr.bf16.mxu0 %v9504_v39  ;;  %v11630_v38 = vld [vmem:[%s14269_s0 + $0x20] sm:$0xff] }
  0xca   :  { %v11635_v39 = vld [vmem:[%s14269_s0 + $0x120] sm:$0xff] }
  0xcb   :  { %6688 = vmatpush1.bf16.msra.mxu1 %v9499_v40  ;;  %v7989_v40 = vcombine.low %v11410_v28, %v11415_v31  ;;  %v9594_v28 = vld [vmem:[%s14268_s1 + $0x1414] ss:$8 sps:$4 sm:$0xff]   ;;  %v7992_v31 = vcombine.high %v11630_v38, %v11635_v39 }
  0xcc   :  { %7376 = vmatpush1.bf16.msra.mxu0 %v9502_v41  ;;  %6689 = vmatprep.subr.bf16.mxu1 %v9507_v42  ;;  %v8021_v41 = vcombine.low %v11424_v34, %v11429_v35  ;;  %v11644_v42 = vld [vmem:[%s14269_s0 + $0xa0] sm:$0xff]  ;;  %v9589_v35 = vld [vmem:[%s14268_s1 + $0x410] ss:$8 sps:$4 sm:$0xff]  }
  0xcd   :  { %7377 = vmatprep.subr.bf16.mxu0 %v9510_v43  ;;  %v11649_v43 = vld [vmem:[%s14269_s0 + $0x1a0] sm:$0xff] }
  0xce   :  { %v8024_v34 = vcombine.high %v11644_v42, %v11649_v43 }
  0xcf   :  { %6690 = vmatpush1.bf16.msra.mxu1 %v9505_v44  ;;  %v9591_v44 = vld [vmem:[%s14268_s1 + $0x414] ss:$8 sps:$4 sm:$0xff]  }
  0xd0   :  { %7378 = vmatpush1.bf16.msra.mxu0 %v9508_v45  ;;  %6691 = vmatprep.subr.bf16.mxu1 %v9513_v46  ;;  %v9592_v45 = vld [vmem:[%s14268_s1 + $0x1410] ss:$8 sps:$4 sm:$0xff]   ;;  %v9597_v46 = vld [vmem:[%s14268_s1 + $0x424] ss:$8 sps:$4 sm:$0xff]  }
  0xd1   :  { %7379 = vmatprep.subr.bf16.mxu0 %v9516_v47  ;;  %v9600_v47 = vld [vmem:[%s14268_s1 + $0x1424] ss:$8 sps:$4 sm:$0xff]  }
  0xd3   :  { %6692 = vmatpush1.bf16.msra.mxu1 %v9511_v48  ;;  %v9595_v48 = vld [vmem:[%s14268_s1 + $0x420] ss:$8 sps:$4 sm:$0xff]  }
  0xd4   :  { %7380 = vmatpush1.bf16.msra.mxu0 %v9514_v49  ;;  %6693 = vmatprep.subr.bf16.mxu1 %v9519_v50  ;;  %v9598_v49 = vld [vmem:[%s14268_s1 + $0x1420] ss:$8 sps:$4 sm:$0xff]   ;;  %v9603_v50 = vld [vmem:[%s14268_s1 + $0x434] ss:$8 sps:$4 sm:$0xff]  }
  0xd5   :  { %7381 = vmatprep.subr.bf16.mxu0 %v9522_v51  ;;  %v9606_v51 = vld [vmem:[%s14268_s1 + $0x1434] ss:$8 sps:$4 sm:$0xff]  }
  0xd7   :  { %6694 = vmatpush1.bf16.msra.mxu1 %v9517_v52  ;;  %v9601_v52 = vld [vmem:[%s14268_s1 + $0x430] ss:$8 sps:$4 sm:$0xff]  }
  0xd8   :  { %7382 = vmatpush1.bf16.msra.mxu0 %v9520_v53  ;;  %6695 = vmatprep.subr.bf16.mxu1 %v9525_v54  ;;  %v9604_v53 = vld [vmem:[%s14268_s1 + $0x1430] ss:$8 sps:$4 sm:$0xff]   ;;  %v9609_v54 = vld [vmem:[%s14268_s1 + $0x444] ss:$8 sps:$4 sm:$0xff]  }
  0xd9   :  { %7383 = vmatprep.subr.bf16.mxu0 %v9528_v55  ;;  %v9612_v55 = vld [vmem:[%s14268_s1 + $0x1444] ss:$8 sps:$4 sm:$0xff]  }
  0xdb   :  { %6696 = vmatpush1.bf16.msra.mxu1 %v9523_v56  ;;  %v9607_v56 = vld [vmem:[%s14268_s1 + $0x440] ss:$8 sps:$4 sm:$0xff]  }
  0xdc   :  { %7384 = vmatpush1.bf16.msra.mxu0 %v9526_v57  ;;  %6697 = vmatprep.subr.bf16.mxu1 %v9531_v58  ;;  %v9610_v57 = vld [vmem:[%s14268_s1 + $0x1440] ss:$8 sps:$4 sm:$0xff]   ;;  %v9615_v58 = vld [vmem:[%s14268_s1 + $0x454] ss:$8 sps:$4 sm:$0xff]  }
  0xdd   :  { %7385 = vmatprep.subr.bf16.mxu0 %v9534_v59  ;;  %v9618_v59 = vld [vmem:[%s14268_s1 + $0x1454] ss:$8 sps:$4 sm:$0xff]  }
  0xdf   :  { %6698 = vmatpush1.bf16.msra.mxu1 %v9529_v60  ;;  %v9613_v60 = vld [vmem:[%s14268_s1 + $0x450] ss:$8 sps:$4 sm:$0xff]  }
  0xe0   :  { %7386 = vmatpush1.bf16.msra.mxu0 %v9532_v61  ;;  %6699 = vmatprep.subr.bf16.mxu1 %v9537_v62  ;;  %v9616_v61 = vld [vmem:[%s14268_s1 + $0x1450] ss:$8 sps:$4 sm:$0xff]   ;;  %v9621_v62 = vld [vmem:[%s14268_s1 + $0x464] ss:$8 sps:$4 sm:$0xff]  }
  0xe1   :  { %7387 = vmatprep.subr.bf16.mxu0 %v9540_v63  ;;  %v9624_v63 = vld [vmem:[%s14268_s1 + $0x1464] ss:$8 sps:$4 sm:$0xff]  }
  0xe3   :  { %6700 = vmatpush1.bf16.msra.mxu1 %v9535_v0  ;;  %v9619_v0 = vld [vmem:[%s14268_s1 + $0x460] ss:$8 sps:$4 sm:$0xff]  }
  0xe4   :  { %7388 = vmatpush1.bf16.msra.mxu0 %v9538_v1  ;;  %6701 = vmatprep.subr.bf16.mxu1 %v9543_v2  ;;  %v9622_v1 = vld [vmem:[%s14268_s1 + $0x1460] ss:$8 sps:$4 sm:$0xff]   ;;  %v9627_v2 = vld [vmem:[%s14268_s1 + $0x474] ss:$8 sps:$4 sm:$0xff]  }
  0xe5   :  { %7389 = vmatprep.subr.bf16.mxu0 %v9546_v3  ;;  %v9630_v3 = vld [vmem:[%s14268_s1 + $0x1474] ss:$8 sps:$4 sm:$0xff]  }
  0xe7   :  { %6702 = vmatpush1.bf16.msra.mxu1 %v9541_v4  ;;  %v9625_v4 = vld [vmem:[%s14268_s1 + $0x470] ss:$8 sps:$4 sm:$0xff]  }
  0xe8   :  { %7390 = vmatpush1.bf16.msra.mxu0 %v9544_v5  ;;  %6703 = vmatprep.subr.bf16.mxu1 %v9549_v6  ;;  %v9628_v5 = vld [vmem:[%s14268_s1 + $0x1470] ss:$8 sps:$4 sm:$0xff]   ;;  %v9633_v6 = vld [vmem:[%s14268_s1 + $0x484] ss:$8 sps:$4 sm:$0xff]  }
  0xe9   :  { %7391 = vmatprep.subr.bf16.mxu0 %v9552_v7  ;;  %v9636_v7 = vld [vmem:[%s14268_s1 + $0x1484] ss:$8 sps:$4 sm:$0xff]  }
  0xeb   :  { %6704 = vmatpush1.bf16.msra.mxu1 %v9547_v8  ;;  %v9631_v8 = vld [vmem:[%s14268_s1 + $0x480] ss:$8 sps:$4 sm:$0xff]  }
  0xec   :  { %7392 = vmatpush1.bf16.msra.mxu0 %v9550_v9  ;;  %6705 = vmatprep.subr.bf16.mxu1 %v9555_v10  ;;  %v9634_v9 = vld [vmem:[%s14268_s1 + $0x1480] ss:$8 sps:$4 sm:$0xff]   ;;  %v9639_v10 = vld [vmem:[%s14268_s1 + $0x494] ss:$8 sps:$4 sm:$0xff]  }
  0xed   :  { %7393 = vmatprep.subr.bf16.mxu0 %v9558_v11  ;;  %v9642_v11 = vld [vmem:[%s14268_s1 + $0x1494] ss:$8 sps:$4 sm:$0xff]  }
  0xef   :  { %6706 = vmatpush1.bf16.msra.mxu1 %v9553_v12  ;;  %v9637_v12 = vld [vmem:[%s14268_s1 + $0x490] ss:$8 sps:$4 sm:$0xff]  }
  0xf0   :  { %7394 = vmatpush1.bf16.msra.mxu0 %v9556_v13  ;;  %6707 = vmatprep.subr.bf16.mxu1 %v9561_v14  ;;  %v9640_v13 = vld [vmem:[%s14268_s1 + $0x1490] ss:$8 sps:$4 sm:$0xff]   ;;  %v9645_v14 = vld [vmem:[%s14268_s1 + $0x4a4] ss:$8 sps:$4 sm:$0xff]  }
  0xf1   :  { %7395 = vmatprep.subr.bf16.mxu0 %v9564_v15  ;;  %v9648_v15 = vld [vmem:[%s14268_s1 + $0x14a4] ss:$8 sps:$4 sm:$0xff]  }
  0xf3   :  { %6708 = vmatpush1.bf16.msra.mxu1 %v9559_v16  ;;  %v9643_v16 = vld [vmem:[%s14268_s1 + $0x4a0] ss:$8 sps:$4 sm:$0xff]  }
  0xf4   :  { %7396 = vmatpush1.bf16.msra.mxu0 %v9562_v17  ;;  %6709 = vmatprep.subr.bf16.mxu1 %v9567_v18  ;;  %v9646_v17 = vld [vmem:[%s14268_s1 + $0x14a0] ss:$8 sps:$4 sm:$0xff]   ;;  %v9651_v18 = vld [vmem:[%s14268_s1 + $0x4b4] ss:$8 sps:$4 sm:$0xff]  }
  0xf5   :  { %7397 = vmatprep.subr.bf16.mxu0 %v9570_v19  ;;  %v9654_v19 = vld [vmem:[%s14268_s1 + $0x14b4] ss:$8 sps:$4 sm:$0xff]  }
  0xf7   :  { %6710 = vmatpush1.bf16.msra.mxu1 %v9565_v20  ;;  %v9649_v20 = vld [vmem:[%s14268_s1 + $0x4b0] ss:$8 sps:$4 sm:$0xff]  }
  0xf8   :  { %7398 = vmatpush1.bf16.msra.mxu0 %v9568_v21  ;;  %6711 = vmatprep.subr.bf16.mxu1 %v9573_v22  ;;  %v9652_v21 = vld [vmem:[%s14268_s1 + $0x14b0] ss:$8 sps:$4 sm:$0xff]   ;;  %v9657_v22 = vld [vmem:[%s14268_s1 + $0x4c4] ss:$8 sps:$4 sm:$0xff]  }
  0xf9   :  { %7399 = vmatprep.subr.bf16.mxu0 %v9576_v23  ;;  %v9660_v23 = vld [vmem:[%s14268_s1 + $0x14c4] ss:$8 sps:$4 sm:$0xff]  }
  0xfb   :  { %6712 = vmatpush1.bf16.msra.mxu1 %v9571_v26  ;;  %v9655_v26 = vld [vmem:[%s14268_s1 + $0x4c0] ss:$8 sps:$4 sm:$0xff]  }
  0xfc   :  { %7400 = vmatpush1.bf16.msra.mxu0 %v9574_v27  ;;  %6713 = vmatprep.subr.bf16.mxu1 %v9579_v32  ;;  %v9658_v27 = vld [vmem:[%s14268_s1 + $0x14c0] ss:$8 sps:$4 sm:$0xff]   ;;  %v9663_v32 = vld [vmem:[%s14268_s1 + $0x4d4] ss:$8 sps:$4 sm:$0xff]  }
  0xfd   :  { %7401 = vmatprep.subr.bf16.mxu0 %v9582_v33  ;;  %v9666_v33 = vld [vmem:[%s14268_s1 + $0x14d4] ss:$8 sps:$4 sm:$0xff]  }
  0xff   :  { %6714 = vmatpush1.bf16.msra.mxu1 %v9577_v36  ;;  %v9661_v36 = vld [vmem:[%s14268_s1 + $0x4d0] ss:$8 sps:$4 sm:$0xff]  }
 0x100   :  { %7402 = vmatpush1.bf16.msra.mxu0 %v9580_v24  ;;  %6726 = vmatprep.subr.bf16.mxu1 %v9585_v25  ;;  %v9664_v24 = vld [vmem:[%s14268_s1 + $0x14d0] ss:$8 sps:$4 sm:$0xff]   ;;  %v9669_v25 = vld [vmem:[%s14268_s1 + $0x4e4] ss:$8 sps:$4 sm:$0xff]  }
 0x101   :  { %7414 = vmatprep.subr.bf16.mxu0 %v9588_v29  ;;  %v9672_v29 = vld [vmem:[%s14268_s1 + $0x14e4] ss:$8 sps:$4 sm:$0xff]  }
 0x102   :  { %6716 = vmatmul.mubr.bf16.vlgmr.msra.gmra.mrb[0].mxu1 %v7989_v40  ;;  %v9675_v40 = vld [vmem:[%s14268_s1 + $0x4f4] ss:$8 sps:$4 sm:$0xff]  }
 0x103   :  { %7404 = vmatmul.mubr.bf16.vlgmr.msra.gmra.mrb[0].mxu0 %v8021_v41  ;;  %6727 = vmatpush1.bf16.msra.mxu1 %v9583_v30  ;;  %v9667_v30 = vld [vmem:[%s14268_s1 + $0x4e0] ss:$8 sps:$4 sm:$0xff]   ;;  %v9678_v41 = vld [vmem:[%s14268_s1 + $0x14f4] ss:$8 sps:$4 sm:$0xff]  }
 0x104   :  { %7415 = vmatpush1.bf16.msra.mxu0 %v9586_v37  ;;  %6728 = vmatprep.subr.bf16.mxu1 %v9591_v44  ;;  %v9670_v37 = vld [vmem:[%s14268_s1 + $0x14e0] ss:$8 sps:$4 sm:$0xff]   ;;  %v9673_v44 = vld [vmem:[%s14268_s1 + $0x4f0] ss:$8 sps:$4 sm:$0xff]  }
 0x105   :  { %7416 = vmatprep.subr.bf16.mxu0 %v9594_v28  ;;  %6758 = vmatprep.mubr.bf16.mxu1 %v7992_v31  ;;  %v9676_v28 = vld [vmem:[%s14268_s1 + $0x14f0] ss:$8 sps:$4 sm:$0xff]   ;;  %v9681_v31 = vld [vmem:[%s14268_s1 + $0x504] ss:$8 sps:$4 sm:$0xff]  }
 0x106   :  { %7446 = vmatprep.mubr.bf16.mxu0 %v8024_v34  ;;  %v9684_v34 = vld [vmem:[%s14268_s1 + $0x1504] ss:$8 sps:$4 sm:$0xff]  }
 0x107   :  { %6729 = vmatpush1.bf16.msra.mxu1 %v9589_v35  ;;  %v11844_v35 = vld [vmem:[%s14269_s0 + $0x28] sm:$0xff] }
 0x108   :  { %7417 = vmatpush1.bf16.msra.mxu0 %v9592_v45  ;;  %6730 = vmatprep.subr.bf16.mxu1 %v9597_v46  ;;  %v11849_v45 = vld [vmem:[%s14269_s0 + $0x128] sm:$0xff] }
 0x109   :  { %7418 = vmatprep.subr.bf16.mxu0 %v9600_v47  ;;  %v11854_v46 = vld [vmem:[%s14269_s0 + $0xa8] sm:$0xff] }
 0x10a   :  { %v11859_v47 = vld [vmem:[%s14269_s0 + $0x1a8] sm:$0xff] }
 0x10b   :  { %6731 = vmatpush1.bf16.msra.mxu1 %v9595_v48  ;;  %v7991_v48 = vcombine.low %v11630_v38, %v11635_v39  ;;  %v9690_v38 = vld [vmem:[%s14268_s1 + $0x1514] ss:$8 sps:$4 sm:$0xff]   ;;  %v7994_v39 = vcombine.high %v11844_v35, %v11849_v45 }
 0x10c   :  { %7419 = vmatpush1.bf16.msra.mxu0 %v9598_v49  ;;  %6732 = vmatprep.subr.bf16.mxu1 %v9603_v50  ;;  %v8023_v49 = vcombine.low %v11644_v42, %v11649_v43  ;;  %v9679_v50 = vld [vmem:[%s14268_s1 + $0x500] ss:$8 sps:$4 sm:$0xff]   ;;  %v8026_v42 = vcombine.high %v11854_v46, %v11859_v47  ;;  %v9685_v43 = vld [vmem:[%s14268_s1 + $0x510] ss:$8 sps:$4 sm:$0xff]  }
 0x10d   :  { %7420 = vmatprep.subr.bf16.mxu0 %v9606_v51  ;;  %v9682_v51 = vld [vmem:[%s14268_s1 + $0x1500] ss:$8 sps:$4 sm:$0xff]  }
 0x10f   :  { %6733 = vmatpush1.bf16.msra.mxu1 %v9601_v52  ;;  %v9687_v52 = vld [vmem:[%s14268_s1 + $0x514] ss:$8 sps:$4 sm:$0xff]  }
 0x110   :  { %7421 = vmatpush1.bf16.msra.mxu0 %v9604_v53  ;;  %6734 = vmatprep.subr.bf16.mxu1 %v9609_v54  ;;  %v9688_v53 = vld [vmem:[%s14268_s1 + $0x1510] ss:$8 sps:$4 sm:$0xff]   ;;  %v9693_v54 = vld [vmem:[%s14268_s1 + $0x524] ss:$8 sps:$4 sm:$0xff]  }
 0x111   :  { %7422 = vmatprep.subr.bf16.mxu0 %v9612_v55  ;;  %v9696_v55 = vld [vmem:[%s14268_s1 + $0x1524] ss:$8 sps:$4 sm:$0xff]  }
 0x113   :  { %6735 = vmatpush1.bf16.msra.mxu1 %v9607_v56  ;;  %v9691_v56 = vld [vmem:[%s14268_s1 + $0x520] ss:$8 sps:$4 sm:$0xff]  }
 0x114   :  { %7423 = vmatpush1.bf16.msra.mxu0 %v9610_v57  ;;  %6736 = vmatprep.subr.bf16.mxu1 %v9615_v58  ;;  %v9694_v57 = vld [vmem:[%s14268_s1 + $0x1520] ss:$8 sps:$4 sm:$0xff]   ;;  %v9699_v58 = vld [vmem:[%s14268_s1 + $0x534] ss:$8 sps:$4 sm:$0xff]  }
 0x115   :  { %7424 = vmatprep.subr.bf16.mxu0 %v9618_v59  ;;  %v9702_v59 = vld [vmem:[%s14268_s1 + $0x1534] ss:$8 sps:$4 sm:$0xff]  }
 0x117   :  { %6737 = vmatpush1.bf16.msra.mxu1 %v9613_v60  ;;  %v9697_v60 = vld [vmem:[%s14268_s1 + $0x530] ss:$8 sps:$4 sm:$0xff]  }
 0x118   :  { %7425 = vmatpush1.bf16.msra.mxu0 %v9616_v61  ;;  %6738 = vmatprep.subr.bf16.mxu1 %v9621_v62  ;;  %v9700_v61 = vld [vmem:[%s14268_s1 + $0x1530] ss:$8 sps:$4 sm:$0xff]   ;;  %v9705_v62 = vld [vmem:[%s14268_s1 + $0x544] ss:$8 sps:$4 sm:$0xff]  }
 0x119   :  { %7426 = vmatprep.subr.bf16.mxu0 %v9624_v63  ;;  %v9708_v63 = vld [vmem:[%s14268_s1 + $0x1544] ss:$8 sps:$4 sm:$0xff]  }
 0x11b   :  { %6739 = vmatpush1.bf16.msra.mxu1 %v9619_v0  ;;  %v9703_v0 = vld [vmem:[%s14268_s1 + $0x540] ss:$8 sps:$4 sm:$0xff]  }
 0x11c   :  { %7427 = vmatpush1.bf16.msra.mxu0 %v9622_v1  ;;  %6740 = vmatprep.subr.bf16.mxu1 %v9627_v2  ;;  %v9706_v1 = vld [vmem:[%s14268_s1 + $0x1540] ss:$8 sps:$4 sm:$0xff]   ;;  %v9711_v2 = vld [vmem:[%s14268_s1 + $0x554] ss:$8 sps:$4 sm:$0xff]  }
 0x11d   :  { %7428 = vmatprep.subr.bf16.mxu0 %v9630_v3  ;;  %v9714_v3 = vld [vmem:[%s14268_s1 + $0x1554] ss:$8 sps:$4 sm:$0xff]  }
 0x11f   :  { %6741 = vmatpush1.bf16.msra.mxu1 %v9625_v4  ;;  %v9709_v4 = vld [vmem:[%s14268_s1 + $0x550] ss:$8 sps:$4 sm:$0xff]  }
 0x120   :  { %7429 = vmatpush1.bf16.msra.mxu0 %v9628_v5  ;;  %6742 = vmatprep.subr.bf16.mxu1 %v9633_v6  ;;  %v9712_v5 = vld [vmem:[%s14268_s1 + $0x1550] ss:$8 sps:$4 sm:$0xff]   ;;  %v9717_v6 = vld [vmem:[%s14268_s1 + $0x564] ss:$8 sps:$4 sm:$0xff]  }
 0x121   :  { %7430 = vmatprep.subr.bf16.mxu0 %v9636_v7  ;;  %v9720_v7 = vld [vmem:[%s14268_s1 + $0x1564] ss:$8 sps:$4 sm:$0xff]  }
 0x123   :  { %6743 = vmatpush1.bf16.msra.mxu1 %v9631_v8  ;;  %v9715_v8 = vld [vmem:[%s14268_s1 + $0x560] ss:$8 sps:$4 sm:$0xff]  }
 0x124   :  { %7431 = vmatpush1.bf16.msra.mxu0 %v9634_v9  ;;  %6744 = vmatprep.subr.bf16.mxu1 %v9639_v10  ;;  %v9718_v9 = vld [vmem:[%s14268_s1 + $0x1560] ss:$8 sps:$4 sm:$0xff]   ;;  %v9723_v10 = vld [vmem:[%s14268_s1 + $0x574] ss:$8 sps:$4 sm:$0xff]  }
 0x125   :  { %7432 = vmatprep.subr.bf16.mxu0 %v9642_v11  ;;  %v9726_v11 = vld [vmem:[%s14268_s1 + $0x1574] ss:$8 sps:$4 sm:$0xff]  }
 0x127   :  { %6745 = vmatpush1.bf16.msra.mxu1 %v9637_v12  ;;  %v9721_v12 = vld [vmem:[%s14268_s1 + $0x570] ss:$8 sps:$4 sm:$0xff]  }
 0x128   :  { %7433 = vmatpush1.bf16.msra.mxu0 %v9640_v13  ;;  %6746 = vmatprep.subr.bf16.mxu1 %v9645_v14  ;;  %v9724_v13 = vld [vmem:[%s14268_s1 + $0x1570] ss:$8 sps:$4 sm:$0xff]   ;;  %v9729_v14 = vld [vmem:[%s14268_s1 + $0x584] ss:$8 sps:$4 sm:$0xff]  }
 0x129   :  { %7434 = vmatprep.subr.bf16.mxu0 %v9648_v15  ;;  %v9732_v15 = vld [vmem:[%s14268_s1 + $0x1584] ss:$8 sps:$4 sm:$0xff]  }
 0x12b   :  { %6747 = vmatpush1.bf16.msra.mxu1 %v9643_v16  ;;  %v9727_v16 = vld [vmem:[%s14268_s1 + $0x580] ss:$8 sps:$4 sm:$0xff]  }
 0x12c   :  { %7435 = vmatpush1.bf16.msra.mxu0 %v9646_v17  ;;  %6748 = vmatprep.subr.bf16.mxu1 %v9651_v18  ;;  %v9730_v17 = vld [vmem:[%s14268_s1 + $0x1580] ss:$8 sps:$4 sm:$0xff]   ;;  %v9735_v18 = vld [vmem:[%s14268_s1 + $0x594] ss:$8 sps:$4 sm:$0xff]  }
 0x12d   :  { %7436 = vmatprep.subr.bf16.mxu0 %v9654_v19  ;;  %v9738_v19 = vld [vmem:[%s14268_s1 + $0x1594] ss:$8 sps:$4 sm:$0xff]  }
 0x12f   :  { %6749 = vmatpush1.bf16.msra.mxu1 %v9649_v20  ;;  %v9733_v20 = vld [vmem:[%s14268_s1 + $0x590] ss:$8 sps:$4 sm:$0xff]  }
 0x130   :  { %7437 = vmatpush1.bf16.msra.mxu0 %v9652_v21  ;;  %6750 = vmatprep.subr.bf16.mxu1 %v9657_v22  ;;  %v9736_v21 = vld [vmem:[%s14268_s1 + $0x1590] ss:$8 sps:$4 sm:$0xff]   ;;  %v9741_v22 = vld [vmem:[%s14268_s1 + $0x5a4] ss:$8 sps:$4 sm:$0xff]  }
 0x131   :  { %7438 = vmatprep.subr.bf16.mxu0 %v9660_v23  ;;  %v9744_v23 = vld [vmem:[%s14268_s1 + $0x15a4] ss:$8 sps:$4 sm:$0xff]  }
 0x133   :  { %6751 = vmatpush1.bf16.msra.mxu1 %v9655_v26  ;;  %v9739_v26 = vld [vmem:[%s14268_s1 + $0x5a0] ss:$8 sps:$4 sm:$0xff]  }
 0x134   :  { %7439 = vmatpush1.bf16.msra.mxu0 %v9658_v27  ;;  %6752 = vmatprep.subr.bf16.mxu1 %v9663_v32  ;;  %v9742_v27 = vld [vmem:[%s14268_s1 + $0x15a0] ss:$8 sps:$4 sm:$0xff]   ;;  %v9747_v32 = vld [vmem:[%s14268_s1 + $0x5b4] ss:$8 sps:$4 sm:$0xff]  }
 0x135   :  { %7440 = vmatprep.subr.bf16.mxu0 %v9666_v33  ;;  %v9750_v33 = vld [vmem:[%s14268_s1 + $0x15b4] ss:$8 sps:$4 sm:$0xff]  }
 0x137   :  { %6753 = vmatpush1.bf16.msra.mxu1 %v9661_v36  ;;  %v9745_v36 = vld [vmem:[%s14268_s1 + $0x5b0] ss:$8 sps:$4 sm:$0xff]  }
 0x138   :  { %7441 = vmatpush1.bf16.msra.mxu0 %v9664_v24  ;;  %6754 = vmatprep.subr.bf16.mxu1 %v9669_v25  ;;  %v9748_v24 = vld [vmem:[%s14268_s1 + $0x15b0] ss:$8 sps:$4 sm:$0xff]   ;;  %v9753_v25 = vld [vmem:[%s14268_s1 + $0x5c4] ss:$8 sps:$4 sm:$0xff]  }
 0x139   :  { %7442 = vmatprep.subr.bf16.mxu0 %v9672_v29  ;;  %v9756_v29 = vld [vmem:[%s14268_s1 + $0x15c4] ss:$8 sps:$4 sm:$0xff]  }
 0x13b   :  { %6755 = vmatpush1.bf16.msra.mxu1 %v9667_v30  ;;  %v9751_v30 = vld [vmem:[%s14268_s1 + $0x5c0] ss:$8 sps:$4 sm:$0xff]  }
 0x13c   :  { %7443 = vmatpush1.bf16.msra.mxu0 %v9670_v37  ;;  %6756 = vmatprep.subr.bf16.mxu1 %v9675_v40  ;;  %v9754_v37 = vld [vmem:[%s14268_s1 + $0x15c0] ss:$8 sps:$4 sm:$0xff]   ;;  %v9759_v40 = vld [vmem:[%s14268_s1 + $0x5d4] ss:$8 sps:$4 sm:$0xff]  }
 0x13d   :  { %7444 = vmatprep.subr.bf16.mxu0 %v9678_v41  ;;  %v9762_v41 = vld [vmem:[%s14268_s1 + $0x15d4] ss:$8 sps:$4 sm:$0xff]  }
 0x13f   :  { %6757 = vmatpush1.bf16.msra.mxu1 %v9673_v44  ;;  %v9757_v44 = vld [vmem:[%s14268_s1 + $0x5d0] ss:$8 sps:$4 sm:$0xff]  }
 0x140   :  { %7445 = vmatpush1.bf16.msra.mxu0 %v9676_v28  ;;  %6769 = vmatprep.subr.bf16.mxu1 %v9681_v31  ;;  %v9760_v28 = vld [vmem:[%s14268_s1 + $0x15d0] ss:$8 sps:$4 sm:$0xff]   ;;  %v9765_v31 = vld [vmem:[%s14268_s1 + $0x5e4] ss:$8 sps:$4 sm:$0xff]  }
 0x141   :  { %7457 = vmatprep.subr.bf16.mxu0 %v9684_v34  ;;  %v9768_v34 = vld [vmem:[%s14268_s1 + $0x15e4] ss:$8 sps:$4 sm:$0xff]  }
 0x142   :  { %6759 = vmatmul.mubr.bf16.vlgmr.msra.gmra.mrb[0].mxu1 %v7991_v48  ;;  %v9763_v48 = vld [vmem:[%s14268_s1 + $0x5e0] ss:$8 sps:$4 sm:$0xff]  }
 0x143   :  { %7447 = vmatmul.mubr.bf16.vlgmr.msra.gmra.mrb[0].mxu0 %v8023_v49  ;;  %6770 = vmatpush1.bf16.msra.mxu1 %v9679_v50  ;;  %v9766_v49 = vld [vmem:[%s14268_s1 + $0x15e0] ss:$8 sps:$4 sm:$0xff]   ;;  %v9771_v50 = vld [vmem:[%s14268_s1 + $0x5f4] ss:$8 sps:$4 sm:$0xff]  }
 0x144   :  { %7458 = vmatpush1.bf16.msra.mxu0 %v9682_v51  ;;  %6771 = vmatprep.subr.bf16.mxu1 %v9687_v52  ;;  %v9774_v51 = vld [vmem:[%s14268_s1 + $0x15f4] ss:$8 sps:$4 sm:$0xff]   ;;  %v9769_v52 = vld [vmem:[%s14268_s1 + $0x5f0] ss:$8 sps:$4 sm:$0xff]  }
 0x145   :  { %7459 = vmatprep.subr.bf16.mxu0 %v9690_v38  ;;  %6801 = vmatprep.mubr.bf16.mxu1 %v7994_v39  ;;  %v9772_v38 = vld [vmem:[%s14268_s1 + $0x15f0] ss:$8 sps:$4 sm:$0xff]   ;;  %v9777_v39 = vld [vmem:[%s14268_s1 + $0x604] ss:$8 sps:$4 sm:$0xff]  }
 0x146   :  { %7489 = vmatprep.mubr.bf16.mxu0 %v8026_v42  ;;  %v9780_v42 = vld [vmem:[%s14268_s1 + $0x1604] ss:$8 sps:$4 sm:$0xff]  }
 0x147   :  { %6772 = vmatpush1.bf16.msra.mxu1 %v9685_v43  ;;  %v12064_v43 = vld [vmem:[%s14269_s0 + $0x30] sm:$0xff] }
 0x148   :  { %7460 = vmatpush1.bf16.msra.mxu0 %v9688_v53  ;;  %6773 = vmatprep.subr.bf16.mxu1 %v9693_v54  ;;  %v12069_v53 = vld [vmem:[%s14269_s0 + $0x130] sm:$0xff] }
 0x149   :  { %7461 = vmatprep.subr.bf16.mxu0 %v9696_v55  ;;  %v12074_v54 = vld [vmem:[%s14269_s0 + $0xb0] sm:$0xff] }
 0x14a   :  { %v12079_v55 = vld [vmem:[%s14269_s0 + $0x1b0] sm:$0xff] }
 0x14b   :  { %6774 = vmatpush1.bf16.msra.mxu1 %v9691_v56  ;;  %v7993_v56 = vcombine.low %v11844_v35, %v11849_v45  ;;  %v9786_v35 = vld [vmem:[%s14268_s1 + $0x1614] ss:$8 sps:$4 sm:$0xff]   ;;  %v7996_v45 = vcombine.high %v12064_v43, %v12069_v53 }
 0x14c   :  { %7462 = vmatpush1.bf16.msra.mxu0 %v9694_v57  ;;  %6775 = vmatprep.subr.bf16.mxu1 %v9699_v58  ;;  %v8025_v57 = vcombine.low %v11854_v46, %v11859_v47  ;;  %v9775_v58 = vld [vmem:[%s14268_s1 + $0x600] ss:$8 sps:$4 sm:$0xff]   ;;  %v8028_v46 = vcombine.high %v12074_v54, %v12079_v55  ;;  %v9781_v47 = vld [vmem:[%s14268_s1 + $0x610] ss:$8 sps:$4 sm:$0xff]  }
 0x14d   :  { %7463 = vmatprep.subr.bf16.mxu0 %v9702_v59  ;;  %v9778_v59 = vld [vmem:[%s14268_s1 + $0x1600] ss:$8 sps:$4 sm:$0xff]  }
 0x14f   :  { %6776 = vmatpush1.bf16.msra.mxu1 %v9697_v60  ;;  %v9783_v60 = vld [vmem:[%s14268_s1 + $0x614] ss:$8 sps:$4 sm:$0xff]  }
 0x150   :  { %7464 = vmatpush1.bf16.msra.mxu0 %v9700_v61  ;;  %6777 = vmatprep.subr.bf16.mxu1 %v9705_v62  ;;  %v9784_v61 = vld [vmem:[%s14268_s1 + $0x1610] ss:$8 sps:$4 sm:$0xff]   ;;  %v9789_v62 = vld [vmem:[%s14268_s1 + $0x624] ss:$8 sps:$4 sm:$0xff]  }
 0x151   :  { %7465 = vmatprep.subr.bf16.mxu0 %v9708_v63  ;;  %v9792_v63 = vld [vmem:[%s14268_s1 + $0x1624] ss:$8 sps:$4 sm:$0xff]  }
 0x153   :  { %6778 = vmatpush1.bf16.msra.mxu1 %v9703_v0  ;;  %v9787_v0 = vld [vmem:[%s14268_s1 + $0x620] ss:$8 sps:$4 sm:$0xff]  }
 0x154   :  { %7466 = vmatpush1.bf16.msra.mxu0 %v9706_v1  ;;  %6779 = vmatprep.subr.bf16.mxu1 %v9711_v2  ;;  %v9790_v1 = vld [vmem:[%s14268_s1 + $0x1620] ss:$8 sps:$4 sm:$0xff]   ;;  %v9795_v2 = vld [vmem:[%s14268_s1 + $0x634] ss:$8 sps:$4 sm:$0xff]  }
 0x155   :  { %7467 = vmatprep.subr.bf16.mxu0 %v9714_v3  ;;  %v9798_v3 = vld [vmem:[%s14268_s1 + $0x1634] ss:$8 sps:$4 sm:$0xff]  }
 0x157   :  { %6780 = vmatpush1.bf16.msra.mxu1 %v9709_v4  ;;  %v9793_v4 = vld [vmem:[%s14268_s1 + $0x630] ss:$8 sps:$4 sm:$0xff]  }
 0x158   :  { %7468 = vmatpush1.bf16.msra.mxu0 %v9712_v5  ;;  %6781 = vmatprep.subr.bf16.mxu1 %v9717_v6  ;;  %v9796_v5 = vld [vmem:[%s14268_s1 + $0x1630] ss:$8 sps:$4 sm:$0xff]   ;;  %v9801_v6 = vld [vmem:[%s14268_s1 + $0x644] ss:$8 sps:$4 sm:$0xff]  }
 0x159   :  { %7469 = vmatprep.subr.bf16.mxu0 %v9720_v7  ;;  %v9804_v7 = vld [vmem:[%s14268_s1 + $0x1644] ss:$8 sps:$4 sm:$0xff]  }
 0x15b   :  { %6782 = vmatpush1.bf16.msra.mxu1 %v9715_v8  ;;  %v9799_v8 = vld [vmem:[%s14268_s1 + $0x640] ss:$8 sps:$4 sm:$0xff]  }
 0x15c   :  { %7470 = vmatpush1.bf16.msra.mxu0 %v9718_v9  ;;  %6783 = vmatprep.subr.bf16.mxu1 %v9723_v10  ;;  %v9802_v9 = vld [vmem:[%s14268_s1 + $0x1640] ss:$8 sps:$4 sm:$0xff]   ;;  %v9807_v10 = vld [vmem:[%s14268_s1 + $0x654] ss:$8 sps:$4 sm:$0xff]  }
 0x15d   :  { %7471 = vmatprep.subr.bf16.mxu0 %v9726_v11  ;;  %v9810_v11 = vld [vmem:[%s14268_s1 + $0x1654] ss:$8 sps:$4 sm:$0xff]  }
 0x15f   :  { %6784 = vmatpush1.bf16.msra.mxu1 %v9721_v12  ;;  %v9805_v12 = vld [vmem:[%s14268_s1 + $0x650] ss:$8 sps:$4 sm:$0xff]  }
 0x160   :  { %7472 = vmatpush1.bf16.msra.mxu0 %v9724_v13  ;;  %6785 = vmatprep.subr.bf16.mxu1 %v9729_v14  ;;  %v9808_v13 = vld [vmem:[%s14268_s1 + $0x1650] ss:$8 sps:$4 sm:$0xff]   ;;  %v9813_v14 = vld [vmem:[%s14268_s1 + $0x664] ss:$8 sps:$4 sm:$0xff]  }
 0x161   :  { %7473 = vmatprep.subr.bf16.mxu0 %v9732_v15  ;;  %v9816_v15 = vld [vmem:[%s14268_s1 + $0x1664] ss:$8 sps:$4 sm:$0xff]  }
 0x163   :  { %6786 = vmatpush1.bf16.msra.mxu1 %v9727_v16  ;;  %v9811_v16 = vld [vmem:[%s14268_s1 + $0x660] ss:$8 sps:$4 sm:$0xff]  }
 0x164   :  { %7474 = vmatpush1.bf16.msra.mxu0 %v9730_v17  ;;  %6787 = vmatprep.subr.bf16.mxu1 %v9735_v18  ;;  %v9814_v17 = vld [vmem:[%s14268_s1 + $0x1660] ss:$8 sps:$4 sm:$0xff]   ;;  %v9819_v18 = vld [vmem:[%s14268_s1 + $0x674] ss:$8 sps:$4 sm:$0xff]  }
 0x165   :  { %7475 = vmatprep.subr.bf16.mxu0 %v9738_v19  ;;  %v9822_v19 = vld [vmem:[%s14268_s1 + $0x1674] ss:$8 sps:$4 sm:$0xff]  }
 0x167   :  { %6788 = vmatpush1.bf16.msra.mxu1 %v9733_v20  ;;  %v9817_v20 = vld [vmem:[%s14268_s1 + $0x670] ss:$8 sps:$4 sm:$0xff]  }
 0x168   :  { %7476 = vmatpush1.bf16.msra.mxu0 %v9736_v21  ;;  %6789 = vmatprep.subr.bf16.mxu1 %v9741_v22  ;;  %v9820_v21 = vld [vmem:[%s14268_s1 + $0x1670] ss:$8 sps:$4 sm:$0xff]   ;;  %v9825_v22 = vld [vmem:[%s14268_s1 + $0x684] ss:$8 sps:$4 sm:$0xff]  }
 0x169   :  { %7477 = vmatprep.subr.bf16.mxu0 %v9744_v23  ;;  %v9828_v23 = vld [vmem:[%s14268_s1 + $0x1684] ss:$8 sps:$4 sm:$0xff]  }
 0x16b   :  { %6790 = vmatpush1.bf16.msra.mxu1 %v9739_v26  ;;  %v9823_v26 = vld [vmem:[%s14268_s1 + $0x680] ss:$8 sps:$4 sm:$0xff]  }
 0x16c   :  { %7478 = vmatpush1.bf16.msra.mxu0 %v9742_v27  ;;  %6791 = vmatprep.subr.bf16.mxu1 %v9747_v32  ;;  %v9826_v27 = vld [vmem:[%s14268_s1 + $0x1680] ss:$8 sps:$4 sm:$0xff]   ;;  %v9831_v32 = vld [vmem:[%s14268_s1 + $0x694] ss:$8 sps:$4 sm:$0xff]  }
 0x16d   :  { %7479 = vmatprep.subr.bf16.mxu0 %v9750_v33  ;;  %v9834_v33 = vld [vmem:[%s14268_s1 + $0x1694] ss:$8 sps:$4 sm:$0xff]  }
 0x16f   :  { %6792 = vmatpush1.bf16.msra.mxu1 %v9745_v36  ;;  %v9829_v36 = vld [vmem:[%s14268_s1 + $0x690] ss:$8 sps:$4 sm:$0xff]  }
 0x170   :  { %7480 = vmatpush1.bf16.msra.mxu0 %v9748_v24  ;;  %6793 = vmatprep.subr.bf16.mxu1 %v9753_v25  ;;  %v9832_v24 = vld [vmem:[%s14268_s1 + $0x1690] ss:$8 sps:$4 sm:$0xff]   ;;  %v9837_v25 = vld [vmem:[%s14268_s1 + $0x6a4] ss:$8 sps:$4 sm:$0xff]  }
 0x171   :  { %7481 = vmatprep.subr.bf16.mxu0 %v9756_v29  ;;  %v9840_v29 = vld [vmem:[%s14268_s1 + $0x16a4] ss:$8 sps:$4 sm:$0xff]  }
 0x173   :  { %6794 = vmatpush1.bf16.msra.mxu1 %v9751_v30  ;;  %v9835_v30 = vld [vmem:[%s14268_s1 + $0x6a0] ss:$8 sps:$4 sm:$0xff]  }
 0x174   :  { %7482 = vmatpush1.bf16.msra.mxu0 %v9754_v37  ;;  %6795 = vmatprep.subr.bf16.mxu1 %v9759_v40  ;;  %v9838_v37 = vld [vmem:[%s14268_s1 + $0x16a0] ss:$8 sps:$4 sm:$0xff]   ;;  %v9843_v40 = vld [vmem:[%s14268_s1 + $0x6b4] ss:$8 sps:$4 sm:$0xff]  }
 0x175   :  { %7483 = vmatprep.subr.bf16.mxu0 %v9762_v41  ;;  %v9846_v41 = vld [vmem:[%s14268_s1 + $0x16b4] ss:$8 sps:$4 sm:$0xff]  }
 0x177   :  { %6796 = vmatpush1.bf16.msra.mxu1 %v9757_v44  ;;  %v9841_v44 = vld [vmem:[%s14268_s1 + $0x6b0] ss:$8 sps:$4 sm:$0xff]  }
 0x178   :  { %7484 = vmatpush1.bf16.msra.mxu0 %v9760_v28  ;;  %6797 = vmatprep.subr.bf16.mxu1 %v9765_v31  ;;  %v9844_v28 = vld [vmem:[%s14268_s1 + $0x16b0] ss:$8 sps:$4 sm:$0xff]   ;;  %v9849_v31 = vld [vmem:[%s14268_s1 + $0x6c4] ss:$8 sps:$4 sm:$0xff]  }
 0x179   :  { %7485 = vmatprep.subr.bf16.mxu0 %v9768_v34  ;;  %v9852_v34 = vld [vmem:[%s14268_s1 + $0x16c4] ss:$8 sps:$4 sm:$0xff]  }
 0x17b   :  { %6798 = vmatpush1.bf16.msra.mxu1 %v9763_v48  ;;  %v9847_v48 = vld [vmem:[%s14268_s1 + $0x6c0] ss:$8 sps:$4 sm:$0xff]  }
 0x17c   :  { %7486 = vmatpush1.bf16.msra.mxu0 %v9766_v49  ;;  %6799 = vmatprep.subr.bf16.mxu1 %v9771_v50  ;;  %v9850_v49 = vld [vmem:[%s14268_s1 + $0x16c0] ss:$8 sps:$4 sm:$0xff]   ;;  %v9855_v50 = vld [vmem:[%s14268_s1 + $0x6d4] ss:$8 sps:$4 sm:$0xff]  }
 0x17d   :  { %7487 = vmatprep.subr.bf16.mxu0 %v9774_v51  ;;  %v9858_v51 = vld [vmem:[%s14268_s1 + $0x16d4] ss:$8 sps:$4 sm:$0xff]  }
 0x17f   :  { %6800 = vmatpush1.bf16.msra.mxu1 %v9769_v52  ;;  %v9853_v52 = vld [vmem:[%s14268_s1 + $0x6d0] ss:$8 sps:$4 sm:$0xff]  }
 0x180   :  { %7488 = vmatpush1.bf16.msra.mxu0 %v9772_v38  ;;  %6812 = vmatprep.subr.bf16.mxu1 %v9777_v39  ;;  %v9856_v38 = vld [vmem:[%s14268_s1 + $0x16d0] ss:$8 sps:$4 sm:$0xff]   ;;  %v9861_v39 = vld [vmem:[%s14268_s1 + $0x6e4] ss:$8 sps:$4 sm:$0xff]  }
 0x181   :  { %7500 = vmatprep.subr.bf16.mxu0 %v9780_v42  ;;  %v9864_v42 = vld [vmem:[%s14268_s1 + $0x16e4] ss:$8 sps:$4 sm:$0xff]  }
 0x182   :  { %6802 = vmatmul.mubr.bf16.vlgmr.msra.gmra.mrb[0].mxu1 %v7993_v56  ;;  %v9859_v56 = vld [vmem:[%s14268_s1 + $0x6e0] ss:$8 sps:$4 sm:$0xff]  }
 0x183   :  { %7490 = vmatmul.mubr.bf16.vlgmr.msra.gmra.mrb[0].mxu0 %v8025_v57  ;;  %6813 = vmatpush1.bf16.msra.mxu1 %v9775_v58  ;;  %v9862_v57 = vld [vmem:[%s14268_s1 + $0x16e0] ss:$8 sps:$4 sm:$0xff]   ;;  %v9867_v58 = vld [vmem:[%s14268_s1 + $0x6f4] ss:$8 sps:$4 sm:$0xff]  }
 0x184   :  { %7501 = vmatpush1.bf16.msra.mxu0 %v9778_v59  ;;  %6814 = vmatprep.subr.bf16.mxu1 %v9783_v60  ;;  %v9870_v59 = vld [vmem:[%s14268_s1 + $0x16f4] ss:$8 sps:$4 sm:$0xff]   ;;  %v9865_v60 = vld [vmem:[%s14268_s1 + $0x6f0] ss:$8 sps:$4 sm:$0xff]  }
 0x185   :  { %7502 = vmatprep.subr.bf16.mxu0 %v9786_v35  ;;  %6844 = vmatprep.mubr.bf16.mxu1 %v7996_v45  ;;  %v9868_v35 = vld [vmem:[%s14268_s1 + $0x16f0] ss:$8 sps:$4 sm:$0xff]   ;;  %v9873_v45 = vld [vmem:[%s14268_s1 + $0x704] ss:$8 sps:$4 sm:$0xff]  }
 0x186   :  { %7532 = vmatprep.mubr.bf16.mxu0 %v8028_v46  ;;  %v9876_v46 = vld [vmem:[%s14268_s1 + $0x1704] ss:$8 sps:$4 sm:$0xff]  }
 0x187   :  { %6815 = vmatpush1.bf16.msra.mxu1 %v9781_v47  ;;  %v12284_v47 = vld [vmem:[%s14269_s0 + $0x38] sm:$0xff] }
 0x188   :  { %7503 = vmatpush1.bf16.msra.mxu0 %v9784_v61  ;;  %6816 = vmatprep.subr.bf16.mxu1 %v9789_v62  ;;  %v12289_v61 = vld [vmem:[%s14269_s0 + $0x138] sm:$0xff] }
 0x189   :  { %7504 = vmatprep.subr.bf16.mxu0 %v9792_v63  ;;  %v12294_v62 = vld [vmem:[%s14269_s0 + $0xb8] sm:$0xff] }
 0x18a   :  { %v12299_v63 = vld [vmem:[%s14269_s0 + $0x1b8] sm:$0xff] }
 0x18b   :  { %6817 = vmatpush1.bf16.msra.mxu1 %v9787_v0  ;;  %v7995_v0 = vcombine.low %v12064_v43, %v12069_v53  ;;  %v9882_v43 = vld [vmem:[%s14268_s1 + $0x1714] ss:$8 sps:$4 sm:$0xff]   ;;  %v7998_v53 = vcombine.high %v12284_v47, %v12289_v61 }
 0x18c   :  { %7505 = vmatpush1.bf16.msra.mxu0 %v9790_v1  ;;  %6818 = vmatprep.subr.bf16.mxu1 %v9795_v2  ;;  %v8027_v1 = vcombine.low %v12074_v54, %v12079_v55  ;;  %v9871_v2 = vld [vmem:[%s14268_s1 + $0x700] ss:$8 sps:$4 sm:$0xff]   ;;  %v8030_v54 = vcombine.high %v12294_v62, %v12299_v63  ;;  %v9877_v55 = vld [vmem:[%s14268_s1 + $0x710] ss:$8 sps:$4 sm:$0xff]  }
 0x18d   :  { %7506 = vmatprep.subr.bf16.mxu0 %v9798_v3  ;;  %v9874_v3 = vld [vmem:[%s14268_s1 + $0x1700] ss:$8 sps:$4 sm:$0xff]  }
 0x18f   :  { %6819 = vmatpush1.bf16.msra.mxu1 %v9793_v4  ;;  %v9879_v4 = vld [vmem:[%s14268_s1 + $0x714] ss:$8 sps:$4 sm:$0xff]  }
 0x190   :  { %7507 = vmatpush1.bf16.msra.mxu0 %v9796_v5  ;;  %6820 = vmatprep.subr.bf16.mxu1 %v9801_v6  ;;  %v9880_v5 = vld [vmem:[%s14268_s1 + $0x1710] ss:$8 sps:$4 sm:$0xff]   ;;  %v9885_v6 = vld [vmem:[%s14268_s1 + $0x724] ss:$8 sps:$4 sm:$0xff]  }
 0x191   :  { %7508 = vmatprep.subr.bf16.mxu0 %v9804_v7  ;;  %v9888_v7 = vld [vmem:[%s14268_s1 + $0x1724] ss:$8 sps:$4 sm:$0xff]  }
 0x193   :  { %6821 = vmatpush1.bf16.msra.mxu1 %v9799_v8  ;;  %v9883_v8 = vld [vmem:[%s14268_s1 + $0x720] ss:$8 sps:$4 sm:$0xff]  }
 0x194   :  { %7509 = vmatpush1.bf16.msra.mxu0 %v9802_v9  ;;  %6822 = vmatprep.subr.bf16.mxu1 %v9807_v10  ;;  %v9886_v9 = vld [vmem:[%s14268_s1 + $0x1720] ss:$8 sps:$4 sm:$0xff]   ;;  %v9891_v10 = vld [vmem:[%s14268_s1 + $0x734] ss:$8 sps:$4 sm:$0xff]  }
 0x195   :  { %7510 = vmatprep.subr.bf16.mxu0 %v9810_v11  ;;  %v9894_v11 = vld [vmem:[%s14268_s1 + $0x1734] ss:$8 sps:$4 sm:$0xff]  }
 0x197   :  { %6823 = vmatpush1.bf16.msra.mxu1 %v9805_v12  ;;  %v9889_v12 = vld [vmem:[%s14268_s1 + $0x730] ss:$8 sps:$4 sm:$0xff]  }
 0x198   :  { %7511 = vmatpush1.bf16.msra.mxu0 %v9808_v13  ;;  %6824 = vmatprep.subr.bf16.mxu1 %v9813_v14  ;;  %v9892_v13 = vld [vmem:[%s14268_s1 + $0x1730] ss:$8 sps:$4 sm:$0xff]   ;;  %v9897_v14 = vld [vmem:[%s14268_s1 + $0x744] ss:$8 sps:$4 sm:$0xff]  }
 0x199   :  { %7512 = vmatprep.subr.bf16.mxu0 %v9816_v15  ;;  %v9900_v15 = vld [vmem:[%s14268_s1 + $0x1744] ss:$8 sps:$4 sm:$0xff]  }
 0x19b   :  { %6825 = vmatpush1.bf16.msra.mxu1 %v9811_v16  ;;  %v9895_v16 = vld [vmem:[%s14268_s1 + $0x740] ss:$8 sps:$4 sm:$0xff]  }
 0x19c   :  { %7513 = vmatpush1.bf16.msra.mxu0 %v9814_v17  ;;  %6826 = vmatprep.subr.bf16.mxu1 %v9819_v18  ;;  %v9898_v17 = vld [vmem:[%s14268_s1 + $0x1740] ss:$8 sps:$4 sm:$0xff]   ;;  %v9903_v18 = vld [vmem:[%s14268_s1 + $0x754] ss:$8 sps:$4 sm:$0xff]  }
 0x19d   :  { %7514 = vmatprep.subr.bf16.mxu0 %v9822_v19  ;;  %v9906_v19 = vld [vmem:[%s14268_s1 + $0x1754] ss:$8 sps:$4 sm:$0xff]  }
 0x19f   :  { %6827 = vmatpush1.bf16.msra.mxu1 %v9817_v20  ;;  %v9901_v20 = vld [vmem:[%s14268_s1 + $0x750] ss:$8 sps:$4 sm:$0xff]  }
 0x1a0   :  { %7515 = vmatpush1.bf16.msra.mxu0 %v9820_v21  ;;  %6828 = vmatprep.subr.bf16.mxu1 %v9825_v22  ;;  %v9904_v21 = vld [vmem:[%s14268_s1 + $0x1750] ss:$8 sps:$4 sm:$0xff]   ;;  %v9909_v22 = vld [vmem:[%s14268_s1 + $0x764] ss:$8 sps:$4 sm:$0xff]  }
 0x1a1   :  { %7516 = vmatprep.subr.bf16.mxu0 %v9828_v23  ;;  %v9912_v23 = vld [vmem:[%s14268_s1 + $0x1764] ss:$8 sps:$4 sm:$0xff]  }
 0x1a3   :  { %6829 = vmatpush1.bf16.msra.mxu1 %v9823_v26  ;;  %v9907_v26 = vld [vmem:[%s14268_s1 + $0x760] ss:$8 sps:$4 sm:$0xff]  }
 0x1a4   :  { %7517 = vmatpush1.bf16.msra.mxu0 %v9826_v27  ;;  %6830 = vmatprep.subr.bf16.mxu1 %v9831_v32  ;;  %v9910_v27 = vld [vmem:[%s14268_s1 + $0x1760] ss:$8 sps:$4 sm:$0xff]   ;;  %v9915_v32 = vld [vmem:[%s14268_s1 + $0x774] ss:$8 sps:$4 sm:$0xff]  }
 0x1a5   :  { %7518 = vmatprep.subr.bf16.mxu0 %v9834_v33  ;;  %v9918_v33 = vld [vmem:[%s14268_s1 + $0x1774] ss:$8 sps:$4 sm:$0xff]  }
 0x1a7   :  { %6831 = vmatpush1.bf16.msra.mxu1 %v9829_v36  ;;  %v9913_v36 = vld [vmem:[%s14268_s1 + $0x770] ss:$8 sps:$4 sm:$0xff]  }
 0x1a8   :  { %7519 = vmatpush1.bf16.msra.mxu0 %v9832_v24  ;;  %6832 = vmatprep.subr.bf16.mxu1 %v9837_v25  ;;  %v9916_v24 = vld [vmem:[%s14268_s1 + $0x1770] ss:$8 sps:$4 sm:$0xff]   ;;  %v9921_v25 = vld [vmem:[%s14268_s1 + $0x784] ss:$8 sps:$4 sm:$0xff]  }
 0x1a9   :  { %7520 = vmatprep.subr.bf16.mxu0 %v9840_v29  ;;  %v9924_v29 = vld [vmem:[%s14268_s1 + $0x1784] ss:$8 sps:$4 sm:$0xff]  }
 0x1ab   :  { %6833 = vmatpush1.bf16.msra.mxu1 %v9835_v30  ;;  %v9919_v30 = vld [vmem:[%s14268_s1 + $0x780] ss:$8 sps:$4 sm:$0xff]  }
 0x1ac   :  { %7521 = vmatpush1.bf16.msra.mxu0 %v9838_v37  ;;  %6834 = vmatprep.subr.bf16.mxu1 %v9843_v40  ;;  %v9922_v37 = vld [vmem:[%s14268_s1 + $0x1780] ss:$8 sps:$4 sm:$0xff]   ;;  %v9927_v40 = vld [vmem:[%s14268_s1 + $0x794] ss:$8 sps:$4 sm:$0xff]  }
 0x1ad   :  { %7522 = vmatprep.subr.bf16.mxu0 %v9846_v41  ;;  %v9930_v41 = vld [vmem:[%s14268_s1 + $0x1794] ss:$8 sps:$4 sm:$0xff]  }
 0x1af   :  { %6835 = vmatpush1.bf16.msra.mxu1 %v9841_v44  ;;  %v9925_v44 = vld [vmem:[%s14268_s1 + $0x790] ss:$8 sps:$4 sm:$0xff]  }
 0x1b0   :  { %7523 = vmatpush1.bf16.msra.mxu0 %v9844_v28  ;;  %6836 = vmatprep.subr.bf16.mxu1 %v9849_v31  ;;  %v9928_v28 = vld [vmem:[%s14268_s1 + $0x1790] ss:$8 sps:$4 sm:$0xff]   ;;  %v9933_v31 = vld [vmem:[%s14268_s1 + $0x7a4] ss:$8 sps:$4 sm:$0xff]  }
 0x1b1   :  { %7524 = vmatprep.subr.bf16.mxu0 %v9852_v34  ;;  %v9936_v34 = vld [vmem:[%s14268_s1 + $0x17a4] ss:$8 sps:$4 sm:$0xff]  }
 0x1b3   :  { %6837 = vmatpush1.bf16.msra.mxu1 %v9847_v48  ;;  %v9931_v48 = vld [vmem:[%s14268_s1 + $0x7a0] ss:$8 sps:$4 sm:$0xff]  }
 0x1b4   :  { %7525 = vmatpush1.bf16.msra.mxu0 %v9850_v49  ;;  %6838 = vmatprep.subr.bf16.mxu1 %v9855_v50  ;;  %v9934_v49 = vld [vmem:[%s14268_s1 + $0x17a0] ss:$8 sps:$4 sm:$0xff]   ;;  %v9939_v50 = vld [vmem:[%s14268_s1 + $0x7b4] ss:$8 sps:$4 sm:$0xff]  }
 0x1b5   :  { %7526 = vmatprep.subr.bf16.mxu0 %v9858_v51  ;;  %v9942_v51 = vld [vmem:[%s14268_s1 + $0x17b4] ss:$8 sps:$4 sm:$0xff]  }
 0x1b7   :  { %6839 = vmatpush1.bf16.msra.mxu1 %v9853_v52  ;;  %v9937_v52 = vld [vmem:[%s14268_s1 + $0x7b0] ss:$8 sps:$4 sm:$0xff]  }
 0x1b8   :  { %7527 = vmatpush1.bf16.msra.mxu0 %v9856_v38  ;;  %6840 = vmatprep.subr.bf16.mxu1 %v9861_v39  ;;  %v9940_v38 = vld [vmem:[%s14268_s1 + $0x17b0] ss:$8 sps:$4 sm:$0xff]   ;;  %v9945_v39 = vld [vmem:[%s14268_s1 + $0x7c4] ss:$8 sps:$4 sm:$0xff]  }
 0x1b9   :  { %7528 = vmatprep.subr.bf16.mxu0 %v9864_v42  ;;  %v9948_v42 = vld [vmem:[%s14268_s1 + $0x17c4] ss:$8 sps:$4 sm:$0xff]  }
 0x1bb   :  { %6841 = vmatpush1.bf16.msra.mxu1 %v9859_v56  ;;  %v9943_v56 = vld [vmem:[%s14268_s1 + $0x7c0] ss:$8 sps:$4 sm:$0xff]  }
 0x1bc   :  { %7529 = vmatpush1.bf16.msra.mxu0 %v9862_v57  ;;  %6842 = vmatprep.subr.bf16.mxu1 %v9867_v58  ;;  %v9946_v57 = vld [vmem:[%s14268_s1 + $0x17c0] ss:$8 sps:$4 sm:$0xff]   ;;  %v9951_v58 = vld [vmem:[%s14268_s1 + $0x7d4] ss:$8 sps:$4 sm:$0xff]  }
 0x1bd   :  { %7530 = vmatprep.subr.bf16.mxu0 %v9870_v59  ;;  %v9954_v59 = vld [vmem:[%s14268_s1 + $0x17d4] ss:$8 sps:$4 sm:$0xff]  }
 0x1bf   :  { %6843 = vmatpush1.bf16.msra.mxu1 %v9865_v60  ;;  %v9949_v60 = vld [vmem:[%s14268_s1 + $0x7d0] ss:$8 sps:$4 sm:$0xff]  }
 0x1c0   :  { %7531 = vmatpush1.bf16.msra.mxu0 %v9868_v35  ;;  %6855 = vmatprep.subr.bf16.mxu1 %v9873_v45  ;;  %v9952_v35 = vld [vmem:[%s14268_s1 + $0x17d0] ss:$8 sps:$4 sm:$0xff]   ;;  %v9957_v45 = vld [vmem:[%s14268_s1 + $0x7e4] ss:$8 sps:$4 sm:$0xff]  }
 0x1c1   :  { %7543 = vmatprep.subr.bf16.mxu0 %v9876_v46  ;;  %v9960_v46 = vld [vmem:[%s14268_s1 + $0x17e4] ss:$8 sps:$4 sm:$0xff]  }
 0x1c2   :  { %6845 = vmatmul.mubr.bf16.vlgmr.msra.gmra.mrb[0].mxu1 %v7995_v0  ;;  %v9955_v0 = vld [vmem:[%s14268_s1 + $0x7e0] ss:$8 sps:$4 sm:$0xff]  }
 0x1c3   :  { %7533 = vmatmul.mubr.bf16.vlgmr.msra.gmra.mrb[0].mxu0 %v8027_v1  ;;  %6856 = vmatpush1.bf16.msra.mxu1 %v9871_v2  ;;  %v9958_v1 = vld [vmem:[%s14268_s1 + $0x17e0] ss:$8 sps:$4 sm:$0xff]   ;;  %v9963_v2 = vld [vmem:[%s14268_s1 + $0x7f4] ss:$8 sps:$4 sm:$0xff]  }
 0x1c4   :  { %7544 = vmatpush1.bf16.msra.mxu0 %v9874_v3  ;;  %6857 = vmatprep.subr.bf16.mxu1 %v9879_v4  ;;  %v9966_v3 = vld [vmem:[%s14268_s1 + $0x17f4] ss:$8 sps:$4 sm:$0xff]   ;;  %v9961_v4 = vld [vmem:[%s14268_s1 + $0x7f0] ss:$8 sps:$4 sm:$0xff]  }
 0x1c5   :  { %7545 = vmatprep.subr.bf16.mxu0 %v9882_v43  ;;  %6887 = vmatprep.mubr.bf16.mxu1 %v7998_v53  ;;  %v9964_v43 = vld [vmem:[%s14268_s1 + $0x17f0] ss:$8 sps:$4 sm:$0xff]   ;;  %v9969_v53 = vld [vmem:[%s14268_s1 + $0x804] ss:$8 sps:$4 sm:$0xff]  }
 0x1c6   :  { %7575 = vmatprep.mubr.bf16.mxu0 %v8030_v54  ;;  %v9972_v54 = vld [vmem:[%s14268_s1 + $0x1804] ss:$8 sps:$4 sm:$0xff]  }
 0x1c7   :  { %6858 = vmatpush1.bf16.msra.mxu1 %v9877_v55  ;;  %v12504_v55 = vld [vmem:[%s14269_s0 + $0x40] sm:$0xff] }
 0x1c8   :  { %7546 = vmatpush1.bf16.msra.mxu0 %v9880_v5  ;;  %6859 = vmatprep.subr.bf16.mxu1 %v9885_v6  ;;  %v12509_v5 = vld [vmem:[%s14269_s0 + $0x140] sm:$0xff] }
 0x1c9   :  { %7547 = vmatprep.subr.bf16.mxu0 %v9888_v7  ;;  %v12514_v6 = vld [vmem:[%s14269_s0 + $0xc0] sm:$0xff] }
 0x1ca   :  { %v12519_v7 = vld [vmem:[%s14269_s0 + $0x1c0] sm:$0xff] }
 0x1cb   :  { %6860 = vmatpush1.bf16.msra.mxu1 %v9883_v8  ;;  %v7997_v8 = vcombine.low %v12284_v47, %v12289_v61  ;;  %v9978_v47 = vld [vmem:[%s14268_s1 + $0x1814] ss:$8 sps:$4 sm:$0xff]   ;;  %v8000_v61 = vcombine.high %v12504_v55, %v12509_v5 }
 0x1cc   :  { %7548 = vmatpush1.bf16.msra.mxu0 %v9886_v9  ;;  %6861 = vmatprep.subr.bf16.mxu1 %v9891_v10  ;;  %v8029_v9 = vcombine.low %v12294_v62, %v12299_v63  ;;  %v9967_v10 = vld [vmem:[%s14268_s1 + $0x800] ss:$8 sps:$4 sm:$0xff]   ;;  %v8032_v62 = vcombine.high %v12514_v6, %v12519_v7  ;;  %v9973_v63 = vld [vmem:[%s14268_s1 + $0x810] ss:$8 sps:$4 sm:$0xff]  }
 0x1cd   :  { %7549 = vmatprep.subr.bf16.mxu0 %v9894_v11  ;;  %v9970_v11 = vld [vmem:[%s14268_s1 + $0x1800] ss:$8 sps:$4 sm:$0xff]  }
 0x1cf   :  { %6862 = vmatpush1.bf16.msra.mxu1 %v9889_v12  ;;  %v9975_v12 = vld [vmem:[%s14268_s1 + $0x814] ss:$8 sps:$4 sm:$0xff]  }
 0x1d0   :  { %7550 = vmatpush1.bf16.msra.mxu0 %v9892_v13  ;;  %6863 = vmatprep.subr.bf16.mxu1 %v9897_v14  ;;  %v9976_v13 = vld [vmem:[%s14268_s1 + $0x1810] ss:$8 sps:$4 sm:$0xff]   ;;  %v9981_v14 = vld [vmem:[%s14268_s1 + $0x824] ss:$8 sps:$4 sm:$0xff]  }
 0x1d1   :  { %7551 = vmatprep.subr.bf16.mxu0 %v9900_v15  ;;  %v9984_v15 = vld [vmem:[%s14268_s1 + $0x1824] ss:$8 sps:$4 sm:$0xff]  }
 0x1d3   :  { %6864 = vmatpush1.bf16.msra.mxu1 %v9895_v16  ;;  %v9979_v16 = vld [vmem:[%s14268_s1 + $0x820] ss:$8 sps:$4 sm:$0xff]  }
 0x1d4   :  { %7552 = vmatpush1.bf16.msra.mxu0 %v9898_v17  ;;  %6865 = vmatprep.subr.bf16.mxu1 %v9903_v18  ;;  %v9982_v17 = vld [vmem:[%s14268_s1 + $0x1820] ss:$8 sps:$4 sm:$0xff]   ;;  %v9987_v18 = vld [vmem:[%s14268_s1 + $0x834] ss:$8 sps:$4 sm:$0xff]  }
 0x1d5   :  { %7553 = vmatprep.subr.bf16.mxu0 %v9906_v19  ;;  %v9990_v19 = vld [vmem:[%s14268_s1 + $0x1834] ss:$8 sps:$4 sm:$0xff]  }
 0x1d7   :  { %6866 = vmatpush1.bf16.msra.mxu1 %v9901_v20  ;;  %v9985_v20 = vld [vmem:[%s14268_s1 + $0x830] ss:$8 sps:$4 sm:$0xff]  }
 0x1d8   :  { %7554 = vmatpush1.bf16.msra.mxu0 %v9904_v21  ;;  %6867 = vmatprep.subr.bf16.mxu1 %v9909_v22  ;;  %v9988_v21 = vld [vmem:[%s14268_s1 + $0x1830] ss:$8 sps:$4 sm:$0xff]   ;;  %v9993_v22 = vld [vmem:[%s14268_s1 + $0x844] ss:$8 sps:$4 sm:$0xff]  }
 0x1d9   :  { %7555 = vmatprep.subr.bf16.mxu0 %v9912_v23  ;;  %v9996_v23 = vld [vmem:[%s14268_s1 + $0x1844] ss:$8 sps:$4 sm:$0xff]  }
 0x1db   :  { %6868 = vmatpush1.bf16.msra.mxu1 %v9907_v26  ;;  %v9991_v26 = vld [vmem:[%s14268_s1 + $0x840] ss:$8 sps:$4 sm:$0xff]  }
 0x1dc   :  { %7556 = vmatpush1.bf16.msra.mxu0 %v9910_v27  ;;  %6869 = vmatprep.subr.bf16.mxu1 %v9915_v32  ;;  %v9994_v27 = vld [vmem:[%s14268_s1 + $0x1840] ss:$8 sps:$4 sm:$0xff]   ;;  %v9999_v32 = vld [vmem:[%s14268_s1 + $0x854] ss:$8 sps:$4 sm:$0xff]  }
 0x1dd   :  { %7557 = vmatprep.subr.bf16.mxu0 %v9918_v33  ;;  %v10002_v33 = vld [vmem:[%s14268_s1 + $0x1854] ss:$8 sps:$4 sm:$0xff]  }
 0x1df   :  { %6870 = vmatpush1.bf16.msra.mxu1 %v9913_v36  ;;  %v9997_v36 = vld [vmem:[%s14268_s1 + $0x850] ss:$8 sps:$4 sm:$0xff]  }
 0x1e0   :  { %7558 = vmatpush1.bf16.msra.mxu0 %v9916_v24  ;;  %6871 = vmatprep.subr.bf16.mxu1 %v9921_v25  ;;  %v10000_v24 = vld [vmem:[%s14268_s1 + $0x1850] ss:$8 sps:$4 sm:$0xff]   ;;  %v10005_v25 = vld [vmem:[%s14268_s1 + $0x864] ss:$8 sps:$4 sm:$0xff]  }
 0x1e1   :  { %7559 = vmatprep.subr.bf16.mxu0 %v9924_v29  ;;  %v10008_v29 = vld [vmem:[%s14268_s1 + $0x1864] ss:$8 sps:$4 sm:$0xff]  }
 0x1e3   :  { %6872 = vmatpush1.bf16.msra.mxu1 %v9919_v30  ;;  %v10003_v30 = vld [vmem:[%s14268_s1 + $0x860] ss:$8 sps:$4 sm:$0xff]  }
 0x1e4   :  { %7560 = vmatpush1.bf16.msra.mxu0 %v9922_v37  ;;  %6873 = vmatprep.subr.bf16.mxu1 %v9927_v40  ;;  %v10006_v37 = vld [vmem:[%s14268_s1 + $0x1860] ss:$8 sps:$4 sm:$0xff]   ;;  %v10011_v40 = vld [vmem:[%s14268_s1 + $0x874] ss:$8 sps:$4 sm:$0xff]  }
 0x1e5   :  { %7561 = vmatprep.subr.bf16.mxu0 %v9930_v41  ;;  %v10014_v41 = vld [vmem:[%s14268_s1 + $0x1874] ss:$8 sps:$4 sm:$0xff]  }
 0x1e7   :  { %6874 = vmatpush1.bf16.msra.mxu1 %v9925_v44  ;;  %v10009_v44 = vld [vmem:[%s14268_s1 + $0x870] ss:$8 sps:$4 sm:$0xff]  }
 0x1e8   :  { %7562 = vmatpush1.bf16.msra.mxu0 %v9928_v28  ;;  %6875 = vmatprep.subr.bf16.mxu1 %v9933_v31  ;;  %v10012_v28 = vld [vmem:[%s14268_s1 + $0x1870] ss:$8 sps:$4 sm:$0xff]   ;;  %v10017_v31 = vld [vmem:[%s14268_s1 + $0x884] ss:$8 sps:$4 sm:$0xff]  }
 0x1e9   :  { %7563 = vmatprep.subr.bf16.mxu0 %v9936_v34  ;;  %v10020_v34 = vld [vmem:[%s14268_s1 + $0x1884] ss:$8 sps:$4 sm:$0xff]  }
 0x1eb   :  { %6876 = vmatpush1.bf16.msra.mxu1 %v9931_v48  ;;  %v10015_v48 = vld [vmem:[%s14268_s1 + $0x880] ss:$8 sps:$4 sm:$0xff]  }
 0x1ec   :  { %7564 = vmatpush1.bf16.msra.mxu0 %v9934_v49  ;;  %6877 = vmatprep.subr.bf16.mxu1 %v9939_v50  ;;  %v10018_v49 = vld [vmem:[%s14268_s1 + $0x1880] ss:$8 sps:$4 sm:$0xff]   ;;  %v10023_v50 = vld [vmem:[%s14268_s1 + $0x894] ss:$8 sps:$4 sm:$0xff]  }
 0x1ed   :  { %7565 = vmatprep.subr.bf16.mxu0 %v9942_v51  ;;  %v10026_v51 = vld [vmem:[%s14268_s1 + $0x1894] ss:$8 sps:$4 sm:$0xff]  }
 0x1ef   :  { %6878 = vmatpush1.bf16.msra.mxu1 %v9937_v52  ;;  %v10021_v52 = vld [vmem:[%s14268_s1 + $0x890] ss:$8 sps:$4 sm:$0xff]  }
 0x1f0   :  { %7566 = vmatpush1.bf16.msra.mxu0 %v9940_v38  ;;  %6879 = vmatprep.subr.bf16.mxu1 %v9945_v39  ;;  %v10024_v38 = vld [vmem:[%s14268_s1 + $0x1890] ss:$8 sps:$4 sm:$0xff]   ;;  %v10029_v39 = vld [vmem:[%s14268_s1 + $0x8a4] ss:$8 sps:$4 sm:$0xff]  }
 0x1f1   :  { %7567 = vmatprep.subr.bf16.mxu0 %v9948_v42  ;;  %v10032_v42 = vld [vmem:[%s14268_s1 + $0x18a4] ss:$8 sps:$4 sm:$0xff]  }
 0x1f3   :  { %6880 = vmatpush1.bf16.msra.mxu1 %v9943_v56  ;;  %v10027_v56 = vld [vmem:[%s14268_s1 + $0x8a0] ss:$8 sps:$4 sm:$0xff]  }
 0x1f4   :  { %7568 = vmatpush1.bf16.msra.mxu0 %v9946_v57  ;;  %6881 = vmatprep.subr.bf16.mxu1 %v9951_v58  ;;  %v10030_v57 = vld [vmem:[%s14268_s1 + $0x18a0] ss:$8 sps:$4 sm:$0xff]   ;;  %v10035_v58 = vld [vmem:[%s14268_s1 + $0x8b4] ss:$8 sps:$4 sm:$0xff]  }
 0x1f5   :  { %7569 = vmatprep.subr.bf16.mxu0 %v9954_v59  ;;  %v10038_v59 = vld [vmem:[%s14268_s1 + $0x18b4] ss:$8 sps:$4 sm:$0xff]  }
 0x1f7   :  { %6882 = vmatpush1.bf16.msra.mxu1 %v9949_v60  ;;  %v10033_v60 = vld [vmem:[%s14268_s1 + $0x8b0] ss:$8 sps:$4 sm:$0xff]  }
 0x1f8   :  { %7570 = vmatpush1.bf16.msra.mxu0 %v9952_v35  ;;  %6883 = vmatprep.subr.bf16.mxu1 %v9957_v45  ;;  %v10036_v35 = vld [vmem:[%s14268_s1 + $0x18b0] ss:$8 sps:$4 sm:$0xff]   ;;  %v10041_v45 = vld [vmem:[%s14268_s1 + $0x8c4] ss:$8 sps:$4 sm:$0xff]  }
 0x1f9   :  { %7571 = vmatprep.subr.bf16.mxu0 %v9960_v46  ;;  %v10044_v46 = vld [vmem:[%s14268_s1 + $0x18c4] ss:$8 sps:$4 sm:$0xff]  }
 0x1fb   :  { %6884 = vmatpush1.bf16.msra.mxu1 %v9955_v0  ;;  %v10039_v0 = vld [vmem:[%s14268_s1 + $0x8c0] ss:$8 sps:$4 sm:$0xff]  }
 0x1fc   :  { %7572 = vmatpush1.bf16.msra.mxu0 %v9958_v1  ;;  %6885 = vmatprep.subr.bf16.mxu1 %v9963_v2  ;;  %v10042_v1 = vld [vmem:[%s14268_s1 + $0x18c0] ss:$8 sps:$4 sm:$0xff]   ;;  %v10047_v2 = vld [vmem:[%s14268_s1 + $0x8d4] ss:$8 sps:$4 sm:$0xff]  }
 0x1fd   :  { %7573 = vmatprep.subr.bf16.mxu0 %v9966_v3  ;;  %v10050_v3 = vld [vmem:[%s14268_s1 + $0x18d4] ss:$8 sps:$4 sm:$0xff]  }
 0x1ff   :  { %6886 = vmatpush1.bf16.msra.mxu1 %v9961_v4  ;;  %v10045_v4 = vld [vmem:[%s14268_s1 + $0x8d0] ss:$8 sps:$4 sm:$0xff]  }
 0x200   :  { %7574 = vmatpush1.bf16.msra.mxu0 %v9964_v43  ;;  %6898 = vmatprep.subr.bf16.mxu1 %v9969_v53  ;;  %v10048_v43 = vld [vmem:[%s14268_s1 + $0x18d0] ss:$8 sps:$4 sm:$0xff]   ;;  %v10053_v53 = vld [vmem:[%s14268_s1 + $0x8e4] ss:$8 sps:$4 sm:$0xff]  }
 0x201   :  { %7586 = vmatprep.subr.bf16.mxu0 %v9972_v54  ;;  %v10056_v54 = vld [vmem:[%s14268_s1 + $0x18e4] ss:$8 sps:$4 sm:$0xff]  }
 0x202   :  { %6888 = vmatmul.mubr.bf16.vlgmr.msra.gmra.mrb[0].mxu1 %v7997_v8  ;;  %v10051_v8 = vld [vmem:[%s14268_s1 + $0x8e0] ss:$8 sps:$4 sm:$0xff]  }
 0x203   :  { %7576 = vmatmul.mubr.bf16.vlgmr.msra.gmra.mrb[0].mxu0 %v8029_v9  ;;  %6899 = vmatpush1.bf16.msra.mxu1 %v9967_v10  ;;  %v10054_v9 = vld [vmem:[%s14268_s1 + $0x18e0] ss:$8 sps:$4 sm:$0xff]   ;;  %v10059_v10 = vld [vmem:[%s14268_s1 + $0x8f4] ss:$8 sps:$4 sm:$0xff]  }
 0x204   :  { %7587 = vmatpush1.bf16.msra.mxu0 %v9970_v11  ;;  %6900 = vmatprep.subr.bf16.mxu1 %v9975_v12  ;;  %v10062_v11 = vld [vmem:[%s14268_s1 + $0x18f4] ss:$8 sps:$4 sm:$0xff]   ;;  %v10057_v12 = vld [vmem:[%s14268_s1 + $0x8f0] ss:$8 sps:$4 sm:$0xff]  }
 0x205   :  { %7588 = vmatprep.subr.bf16.mxu0 %v9978_v47  ;;  %6930 = vmatprep.mubr.bf16.mxu1 %v8000_v61  ;;  %v10060_v47 = vld [vmem:[%s14268_s1 + $0x18f0] ss:$8 sps:$4 sm:$0xff]   ;;  %v10065_v61 = vld [vmem:[%s14268_s1 + $0x904] ss:$8 sps:$4 sm:$0xff]  }
 0x206   :  { %7618 = vmatprep.mubr.bf16.mxu0 %v8032_v62  ;;  %v10068_v62 = vld [vmem:[%s14268_s1 + $0x1904] ss:$8 sps:$4 sm:$0xff]  }
 0x207   :  { %6901 = vmatpush1.bf16.msra.mxu1 %v9973_v63  ;;  %v12724_v63 = vld [vmem:[%s14269_s0 + $0x48] sm:$0xff] }
 0x208   :  { %7589 = vmatpush1.bf16.msra.mxu0 %v9976_v13  ;;  %6902 = vmatprep.subr.bf16.mxu1 %v9981_v14  ;;  %v12729_v13 = vld [vmem:[%s14269_s0 + $0x148] sm:$0xff] }
 0x209   :  { %7590 = vmatprep.subr.bf16.mxu0 %v9984_v15  ;;  %v12734_v14 = vld [vmem:[%s14269_s0 + $0xc8] sm:$0xff] }
 0x20a   :  { %v12739_v15 = vld [vmem:[%s14269_s0 + $0x1c8] sm:$0xff] }
 0x20b   :  { %6903 = vmatpush1.bf16.msra.mxu1 %v9979_v16  ;;  %v7999_v16 = vcombine.low %v12504_v55, %v12509_v5  ;;  %v10074_v55 = vld [vmem:[%s14268_s1 + $0x1914] ss:$8 sps:$4 sm:$0xff]   ;;  %v8002_v5 = vcombine.high %v12724_v63, %v12729_v13 }
 0x20c   :  { %7591 = vmatpush1.bf16.msra.mxu0 %v9982_v17  ;;  %6904 = vmatprep.subr.bf16.mxu1 %v9987_v18  ;;  %v8031_v17 = vcombine.low %v12514_v6, %v12519_v7  ;;  %v10063_v18 = vld [vmem:[%s14268_s1 + $0x900] ss:$8 sps:$4 sm:$0xff]   ;;  %v8034_v6 = vcombine.high %v12734_v14, %v12739_v15  ;;  %v10069_v7 = vld [vmem:[%s14268_s1 + $0x910] ss:$8 sps:$4 sm:$0xff]  }
 0x20d   :  { %7592 = vmatprep.subr.bf16.mxu0 %v9990_v19  ;;  %v10066_v19 = vld [vmem:[%s14268_s1 + $0x1900] ss:$8 sps:$4 sm:$0xff]  }
 0x20f   :  { %6905 = vmatpush1.bf16.msra.mxu1 %v9985_v20  ;;  %v10071_v20 = vld [vmem:[%s14268_s1 + $0x914] ss:$8 sps:$4 sm:$0xff]  }
 0x210   :  { %7593 = vmatpush1.bf16.msra.mxu0 %v9988_v21  ;;  %6906 = vmatprep.subr.bf16.mxu1 %v9993_v22  ;;  %v10072_v21 = vld [vmem:[%s14268_s1 + $0x1910] ss:$8 sps:$4 sm:$0xff]   ;;  %v10077_v22 = vld [vmem:[%s14268_s1 + $0x924] ss:$8 sps:$4 sm:$0xff]  }
 0x211   :  { %7594 = vmatprep.subr.bf16.mxu0 %v9996_v23  ;;  %v10080_v23 = vld [vmem:[%s14268_s1 + $0x1924] ss:$8 sps:$4 sm:$0xff]  }
 0x213   :  { %6907 = vmatpush1.bf16.msra.mxu1 %v9991_v26  ;;  %v10075_v26 = vld [vmem:[%s14268_s1 + $0x920] ss:$8 sps:$4 sm:$0xff]  }
 0x214   :  { %7595 = vmatpush1.bf16.msra.mxu0 %v9994_v27  ;;  %6908 = vmatprep.subr.bf16.mxu1 %v9999_v32  ;;  %v10078_v27 = vld [vmem:[%s14268_s1 + $0x1920] ss:$8 sps:$4 sm:$0xff]   ;;  %v10083_v32 = vld [vmem:[%s14268_s1 + $0x934] ss:$8 sps:$4 sm:$0xff]  }
 0x215   :  { %7596 = vmatprep.subr.bf16.mxu0 %v10002_v33  ;;  %v10086_v33 = vld [vmem:[%s14268_s1 + $0x1934] ss:$8 sps:$4 sm:$0xff]  }
 0x217   :  { %6909 = vmatpush1.bf16.msra.mxu1 %v9997_v36  ;;  %v10081_v36 = vld [vmem:[%s14268_s1 + $0x930] ss:$8 sps:$4 sm:$0xff]  }
 0x218   :  { %7597 = vmatpush1.bf16.msra.mxu0 %v10000_v24  ;;  %6910 = vmatprep.subr.bf16.mxu1 %v10005_v25  ;;  %v10084_v24 = vld [vmem:[%s14268_s1 + $0x1930] ss:$8 sps:$4 sm:$0xff]   ;;  %v10089_v25 = vld [vmem:[%s14268_s1 + $0x944] ss:$8 sps:$4 sm:$0xff]  }
 0x219   :  { %7598 = vmatprep.subr.bf16.mxu0 %v10008_v29  ;;  %v10092_v29 = vld [vmem:[%s14268_s1 + $0x1944] ss:$8 sps:$4 sm:$0xff]  }
 0x21b   :  { %6911 = vmatpush1.bf16.msra.mxu1 %v10003_v30  ;;  %v10087_v30 = vld [vmem:[%s14268_s1 + $0x940] ss:$8 sps:$4 sm:$0xff]  }
 0x21c   :  { %7599 = vmatpush1.bf16.msra.mxu0 %v10006_v37  ;;  %6912 = vmatprep.subr.bf16.mxu1 %v10011_v40  ;;  %v10090_v37 = vld [vmem:[%s14268_s1 + $0x1940] ss:$8 sps:$4 sm:$0xff]   ;;  %v10095_v40 = vld [vmem:[%s14268_s1 + $0x954] ss:$8 sps:$4 sm:$0xff]  }
 0x21d   :  { %7600 = vmatprep.subr.bf16.mxu0 %v10014_v41  ;;  %v10098_v41 = vld [vmem:[%s14268_s1 + $0x1954] ss:$8 sps:$4 sm:$0xff]  }
 0x21f   :  { %6913 = vmatpush1.bf16.msra.mxu1 %v10009_v44  ;;  %v10093_v44 = vld [vmem:[%s14268_s1 + $0x950] ss:$8 sps:$4 sm:$0xff]  }
 0x220   :  { %7601 = vmatpush1.bf16.msra.mxu0 %v10012_v28  ;;  %6914 = vmatprep.subr.bf16.mxu1 %v10017_v31  ;;  %v10096_v28 = vld [vmem:[%s14268_s1 + $0x1950] ss:$8 sps:$4 sm:$0xff]   ;;  %v10101_v31 = vld [vmem:[%s14268_s1 + $0x964] ss:$8 sps:$4 sm:$0xff]  }
 0x221   :  { %7602 = vmatprep.subr.bf16.mxu0 %v10020_v34  ;;  %v10104_v34 = vld [vmem:[%s14268_s1 + $0x1964] ss:$8 sps:$4 sm:$0xff]  }
 0x223   :  { %6915 = vmatpush1.bf16.msra.mxu1 %v10015_v48  ;;  %v10099_v48 = vld [vmem:[%s14268_s1 + $0x960] ss:$8 sps:$4 sm:$0xff]  }
 0x224   :  { %7603 = vmatpush1.bf16.msra.mxu0 %v10018_v49  ;;  %6916 = vmatprep.subr.bf16.mxu1 %v10023_v50  ;;  %v10102_v49 = vld [vmem:[%s14268_s1 + $0x1960] ss:$8 sps:$4 sm:$0xff]   ;;  %v10107_v50 = vld [vmem:[%s14268_s1 + $0x974] ss:$8 sps:$4 sm:$0xff]  }
 0x225   :  { %7604 = vmatprep.subr.bf16.mxu0 %v10026_v51  ;;  %v10110_v51 = vld [vmem:[%s14268_s1 + $0x1974] ss:$8 sps:$4 sm:$0xff]  }
 0x227   :  { %6917 = vmatpush1.bf16.msra.mxu1 %v10021_v52  ;;  %v10105_v52 = vld [vmem:[%s14268_s1 + $0x970] ss:$8 sps:$4 sm:$0xff]  }
 0x228   :  { %7605 = vmatpush1.bf16.msra.mxu0 %v10024_v38  ;;  %6918 = vmatprep.subr.bf16.mxu1 %v10029_v39  ;;  %v10108_v38 = vld [vmem:[%s14268_s1 + $0x1970] ss:$8 sps:$4 sm:$0xff]   ;;  %v10113_v39 = vld [vmem:[%s14268_s1 + $0x984] ss:$8 sps:$4 sm:$0xff]  }
 0x229   :  { %7606 = vmatprep.subr.bf16.mxu0 %v10032_v42  ;;  %v10116_v42 = vld [vmem:[%s14268_s1 + $0x1984] ss:$8 sps:$4 sm:$0xff]  }
 0x22b   :  { %6919 = vmatpush1.bf16.msra.mxu1 %v10027_v56  ;;  %v10111_v56 = vld [vmem:[%s14268_s1 + $0x980] ss:$8 sps:$4 sm:$0xff]  }
 0x22c   :  { %7607 = vmatpush1.bf16.msra.mxu0 %v10030_v57  ;;  %6920 = vmatprep.subr.bf16.mxu1 %v10035_v58  ;;  %v10114_v57 = vld [vmem:[%s14268_s1 + $0x1980] ss:$8 sps:$4 sm:$0xff]   ;;  %v10119_v58 = vld [vmem:[%s14268_s1 + $0x994] ss:$8 sps:$4 sm:$0xff]  }
 0x22d   :  { %7608 = vmatprep.subr.bf16.mxu0 %v10038_v59  ;;  %v10122_v59 = vld [vmem:[%s14268_s1 + $0x1994] ss:$8 sps:$4 sm:$0xff]  }
 0x22f   :  { %6921 = vmatpush1.bf16.msra.mxu1 %v10033_v60  ;;  %v10117_v60 = vld [vmem:[%s14268_s1 + $0x990] ss:$8 sps:$4 sm:$0xff]  }
 0x230   :  { %7609 = vmatpush1.bf16.msra.mxu0 %v10036_v35  ;;  %6922 = vmatprep.subr.bf16.mxu1 %v10041_v45  ;;  %v10120_v35 = vld [vmem:[%s14268_s1 + $0x1990] ss:$8 sps:$4 sm:$0xff]   ;;  %v10125_v45 = vld [vmem:[%s14268_s1 + $0x9a4] ss:$8 sps:$4 sm:$0xff]  }
 0x231   :  { %7610 = vmatprep.subr.bf16.mxu0 %v10044_v46  ;;  %v10128_v46 = vld [vmem:[%s14268_s1 + $0x19a4] ss:$8 sps:$4 sm:$0xff]  }
 0x233   :  { %6923 = vmatpush1.bf16.msra.mxu1 %v10039_v0  ;;  %v10123_v0 = vld [vmem:[%s14268_s1 + $0x9a0] ss:$8 sps:$4 sm:$0xff]  }
 0x234   :  { %7611 = vmatpush1.bf16.msra.mxu0 %v10042_v1  ;;  %6924 = vmatprep.subr.bf16.mxu1 %v10047_v2  ;;  %v10126_v1 = vld [vmem:[%s14268_s1 + $0x19a0] ss:$8 sps:$4 sm:$0xff]   ;;  %v10131_v2 = vld [vmem:[%s14268_s1 + $0x9b4] ss:$8 sps:$4 sm:$0xff]  }
 0x235   :  { %7612 = vmatprep.subr.bf16.mxu0 %v10050_v3  ;;  %v10134_v3 = vld [vmem:[%s14268_s1 + $0x19b4] ss:$8 sps:$4 sm:$0xff]  }
 0x237   :  { %6925 = vmatpush1.bf16.msra.mxu1 %v10045_v4  ;;  %v10129_v4 = vld [vmem:[%s14268_s1 + $0x9b0] ss:$8 sps:$4 sm:$0xff]  }
 0x238   :  { %7613 = vmatpush1.bf16.msra.mxu0 %v10048_v43  ;;  %6926 = vmatprep.subr.bf16.mxu1 %v10053_v53  ;;  %v10132_v43 = vld [vmem:[%s14268_s1 + $0x19b0] ss:$8 sps:$4 sm:$0xff]   ;;  %v10137_v53 = vld [vmem:[%s14268_s1 + $0x9c4] ss:$8 sps:$4 sm:$0xff]  }
 0x239   :  { %7614 = vmatprep.subr.bf16.mxu0 %v10056_v54  ;;  %v10140_v54 = vld [vmem:[%s14268_s1 + $0x19c4] ss:$8 sps:$4 sm:$0xff]  }
 0x23b   :  { %6927 = vmatpush1.bf16.msra.mxu1 %v10051_v8  ;;  %v10135_v8 = vld [vmem:[%s14268_s1 + $0x9c0] ss:$8 sps:$4 sm:$0xff]  }
 0x23c   :  { %7615 = vmatpush1.bf16.msra.mxu0 %v10054_v9  ;;  %6928 = vmatprep.subr.bf16.mxu1 %v10059_v10  ;;  %v10138_v9 = vld [vmem:[%s14268_s1 + $0x19c0] ss:$8 sps:$4 sm:$0xff]   ;;  %v10143_v10 = vld [vmem:[%s14268_s1 + $0x9d4] ss:$8 sps:$4 sm:$0xff]  }
 0x23d   :  { %7616 = vmatprep.subr.bf16.mxu0 %v10062_v11  ;;  %v10146_v11 = vld [vmem:[%s14268_s1 + $0x19d4] ss:$8 sps:$4 sm:$0xff]  }
 0x23f   :  { %6929 = vmatpush1.bf16.msra.mxu1 %v10057_v12  ;;  %v10141_v12 = vld [vmem:[%s14268_s1 + $0x9d0] ss:$8 sps:$4 sm:$0xff]  }
 0x240   :  { %7617 = vmatpush1.bf16.msra.mxu0 %v10060_v47  ;;  %6941 = vmatprep.subr.bf16.mxu1 %v10065_v61  ;;  %v10144_v47 = vld [vmem:[%s14268_s1 + $0x19d0] ss:$8 sps:$4 sm:$0xff]   ;;  %v10149_v61 = vld [vmem:[%s14268_s1 + $0x9e4] ss:$8 sps:$4 sm:$0xff]  }
 0x241   :  { %7629 = vmatprep.subr.bf16.mxu0 %v10068_v62  ;;  %v10152_v62 = vld [vmem:[%s14268_s1 + $0x19e4] ss:$8 sps:$4 sm:$0xff]  }
 0x242   :  { %6931 = vmatmul.mubr.bf16.vlgmr.msra.gmra.mrb[0].mxu1 %v7999_v16  ;;  %v10147_v16 = vld [vmem:[%s14268_s1 + $0x9e0] ss:$8 sps:$4 sm:$0xff]  }
 0x243   :  { %7619 = vmatmul.mubr.bf16.vlgmr.msra.gmra.mrb[0].mxu0 %v8031_v17  ;;  %6942 = vmatpush1.bf16.msra.mxu1 %v10063_v18  ;;  %v10150_v17 = vld [vmem:[%s14268_s1 + $0x19e0] ss:$8 sps:$4 sm:$0xff]   ;;  %v10155_v18 = vld [vmem:[%s14268_s1 + $0x9f4] ss:$8 sps:$4 sm:$0xff]  }
 0x244   :  { %7630 = vmatpush1.bf16.msra.mxu0 %v10066_v19  ;;  %6943 = vmatprep.subr.bf16.mxu1 %v10071_v20  ;;  %v10158_v19 = vld [vmem:[%s14268_s1 + $0x19f4] ss:$8 sps:$4 sm:$0xff]   ;;  %v10153_v20 = vld [vmem:[%s14268_s1 + $0x9f0] ss:$8 sps:$4 sm:$0xff]  }
 0x245   :  { %7631 = vmatprep.subr.bf16.mxu0 %v10074_v55  ;;  %6973 = vmatprep.mubr.bf16.mxu1 %v8002_v5  ;;  %v10156_v55 = vld [vmem:[%s14268_s1 + $0x19f0] ss:$8 sps:$4 sm:$0xff]   ;;  %v10161_v5 = vld [vmem:[%s14268_s1 + $0xa04] ss:$8 sps:$4 sm:$0xff]  }
 0x246   :  { %7661 = vmatprep.mubr.bf16.mxu0 %v8034_v6  ;;  %v10164_v6 = vld [vmem:[%s14268_s1 + $0x1a04] ss:$8 sps:$4 sm:$0xff]  }
 0x247   :  { %6944 = vmatpush1.bf16.msra.mxu1 %v10069_v7  ;;  %v12944_v7 = vld [vmem:[%s14269_s0 + $0x50] sm:$0xff] }
 0x248   :  { %7632 = vmatpush1.bf16.msra.mxu0 %v10072_v21  ;;  %6945 = vmatprep.subr.bf16.mxu1 %v10077_v22  ;;  %v8001_v21 = vcombine.low %v12724_v63, %v12729_v13  ;;  %v8033_v22 = vcombine.low %v12734_v14, %v12739_v15  ;;  %v10159_v63 = vld [vmem:[%s14268_s1 + $0xa00] ss:$8 sps:$4 sm:$0xff]   ;;  %v10167_v14 = vld [vmem:[%s14268_s1 + $0xa14] ss:$8 sps:$4 sm:$0xff]  }
 0x249   :  { %7633 = vmatprep.subr.bf16.mxu0 %v10080_v23  ;;  %v12953_v23 = vld [vmem:[%s14269_s0 + $0x150] sm:$0xff]  ;;  %v10162_v13 = vld [vmem:[%s14268_s1 + $0x1a00] ss:$8 sps:$4 sm:$0xff]  }
 0x24a   :  { %v10170_v15 = vld [vmem:[%s14268_s1 + $0x1a14] ss:$8 sps:$4 sm:$0xff]  }
 0x24b   :  { %6946 = vmatpush1.bf16.msra.mxu1 %v10075_v26  ;;  %v12958_v26 = vld [vmem:[%s14269_s0 + $0xd0] sm:$0xff] }
 0x24c   :  { %7634 = vmatpush1.bf16.msra.mxu0 %v10078_v27  ;;  %6947 = vmatprep.subr.bf16.mxu1 %v10083_v32  ;;  %v12963_v27 = vld [vmem:[%s14269_s0 + $0x1d0] sm:$0xff]  ;;  %v8004_v32 = vcombine.high %v12944_v7, %v12953_v23 }
 0x24d   :  { %7635 = vmatprep.subr.bf16.mxu0 %v10086_v33  ;;  %v8036_v33 = vcombine.high %v12958_v26, %v12963_v27 }
 0x24f   :  { %6948 = vmatpush1.bf16.msra.mxu1 %v10081_v36  ;;  %v10165_v36 = vld [vmem:[%s14268_s1 + $0xa10] ss:$8 sps:$4 sm:$0xff]  }
 0x250   :  { %7636 = vmatpush1.bf16.msra.mxu0 %v10084_v24  ;;  %6949 = vmatprep.subr.bf16.mxu1 %v10089_v25  ;;  %v10168_v24 = vld [vmem:[%s14268_s1 + $0x1a10] ss:$8 sps:$4 sm:$0xff]   ;;  %v10173_v25 = vld [vmem:[%s14268_s1 + $0xa24] ss:$8 sps:$4 sm:$0xff]  }
 0x251   :  { %7637 = vmatprep.subr.bf16.mxu0 %v10092_v29  ;;  %v10176_v29 = vld [vmem:[%s14268_s1 + $0x1a24] ss:$8 sps:$4 sm:$0xff]  }
 0x253   :  { %6950 = vmatpush1.bf16.msra.mxu1 %v10087_v30  ;;  %v10171_v30 = vld [vmem:[%s14268_s1 + $0xa20] ss:$8 sps:$4 sm:$0xff]  }
 0x254   :  { %7638 = vmatpush1.bf16.msra.mxu0 %v10090_v37  ;;  %6951 = vmatprep.subr.bf16.mxu1 %v10095_v40  ;;  %v10174_v37 = vld [vmem:[%s14268_s1 + $0x1a20] ss:$8 sps:$4 sm:$0xff]   ;;  %v10179_v40 = vld [vmem:[%s14268_s1 + $0xa34] ss:$8 sps:$4 sm:$0xff]  }
 0x255   :  { %7639 = vmatprep.subr.bf16.mxu0 %v10098_v41  ;;  %v10182_v41 = vld [vmem:[%s14268_s1 + $0x1a34] ss:$8 sps:$4 sm:$0xff]  }
 0x257   :  { %6952 = vmatpush1.bf16.msra.mxu1 %v10093_v44  ;;  %v10177_v44 = vld [vmem:[%s14268_s1 + $0xa30] ss:$8 sps:$4 sm:$0xff]  }
 0x258   :  { %7640 = vmatpush1.bf16.msra.mxu0 %v10096_v28  ;;  %6953 = vmatprep.subr.bf16.mxu1 %v10101_v31  ;;  %v10180_v28 = vld [vmem:[%s14268_s1 + $0x1a30] ss:$8 sps:$4 sm:$0xff]   ;;  %v10185_v31 = vld [vmem:[%s14268_s1 + $0xa44] ss:$8 sps:$4 sm:$0xff]  }
 0x259   :  { %7641 = vmatprep.subr.bf16.mxu0 %v10104_v34  ;;  %v10188_v34 = vld [vmem:[%s14268_s1 + $0x1a44] ss:$8 sps:$4 sm:$0xff]  }
 0x25b   :  { %6954 = vmatpush1.bf16.msra.mxu1 %v10099_v48  ;;  %v10183_v48 = vld [vmem:[%s14268_s1 + $0xa40] ss:$8 sps:$4 sm:$0xff]  }
 0x25c   :  { %7642 = vmatpush1.bf16.msra.mxu0 %v10102_v49  ;;  %6955 = vmatprep.subr.bf16.mxu1 %v10107_v50  ;;  %v10186_v49 = vld [vmem:[%s14268_s1 + $0x1a40] ss:$8 sps:$4 sm:$0xff]   ;;  %v10191_v50 = vld [vmem:[%s14268_s1 + $0xa54] ss:$8 sps:$4 sm:$0xff]  }
 0x25d   :  { %7643 = vmatprep.subr.bf16.mxu0 %v10110_v51  ;;  %v10194_v51 = vld [vmem:[%s14268_s1 + $0x1a54] ss:$8 sps:$4 sm:$0xff]  }
 0x25f   :  { %6956 = vmatpush1.bf16.msra.mxu1 %v10105_v52  ;;  %v10189_v52 = vld [vmem:[%s14268_s1 + $0xa50] ss:$8 sps:$4 sm:$0xff]  }
 0x260   :  { %7644 = vmatpush1.bf16.msra.mxu0 %v10108_v38  ;;  %6957 = vmatprep.subr.bf16.mxu1 %v10113_v39  ;;  %v10192_v38 = vld [vmem:[%s14268_s1 + $0x1a50] ss:$8 sps:$4 sm:$0xff]   ;;  %v10197_v39 = vld [vmem:[%s14268_s1 + $0xa64] ss:$8 sps:$4 sm:$0xff]  }
 0x261   :  { %7645 = vmatprep.subr.bf16.mxu0 %v10116_v42  ;;  %v10200_v42 = vld [vmem:[%s14268_s1 + $0x1a64] ss:$8 sps:$4 sm:$0xff]  }
 0x263   :  { %6958 = vmatpush1.bf16.msra.mxu1 %v10111_v56  ;;  %v10195_v56 = vld [vmem:[%s14268_s1 + $0xa60] ss:$8 sps:$4 sm:$0xff]  }
 0x264   :  { %7646 = vmatpush1.bf16.msra.mxu0 %v10114_v57  ;;  %6959 = vmatprep.subr.bf16.mxu1 %v10119_v58  ;;  %v10198_v57 = vld [vmem:[%s14268_s1 + $0x1a60] ss:$8 sps:$4 sm:$0xff]   ;;  %v10203_v58 = vld [vmem:[%s14268_s1 + $0xa74] ss:$8 sps:$4 sm:$0xff]  }
 0x265   :  { %7647 = vmatprep.subr.bf16.mxu0 %v10122_v59  ;;  %v10206_v59 = vld [vmem:[%s14268_s1 + $0x1a74] ss:$8 sps:$4 sm:$0xff]  }
 0x267   :  { %6960 = vmatpush1.bf16.msra.mxu1 %v10117_v60  ;;  %v10201_v60 = vld [vmem:[%s14268_s1 + $0xa70] ss:$8 sps:$4 sm:$0xff]  }
 0x268   :  { %7648 = vmatpush1.bf16.msra.mxu0 %v10120_v35  ;;  %6961 = vmatprep.subr.bf16.mxu1 %v10125_v45  ;;  %v10204_v35 = vld [vmem:[%s14268_s1 + $0x1a70] ss:$8 sps:$4 sm:$0xff]   ;;  %v10209_v45 = vld [vmem:[%s14268_s1 + $0xa84] ss:$8 sps:$4 sm:$0xff]  }
 0x269   :  { %7649 = vmatprep.subr.bf16.mxu0 %v10128_v46  ;;  %v10212_v46 = vld [vmem:[%s14268_s1 + $0x1a84] ss:$8 sps:$4 sm:$0xff]  }
 0x26b   :  { %6962 = vmatpush1.bf16.msra.mxu1 %v10123_v0  ;;  %v10207_v0 = vld [vmem:[%s14268_s1 + $0xa80] ss:$8 sps:$4 sm:$0xff]  }
 0x26c   :  { %7650 = vmatpush1.bf16.msra.mxu0 %v10126_v1  ;;  %6963 = vmatprep.subr.bf16.mxu1 %v10131_v2  ;;  %v10210_v1 = vld [vmem:[%s14268_s1 + $0x1a80] ss:$8 sps:$4 sm:$0xff]   ;;  %v10215_v2 = vld [vmem:[%s14268_s1 + $0xa94] ss:$8 sps:$4 sm:$0xff]  }
 0x26d   :  { %7651 = vmatprep.subr.bf16.mxu0 %v10134_v3  ;;  %v10218_v3 = vld [vmem:[%s14268_s1 + $0x1a94] ss:$8 sps:$4 sm:$0xff]  }
 0x26f   :  { %6964 = vmatpush1.bf16.msra.mxu1 %v10129_v4  ;;  %v10213_v4 = vld [vmem:[%s14268_s1 + $0xa90] ss:$8 sps:$4 sm:$0xff]  }
 0x270   :  { %7652 = vmatpush1.bf16.msra.mxu0 %v10132_v43  ;;  %6965 = vmatprep.subr.bf16.mxu1 %v10137_v53  ;;  %v10216_v43 = vld [vmem:[%s14268_s1 + $0x1a90] ss:$8 sps:$4 sm:$0xff]   ;;  %v10221_v53 = vld [vmem:[%s14268_s1 + $0xaa4] ss:$8 sps:$4 sm:$0xff]  }
 0x271   :  { %7653 = vmatprep.subr.bf16.mxu0 %v10140_v54  ;;  %v10224_v54 = vld [vmem:[%s14268_s1 + $0x1aa4] ss:$8 sps:$4 sm:$0xff]  }
 0x273   :  { %6966 = vmatpush1.bf16.msra.mxu1 %v10135_v8  ;;  %v10219_v8 = vld [vmem:[%s14268_s1 + $0xaa0] ss:$8 sps:$4 sm:$0xff]  }
 0x274   :  { %7654 = vmatpush1.bf16.msra.mxu0 %v10138_v9  ;;  %6967 = vmatprep.subr.bf16.mxu1 %v10143_v10  ;;  %v10222_v9 = vld [vmem:[%s14268_s1 + $0x1aa0] ss:$8 sps:$4 sm:$0xff]   ;;  %v10227_v10 = vld [vmem:[%s14268_s1 + $0xab4] ss:$8 sps:$4 sm:$0xff]  }
 0x275   :  { %7655 = vmatprep.subr.bf16.mxu0 %v10146_v11  ;;  %v10230_v11 = vld [vmem:[%s14268_s1 + $0x1ab4] ss:$8 sps:$4 sm:$0xff]  }
 0x277   :  { %6968 = vmatpush1.bf16.msra.mxu1 %v10141_v12  ;;  %v10225_v12 = vld [vmem:[%s14268_s1 + $0xab0] ss:$8 sps:$4 sm:$0xff]  }
 0x278   :  { %7656 = vmatpush1.bf16.msra.mxu0 %v10144_v47  ;;  %6969 = vmatprep.subr.bf16.mxu1 %v10149_v61  ;;  %v10228_v47 = vld [vmem:[%s14268_s1 + $0x1ab0] ss:$8 sps:$4 sm:$0xff]   ;;  %v10233_v61 = vld [vmem:[%s14268_s1 + $0xac4] ss:$8 sps:$4 sm:$0xff]  }
 0x279   :  { %7657 = vmatprep.subr.bf16.mxu0 %v10152_v62  ;;  %v10236_v62 = vld [vmem:[%s14268_s1 + $0x1ac4] ss:$8 sps:$4 sm:$0xff]  }
 0x27b   :  { %6970 = vmatpush1.bf16.msra.mxu1 %v10147_v16  ;;  %v10231_v16 = vld [vmem:[%s14268_s1 + $0xac0] ss:$8 sps:$4 sm:$0xff]  }
 0x27c   :  { %7658 = vmatpush1.bf16.msra.mxu0 %v10150_v17  ;;  %6971 = vmatprep.subr.bf16.mxu1 %v10155_v18  ;;  %v10234_v17 = vld [vmem:[%s14268_s1 + $0x1ac0] ss:$8 sps:$4 sm:$0xff]   ;;  %v10239_v18 = vld [vmem:[%s14268_s1 + $0xad4] ss:$8 sps:$4 sm:$0xff]  }
 0x27d   :  { %7659 = vmatprep.subr.bf16.mxu0 %v10158_v19  ;;  %v10242_v19 = vld [vmem:[%s14268_s1 + $0x1ad4] ss:$8 sps:$4 sm:$0xff]  }
 0x27f   :  { %6972 = vmatpush1.bf16.msra.mxu1 %v10153_v20  ;;  %v10237_v20 = vld [vmem:[%s14268_s1 + $0xad0] ss:$8 sps:$4 sm:$0xff]  }
 0x280   :  { %7660 = vmatpush1.bf16.msra.mxu0 %v10156_v55  ;;  %6984 = vmatprep.subr.bf16.mxu1 %v10161_v5  ;;  %v10240_v55 = vld [vmem:[%s14268_s1 + $0x1ad0] ss:$8 sps:$4 sm:$0xff]   ;;  %v10245_v5 = vld [vmem:[%s14268_s1 + $0xae4] ss:$8 sps:$4 sm:$0xff]  }
 0x281   :  { %7672 = vmatprep.subr.bf16.mxu0 %v10164_v6  ;;  %v10248_v6 = vld [vmem:[%s14268_s1 + $0x1ae4] ss:$8 sps:$4 sm:$0xff]  }
 0x282   :  { %6974 = vmatmul.mubr.bf16.vlgmr.msra.gmra.mrb[0].mxu1 %v8001_v21  ;;  %v10243_v21 = vld [vmem:[%s14268_s1 + $0xae0] ss:$8 sps:$4 sm:$0xff]  }
 0x283   :  { %7662 = vmatmul.mubr.bf16.vlgmr.msra.gmra.mrb[0].mxu0 %v8033_v22  ;;  %6985 = vmatpush1.bf16.msra.mxu1 %v10159_v63  ;;  %v10246_v22 = vld [vmem:[%s14268_s1 + $0x1ae0] ss:$8 sps:$4 sm:$0xff]   ;;  %v10251_v63 = vld [vmem:[%s14268_s1 + $0xaf4] ss:$8 sps:$4 sm:$0xff]  }
 0x284   :  { %7673 = vmatpush1.bf16.msra.mxu0 %v10162_v13  ;;  %6986 = vmatprep.subr.bf16.mxu1 %v10167_v14  ;;  %v10254_v13 = vld [vmem:[%s14268_s1 + $0x1af4] ss:$8 sps:$4 sm:$0xff]   ;;  %v10249_v14 = vld [vmem:[%s14268_s1 + $0xaf0] ss:$8 sps:$4 sm:$0xff]  }
 0x285   :  { %7674 = vmatprep.subr.bf16.mxu0 %v10170_v15  ;;  %7016 = vmatprep.mubr.bf16.mxu1 %v8004_v32  ;;  %v10252_v15 = vld [vmem:[%s14268_s1 + $0x1af0] ss:$8 sps:$4 sm:$0xff]   ;;  %v10257_v32 = vld [vmem:[%s14268_s1 + $0xb04] ss:$8 sps:$4 sm:$0xff]  }
 0x286   :  { %7704 = vmatprep.mubr.bf16.mxu0 %v8036_v33  ;;  %v10260_v33 = vld [vmem:[%s14268_s1 + $0x1b04] ss:$8 sps:$4 sm:$0xff]  }
 0x287   :  { %6987 = vmatpush1.bf16.msra.mxu1 %v10165_v36  ;;  %v13164_v36 = vld [vmem:[%s14269_s0 + $0x58] sm:$0xff] }
 0x288   :  { %7675 = vmatpush1.bf16.msra.mxu0 %v10168_v24  ;;  %6988 = vmatprep.subr.bf16.mxu1 %v10173_v25  ;;  %v8003_v24 = vcombine.low %v12944_v7, %v12953_v23  ;;  %v8035_v25 = vcombine.low %v12958_v26, %v12963_v27  ;;  %v10255_v7 = vld [vmem:[%s14268_s1 + $0xb00] ss:$8 sps:$4 sm:$0xff]   ;;  %v10263_v26 = vld [vmem:[%s14268_s1 + $0xb14] ss:$8 sps:$4 sm:$0xff]  }
 0x289   :  { %7676 = vmatprep.subr.bf16.mxu0 %v10176_v29  ;;  %v13173_v29 = vld [vmem:[%s14269_s0 + $0x158] sm:$0xff]  ;;  %v10258_v23 = vld [vmem:[%s14268_s1 + $0x1b00] ss:$8 sps:$4 sm:$0xff]  }
 0x28a   :  { %v10266_v27 = vld [vmem:[%s14268_s1 + $0x1b14] ss:$8 sps:$4 sm:$0xff]  }
 0x28b   :  { %6989 = vmatpush1.bf16.msra.mxu1 %v10171_v30  ;;  %v13178_v30 = vld [vmem:[%s14269_s0 + $0xd8] sm:$0xff] }
 0x28c   :  { %7677 = vmatpush1.bf16.msra.mxu0 %v10174_v37  ;;  %6990 = vmatprep.subr.bf16.mxu1 %v10179_v40  ;;  %v13183_v37 = vld [vmem:[%s14269_s0 + $0x1d8] sm:$0xff]  ;;  %v8006_v40 = vcombine.high %v13164_v36, %v13173_v29 }
 0x28d   :  { %7678 = vmatprep.subr.bf16.mxu0 %v10182_v41  ;;  %v8038_v41 = vcombine.high %v13178_v30, %v13183_v37 }
 0x28f   :  { %6991 = vmatpush1.bf16.msra.mxu1 %v10177_v44  ;;  %v10261_v44 = vld [vmem:[%s14268_s1 + $0xb10] ss:$8 sps:$4 sm:$0xff]  }
 0x290   :  { %7679 = vmatpush1.bf16.msra.mxu0 %v10180_v28  ;;  %6992 = vmatprep.subr.bf16.mxu1 %v10185_v31  ;;  %v10264_v28 = vld [vmem:[%s14268_s1 + $0x1b10] ss:$8 sps:$4 sm:$0xff]   ;;  %v10269_v31 = vld [vmem:[%s14268_s1 + $0xb24] ss:$8 sps:$4 sm:$0xff]  }
 0x291   :  { %7680 = vmatprep.subr.bf16.mxu0 %v10188_v34  ;;  %v10272_v34 = vld [vmem:[%s14268_s1 + $0x1b24] ss:$8 sps:$4 sm:$0xff]  }
 0x293   :  { %6993 = vmatpush1.bf16.msra.mxu1 %v10183_v48  ;;  %v10267_v48 = vld [vmem:[%s14268_s1 + $0xb20] ss:$8 sps:$4 sm:$0xff]  }
 0x294   :  { %7681 = vmatpush1.bf16.msra.mxu0 %v10186_v49  ;;  %6994 = vmatprep.subr.bf16.mxu1 %v10191_v50  ;;  %v10270_v49 = vld [vmem:[%s14268_s1 + $0x1b20] ss:$8 sps:$4 sm:$0xff]   ;;  %v10275_v50 = vld [vmem:[%s14268_s1 + $0xb34] ss:$8 sps:$4 sm:$0xff]  }
 0x295   :  { %7682 = vmatprep.subr.bf16.mxu0 %v10194_v51  ;;  %v10278_v51 = vld [vmem:[%s14268_s1 + $0x1b34] ss:$8 sps:$4 sm:$0xff]  }
 0x297   :  { %6995 = vmatpush1.bf16.msra.mxu1 %v10189_v52  ;;  %v10273_v52 = vld [vmem:[%s14268_s1 + $0xb30] ss:$8 sps:$4 sm:$0xff]  }
 0x298   :  { %7683 = vmatpush1.bf16.msra.mxu0 %v10192_v38  ;;  %6996 = vmatprep.subr.bf16.mxu1 %v10197_v39  ;;  %v10276_v38 = vld [vmem:[%s14268_s1 + $0x1b30] ss:$8 sps:$4 sm:$0xff]   ;;  %v10281_v39 = vld [vmem:[%s14268_s1 + $0xb44] ss:$8 sps:$4 sm:$0xff]  }
 0x299   :  { %7684 = vmatprep.subr.bf16.mxu0 %v10200_v42  ;;  %v10284_v42 = vld [vmem:[%s14268_s1 + $0x1b44] ss:$8 sps:$4 sm:$0xff]  }
 0x29b   :  { %6997 = vmatpush1.bf16.msra.mxu1 %v10195_v56  ;;  %v10279_v56 = vld [vmem:[%s14268_s1 + $0xb40] ss:$8 sps:$4 sm:$0xff]  }
 0x29c   :  { %7685 = vmatpush1.bf16.msra.mxu0 %v10198_v57  ;;  %6998 = vmatprep.subr.bf16.mxu1 %v10203_v58  ;;  %v10282_v57 = vld [vmem:[%s14268_s1 + $0x1b40] ss:$8 sps:$4 sm:$0xff]   ;;  %v10287_v58 = vld [vmem:[%s14268_s1 + $0xb54] ss:$8 sps:$4 sm:$0xff]  }
 0x29d   :  { %7686 = vmatprep.subr.bf16.mxu0 %v10206_v59  ;;  %v10290_v59 = vld [vmem:[%s14268_s1 + $0x1b54] ss:$8 sps:$4 sm:$0xff]  }
 0x29f   :  { %6999 = vmatpush1.bf16.msra.mxu1 %v10201_v60  ;;  %v10285_v60 = vld [vmem:[%s14268_s1 + $0xb50] ss:$8 sps:$4 sm:$0xff]  }
 0x2a0   :  { %7687 = vmatpush1.bf16.msra.mxu0 %v10204_v35  ;;  %7000 = vmatprep.subr.bf16.mxu1 %v10209_v45  ;;  %v10288_v35 = vld [vmem:[%s14268_s1 + $0x1b50] ss:$8 sps:$4 sm:$0xff]   ;;  %v10293_v45 = vld [vmem:[%s14268_s1 + $0xb64] ss:$8 sps:$4 sm:$0xff]  }
 0x2a1   :  { %7688 = vmatprep.subr.bf16.mxu0 %v10212_v46  ;;  %v10296_v46 = vld [vmem:[%s14268_s1 + $0x1b64] ss:$8 sps:$4 sm:$0xff]  }
 0x2a3   :  { %7001 = vmatpush1.bf16.msra.mxu1 %v10207_v0  ;;  %v10291_v0 = vld [vmem:[%s14268_s1 + $0xb60] ss:$8 sps:$4 sm:$0xff]  }
 0x2a4   :  { %7689 = vmatpush1.bf16.msra.mxu0 %v10210_v1  ;;  %7002 = vmatprep.subr.bf16.mxu1 %v10215_v2  ;;  %v10294_v1 = vld [vmem:[%s14268_s1 + $0x1b60] ss:$8 sps:$4 sm:$0xff]   ;;  %v10299_v2 = vld [vmem:[%s14268_s1 + $0xb74] ss:$8 sps:$4 sm:$0xff]  }
 0x2a5   :  { %7690 = vmatprep.subr.bf16.mxu0 %v10218_v3  ;;  %v10302_v3 = vld [vmem:[%s14268_s1 + $0x1b74] ss:$8 sps:$4 sm:$0xff]  }
 0x2a7   :  { %7003 = vmatpush1.bf16.msra.mxu1 %v10213_v4  ;;  %v10297_v4 = vld [vmem:[%s14268_s1 + $0xb70] ss:$8 sps:$4 sm:$0xff]  }
 0x2a8   :  { %7691 = vmatpush1.bf16.msra.mxu0 %v10216_v43  ;;  %7004 = vmatprep.subr.bf16.mxu1 %v10221_v53  ;;  %v10300_v43 = vld [vmem:[%s14268_s1 + $0x1b70] ss:$8 sps:$4 sm:$0xff]   ;;  %v10305_v53 = vld [vmem:[%s14268_s1 + $0xb84] ss:$8 sps:$4 sm:$0xff]  }
 0x2a9   :  { %7692 = vmatprep.subr.bf16.mxu0 %v10224_v54  ;;  %v10308_v54 = vld [vmem:[%s14268_s1 + $0x1b84] ss:$8 sps:$4 sm:$0xff]  }
 0x2ab   :  { %7005 = vmatpush1.bf16.msra.mxu1 %v10219_v8  ;;  %v10303_v8 = vld [vmem:[%s14268_s1 + $0xb80] ss:$8 sps:$4 sm:$0xff]  }
 0x2ac   :  { %7693 = vmatpush1.bf16.msra.mxu0 %v10222_v9  ;;  %7006 = vmatprep.subr.bf16.mxu1 %v10227_v10  ;;  %v10306_v9 = vld [vmem:[%s14268_s1 + $0x1b80] ss:$8 sps:$4 sm:$0xff]   ;;  %v10311_v10 = vld [vmem:[%s14268_s1 + $0xb94] ss:$8 sps:$4 sm:$0xff]  }
 0x2ad   :  { %7694 = vmatprep.subr.bf16.mxu0 %v10230_v11  ;;  %v10314_v11 = vld [vmem:[%s14268_s1 + $0x1b94] ss:$8 sps:$4 sm:$0xff]  }
 0x2af   :  { %7007 = vmatpush1.bf16.msra.mxu1 %v10225_v12  ;;  %v10309_v12 = vld [vmem:[%s14268_s1 + $0xb90] ss:$8 sps:$4 sm:$0xff]  }
 0x2b0   :  { %7695 = vmatpush1.bf16.msra.mxu0 %v10228_v47  ;;  %7008 = vmatprep.subr.bf16.mxu1 %v10233_v61  ;;  %v10312_v47 = vld [vmem:[%s14268_s1 + $0x1b90] ss:$8 sps:$4 sm:$0xff]   ;;  %v10317_v61 = vld [vmem:[%s14268_s1 + $0xba4] ss:$8 sps:$4 sm:$0xff]  }
 0x2b1   :  { %7696 = vmatprep.subr.bf16.mxu0 %v10236_v62  ;;  %v10320_v62 = vld [vmem:[%s14268_s1 + $0x1ba4] ss:$8 sps:$4 sm:$0xff]  }
 0x2b3   :  { %7009 = vmatpush1.bf16.msra.mxu1 %v10231_v16  ;;  %v10315_v16 = vld [vmem:[%s14268_s1 + $0xba0] ss:$8 sps:$4 sm:$0xff]  }
 0x2b4   :  { %7697 = vmatpush1.bf16.msra.mxu0 %v10234_v17  ;;  %7010 = vmatprep.subr.bf16.mxu1 %v10239_v18  ;;  %v10318_v17 = vld [vmem:[%s14268_s1 + $0x1ba0] ss:$8 sps:$4 sm:$0xff]   ;;  %v10323_v18 = vld [vmem:[%s14268_s1 + $0xbb4] ss:$8 sps:$4 sm:$0xff]  }
 0x2b5   :  { %7698 = vmatprep.subr.bf16.mxu0 %v10242_v19  ;;  %v10326_v19 = vld [vmem:[%s14268_s1 + $0x1bb4] ss:$8 sps:$4 sm:$0xff]  }
 0x2b7   :  { %7011 = vmatpush1.bf16.msra.mxu1 %v10237_v20  ;;  %v10321_v20 = vld [vmem:[%s14268_s1 + $0xbb0] ss:$8 sps:$4 sm:$0xff]  }
 0x2b8   :  { %7699 = vmatpush1.bf16.msra.mxu0 %v10240_v55  ;;  %7012 = vmatprep.subr.bf16.mxu1 %v10245_v5  ;;  %v10324_v55 = vld [vmem:[%s14268_s1 + $0x1bb0] ss:$8 sps:$4 sm:$0xff]   ;;  %v10329_v5 = vld [vmem:[%s14268_s1 + $0xbc4] ss:$8 sps:$4 sm:$0xff]  }
 0x2b9   :  { %7700 = vmatprep.subr.bf16.mxu0 %v10248_v6  ;;  %v10332_v6 = vld [vmem:[%s14268_s1 + $0x1bc4] ss:$8 sps:$4 sm:$0xff]  }
 0x2bb   :  { %7013 = vmatpush1.bf16.msra.mxu1 %v10243_v21  ;;  %v10327_v21 = vld [vmem:[%s14268_s1 + $0xbc0] ss:$8 sps:$4 sm:$0xff]  }
 0x2bc   :  { %7701 = vmatpush1.bf16.msra.mxu0 %v10246_v22  ;;  %7014 = vmatprep.subr.bf16.mxu1 %v10251_v63  ;;  %v10330_v22 = vld [vmem:[%s14268_s1 + $0x1bc0] ss:$8 sps:$4 sm:$0xff]   ;;  %v10335_v63 = vld [vmem:[%s14268_s1 + $0xbd4] ss:$8 sps:$4 sm:$0xff]  }
 0x2bd   :  { %7702 = vmatprep.subr.bf16.mxu0 %v10254_v13  ;;  %v10338_v13 = vld [vmem:[%s14268_s1 + $0x1bd4] ss:$8 sps:$4 sm:$0xff]  }
 0x2bf   :  { %7015 = vmatpush1.bf16.msra.mxu1 %v10249_v14  ;;  %v10333_v14 = vld [vmem:[%s14268_s1 + $0xbd0] ss:$8 sps:$4 sm:$0xff]  }
 0x2c0   :  { %7703 = vmatpush1.bf16.msra.mxu0 %v10252_v15  ;;  %7027 = vmatprep.subr.bf16.mxu1 %v10257_v32  ;;  %v10336_v15 = vld [vmem:[%s14268_s1 + $0x1bd0] ss:$8 sps:$4 sm:$0xff]   ;;  %v10341_v32 = vld [vmem:[%s14268_s1 + $0xbe4] ss:$8 sps:$4 sm:$0xff]  }
 0x2c1   :  { %7715 = vmatprep.subr.bf16.mxu0 %v10260_v33  ;;  %v10344_v33 = vld [vmem:[%s14268_s1 + $0x1be4] ss:$8 sps:$4 sm:$0xff]  }
 0x2c2   :  { %7017 = vmatmul.mubr.bf16.vlgmr.msra.gmra.mrb[0].mxu1 %v8003_v24  ;;  %v10339_v24 = vld [vmem:[%s14268_s1 + $0xbe0] ss:$8 sps:$4 sm:$0xff]  }
 0x2c3   :  { %7705 = vmatmul.mubr.bf16.vlgmr.msra.gmra.mrb[0].mxu0 %v8035_v25  ;;  %7028 = vmatpush1.bf16.msra.mxu1 %v10255_v7  ;;  %v10342_v25 = vld [vmem:[%s14268_s1 + $0x1be0] ss:$8 sps:$4 sm:$0xff]   ;;  %v10347_v7 = vld [vmem:[%s14268_s1 + $0xbf4] ss:$8 sps:$4 sm:$0xff]  }
 0x2c4   :  { %7716 = vmatpush1.bf16.msra.mxu0 %v10258_v23  ;;  %7029 = vmatprep.subr.bf16.mxu1 %v10263_v26  ;;  %v10350_v23 = vld [vmem:[%s14268_s1 + $0x1bf4] ss:$8 sps:$4 sm:$0xff]   ;;  %v10345_v26 = vld [vmem:[%s14268_s1 + $0xbf0] ss:$8 sps:$4 sm:$0xff]  }
 0x2c5   :  { %7717 = vmatprep.subr.bf16.mxu0 %v10266_v27  ;;  %7059 = vmatprep.mubr.bf16.mxu1 %v8006_v40  ;;  %v10348_v27 = vld [vmem:[%s14268_s1 + $0x1bf0] ss:$8 sps:$4 sm:$0xff]   ;;  %v10353_v40 = vld [vmem:[%s14268_s1 + $0xc04] ss:$8 sps:$4 sm:$0xff]  }
 0x2c6   :  { %7747 = vmatprep.mubr.bf16.mxu0 %v8038_v41  ;;  %v10356_v41 = vld [vmem:[%s14268_s1 + $0x1c04] ss:$8 sps:$4 sm:$0xff]  }
 0x2c7   :  { %7030 = vmatpush1.bf16.msra.mxu1 %v10261_v44  ;;  %v13384_v44 = vld [vmem:[%s14269_s0 + $0x60] sm:$0xff] }
 0x2c8   :  { %7718 = vmatpush1.bf16.msra.mxu0 %v10264_v28  ;;  %7031 = vmatprep.subr.bf16.mxu1 %v10269_v31  ;;  %v8005_v28 = vcombine.low %v13164_v36, %v13173_v29  ;;  %v8037_v31 = vcombine.low %v13178_v30, %v13183_v37  ;;  %v10351_v36 = vld [vmem:[%s14268_s1 + $0xc00] ss:$8 sps:$4 sm:$0xff]   ;;  %v10359_v30 = vld [vmem:[%s14268_s1 + $0xc14] ss:$8 sps:$4 sm:$0xff]  }
 0x2c9   :  { %7719 = vmatprep.subr.bf16.mxu0 %v10272_v34  ;;  %v13393_v34 = vld [vmem:[%s14269_s0 + $0x160] sm:$0xff]  ;;  %v10362_v37 = vld [vmem:[%s14268_s1 + $0x1c14] ss:$8 sps:$4 sm:$0xff]  }
 0x2ca   :  { %v10354_v29 = vld [vmem:[%s14268_s1 + $0x1c00] ss:$8 sps:$4 sm:$0xff]  }
 0x2cb   :  { %7032 = vmatpush1.bf16.msra.mxu1 %v10267_v48  ;;  %v13398_v48 = vld [vmem:[%s14269_s0 + $0xe0] sm:$0xff] }
 0x2cc   :  { %7720 = vmatpush1.bf16.msra.mxu0 %v10270_v49  ;;  %7033 = vmatprep.subr.bf16.mxu1 %v10275_v50  ;;  %v13403_v49 = vld [vmem:[%s14269_s0 + $0x1e0] sm:$0xff]  ;;  %v8008_v50 = vcombine.high %v13384_v44, %v13393_v34 }
 0x2cd   :  { %7721 = vmatprep.subr.bf16.mxu0 %v10278_v51  ;;  %v8040_v51 = vcombine.high %v13398_v48, %v13403_v49 }
 0x2cf   :  { %7034 = vmatpush1.bf16.msra.mxu1 %v10273_v52  ;;  %v10357_v52 = vld [vmem:[%s14268_s1 + $0xc10] ss:$8 sps:$4 sm:$0xff]  }
 0x2d0   :  { %7722 = vmatpush1.bf16.msra.mxu0 %v10276_v38  ;;  %7035 = vmatprep.subr.bf16.mxu1 %v10281_v39  ;;  %v10360_v38 = vld [vmem:[%s14268_s1 + $0x1c10] ss:$8 sps:$4 sm:$0xff]   ;;  %v10365_v39 = vld [vmem:[%s14268_s1 + $0xc24] ss:$8 sps:$4 sm:$0xff]  }
 0x2d1   :  { %7723 = vmatprep.subr.bf16.mxu0 %v10284_v42  ;;  %v10368_v42 = vld [vmem:[%s14268_s1 + $0x1c24] ss:$8 sps:$4 sm:$0xff]  }
 0x2d3   :  { %7036 = vmatpush1.bf16.msra.mxu1 %v10279_v56  ;;  %v10363_v56 = vld [vmem:[%s14268_s1 + $0xc20] ss:$8 sps:$4 sm:$0xff]  }
 0x2d4   :  { %7724 = vmatpush1.bf16.msra.mxu0 %v10282_v57  ;;  %7037 = vmatprep.subr.bf16.mxu1 %v10287_v58  ;;  %v10366_v57 = vld [vmem:[%s14268_s1 + $0x1c20] ss:$8 sps:$4 sm:$0xff]   ;;  %v10371_v58 = vld [vmem:[%s14268_s1 + $0xc34] ss:$8 sps:$4 sm:$0xff]  }
 0x2d5   :  { %7725 = vmatprep.subr.bf16.mxu0 %v10290_v59  ;;  %v10374_v59 = vld [vmem:[%s14268_s1 + $0x1c34] ss:$8 sps:$4 sm:$0xff]  }
 0x2d7   :  { %7038 = vmatpush1.bf16.msra.mxu1 %v10285_v60  ;;  %v10369_v60 = vld [vmem:[%s14268_s1 + $0xc30] ss:$8 sps:$4 sm:$0xff]  }
 0x2d8   :  { %7726 = vmatpush1.bf16.msra.mxu0 %v10288_v35  ;;  %7039 = vmatprep.subr.bf16.mxu1 %v10293_v45  ;;  %v10372_v35 = vld [vmem:[%s14268_s1 + $0x1c30] ss:$8 sps:$4 sm:$0xff]   ;;  %v10377_v45 = vld [vmem:[%s14268_s1 + $0xc44] ss:$8 sps:$4 sm:$0xff]  }
 0x2d9   :  { %7727 = vmatprep.subr.bf16.mxu0 %v10296_v46  ;;  %v10380_v46 = vld [vmem:[%s14268_s1 + $0x1c44] ss:$8 sps:$4 sm:$0xff]  }
 0x2db   :  { %7040 = vmatpush1.bf16.msra.mxu1 %v10291_v0  ;;  %v10375_v0 = vld [vmem:[%s14268_s1 + $0xc40] ss:$8 sps:$4 sm:$0xff]  }
 0x2dc   :  { %7728 = vmatpush1.bf16.msra.mxu0 %v10294_v1  ;;  %7041 = vmatprep.subr.bf16.mxu1 %v10299_v2  ;;  %v10378_v1 = vld [vmem:[%s14268_s1 + $0x1c40] ss:$8 sps:$4 sm:$0xff]   ;;  %v10383_v2 = vld [vmem:[%s14268_s1 + $0xc54] ss:$8 sps:$4 sm:$0xff]  }
 0x2dd   :  { %7729 = vmatprep.subr.bf16.mxu0 %v10302_v3  ;;  %v10386_v3 = vld [vmem:[%s14268_s1 + $0x1c54] ss:$8 sps:$4 sm:$0xff]  }
 0x2df   :  { %7042 = vmatpush1.bf16.msra.mxu1 %v10297_v4  ;;  %v10381_v4 = vld [vmem:[%s14268_s1 + $0xc50] ss:$8 sps:$4 sm:$0xff]  }
 0x2e0   :  { %7730 = vmatpush1.bf16.msra.mxu0 %v10300_v43  ;;  %7043 = vmatprep.subr.bf16.mxu1 %v10305_v53  ;;  %v10384_v43 = vld [vmem:[%s14268_s1 + $0x1c50] ss:$8 sps:$4 sm:$0xff]   ;;  %v10389_v53 = vld [vmem:[%s14268_s1 + $0xc64] ss:$8 sps:$4 sm:$0xff]  }
 0x2e1   :  { %7731 = vmatprep.subr.bf16.mxu0 %v10308_v54  ;;  %v10392_v54 = vld [vmem:[%s14268_s1 + $0x1c64] ss:$8 sps:$4 sm:$0xff]  }
 0x2e3   :  { %7044 = vmatpush1.bf16.msra.mxu1 %v10303_v8  ;;  %v10387_v8 = vld [vmem:[%s14268_s1 + $0xc60] ss:$8 sps:$4 sm:$0xff]  }
 0x2e4   :  { %7732 = vmatpush1.bf16.msra.mxu0 %v10306_v9  ;;  %7045 = vmatprep.subr.bf16.mxu1 %v10311_v10  ;;  %v10390_v9 = vld [vmem:[%s14268_s1 + $0x1c60] ss:$8 sps:$4 sm:$0xff]   ;;  %v10395_v10 = vld [vmem:[%s14268_s1 + $0xc74] ss:$8 sps:$4 sm:$0xff]  }
 0x2e5   :  { %7733 = vmatprep.subr.bf16.mxu0 %v10314_v11  ;;  %v10398_v11 = vld [vmem:[%s14268_s1 + $0x1c74] ss:$8 sps:$4 sm:$0xff]  }
 0x2e7   :  { %7046 = vmatpush1.bf16.msra.mxu1 %v10309_v12  ;;  %v10393_v12 = vld [vmem:[%s14268_s1 + $0xc70] ss:$8 sps:$4 sm:$0xff]  }
 0x2e8   :  { %7734 = vmatpush1.bf16.msra.mxu0 %v10312_v47  ;;  %7047 = vmatprep.subr.bf16.mxu1 %v10317_v61  ;;  %v10396_v47 = vld [vmem:[%s14268_s1 + $0x1c70] ss:$8 sps:$4 sm:$0xff]   ;;  %v10401_v61 = vld [vmem:[%s14268_s1 + $0xc84] ss:$8 sps:$4 sm:$0xff]  }
 0x2e9   :  { %7735 = vmatprep.subr.bf16.mxu0 %v10320_v62  ;;  %v10404_v62 = vld [vmem:[%s14268_s1 + $0x1c84] ss:$8 sps:$4 sm:$0xff]  }
 0x2eb   :  { %7048 = vmatpush1.bf16.msra.mxu1 %v10315_v16  ;;  %v10399_v16 = vld [vmem:[%s14268_s1 + $0xc80] ss:$8 sps:$4 sm:$0xff]  }
 0x2ec   :  { %7736 = vmatpush1.bf16.msra.mxu0 %v10318_v17  ;;  %7049 = vmatprep.subr.bf16.mxu1 %v10323_v18  ;;  %v10402_v17 = vld [vmem:[%s14268_s1 + $0x1c80] ss:$8 sps:$4 sm:$0xff]   ;;  %v10407_v18 = vld [vmem:[%s14268_s1 + $0xc94] ss:$8 sps:$4 sm:$0xff]  }
 0x2ed   :  { %7737 = vmatprep.subr.bf16.mxu0 %v10326_v19  ;;  %v10410_v19 = vld [vmem:[%s14268_s1 + $0x1c94] ss:$8 sps:$4 sm:$0xff]  }
 0x2ef   :  { %7050 = vmatpush1.bf16.msra.mxu1 %v10321_v20  ;;  %v10405_v20 = vld [vmem:[%s14268_s1 + $0xc90] ss:$8 sps:$4 sm:$0xff]  }
 0x2f0   :  { %7738 = vmatpush1.bf16.msra.mxu0 %v10324_v55  ;;  %7051 = vmatprep.subr.bf16.mxu1 %v10329_v5  ;;  %v10408_v55 = vld [vmem:[%s14268_s1 + $0x1c90] ss:$8 sps:$4 sm:$0xff]   ;;  %v10413_v5 = vld [vmem:[%s14268_s1 + $0xca4] ss:$8 sps:$4 sm:$0xff]  }
 0x2f1   :  { %7739 = vmatprep.subr.bf16.mxu0 %v10332_v6  ;;  %v10416_v6 = vld [vmem:[%s14268_s1 + $0x1ca4] ss:$8 sps:$4 sm:$0xff]  }
 0x2f3   :  { %7052 = vmatpush1.bf16.msra.mxu1 %v10327_v21  ;;  %v10411_v21 = vld [vmem:[%s14268_s1 + $0xca0] ss:$8 sps:$4 sm:$0xff]  }
 0x2f4   :  { %7740 = vmatpush1.bf16.msra.mxu0 %v10330_v22  ;;  %7053 = vmatprep.subr.bf16.mxu1 %v10335_v63  ;;  %v10414_v22 = vld [vmem:[%s14268_s1 + $0x1ca0] ss:$8 sps:$4 sm:$0xff]   ;;  %v10419_v63 = vld [vmem:[%s14268_s1 + $0xcb4] ss:$8 sps:$4 sm:$0xff]  }
 0x2f5   :  { %7741 = vmatprep.subr.bf16.mxu0 %v10338_v13  ;;  %v10422_v13 = vld [vmem:[%s14268_s1 + $0x1cb4] ss:$8 sps:$4 sm:$0xff]  }
 0x2f7   :  { %7054 = vmatpush1.bf16.msra.mxu1 %v10333_v14  ;;  %v10417_v14 = vld [vmem:[%s14268_s1 + $0xcb0] ss:$8 sps:$4 sm:$0xff]  }
 0x2f8   :  { %7742 = vmatpush1.bf16.msra.mxu0 %v10336_v15  ;;  %7055 = vmatprep.subr.bf16.mxu1 %v10341_v32  ;;  %v10420_v15 = vld [vmem:[%s14268_s1 + $0x1cb0] ss:$8 sps:$4 sm:$0xff]   ;;  %v10425_v32 = vld [vmem:[%s14268_s1 + $0xcc4] ss:$8 sps:$4 sm:$0xff]  }
 0x2f9   :  { %7743 = vmatprep.subr.bf16.mxu0 %v10344_v33  ;;  %v10428_v33 = vld [vmem:[%s14268_s1 + $0x1cc4] ss:$8 sps:$4 sm:$0xff]  }
 0x2fb   :  { %7056 = vmatpush1.bf16.msra.mxu1 %v10339_v24  ;;  %v10423_v24 = vld [vmem:[%s14268_s1 + $0xcc0] ss:$8 sps:$4 sm:$0xff]  }
 0x2fc   :  { %7744 = vmatpush1.bf16.msra.mxu0 %v10342_v25  ;;  %7057 = vmatprep.subr.bf16.mxu1 %v10347_v7  ;;  %v10426_v25 = vld [vmem:[%s14268_s1 + $0x1cc0] ss:$8 sps:$4 sm:$0xff]   ;;  %v10431_v7 = vld [vmem:[%s14268_s1 + $0xcd4] ss:$8 sps:$4 sm:$0xff]  }
 0x2fd   :  { %7745 = vmatprep.subr.bf16.mxu0 %v10350_v23  ;;  %v10434_v23 = vld [vmem:[%s14268_s1 + $0x1cd4] ss:$8 sps:$4 sm:$0xff]  }
 0x2ff   :  { %7058 = vmatpush1.bf16.msra.mxu1 %v10345_v26  ;;  %v10429_v26 = vld [vmem:[%s14268_s1 + $0xcd0] ss:$8 sps:$4 sm:$0xff]  }
 0x300   :  { %7746 = vmatpush1.bf16.msra.mxu0 %v10348_v27  ;;  %7070 = vmatprep.subr.bf16.mxu1 %v10353_v40  ;;  %v10432_v27 = vld [vmem:[%s14268_s1 + $0x1cd0] ss:$8 sps:$4 sm:$0xff]   ;;  %v10437_v40 = vld [vmem:[%s14268_s1 + $0xce4] ss:$8 sps:$4 sm:$0xff]  }
 0x301   :  { %7758 = vmatprep.subr.bf16.mxu0 %v10356_v41  ;;  %v10440_v41 = vld [vmem:[%s14268_s1 + $0x1ce4] ss:$8 sps:$4 sm:$0xff]  }
 0x302   :  { %7060 = vmatmul.mubr.bf16.vlgmr.msra.gmra.mrb[0].mxu1 %v8005_v28  ;;  %v10435_v28 = vld [vmem:[%s14268_s1 + $0xce0] ss:$8 sps:$4 sm:$0xff]  }
 0x303   :  { %7748 = vmatmul.mubr.bf16.vlgmr.msra.gmra.mrb[0].mxu0 %v8037_v31  ;;  %7071 = vmatpush1.bf16.msra.mxu1 %v10351_v36  ;;  %v10438_v31 = vld [vmem:[%s14268_s1 + $0x1ce0] ss:$8 sps:$4 sm:$0xff]   ;;  %v10443_v36 = vld [vmem:[%s14268_s1 + $0xcf4] ss:$8 sps:$4 sm:$0xff]  }
 0x304   :  { %7759 = vmatpush1.bf16.msra.mxu0 %v10354_v29  ;;  %7072 = vmatprep.subr.bf16.mxu1 %v10359_v30  ;;  %v10446_v29 = vld [vmem:[%s14268_s1 + $0x1cf4] ss:$8 sps:$4 sm:$0xff]   ;;  %v10441_v30 = vld [vmem:[%s14268_s1 + $0xcf0] ss:$8 sps:$4 sm:$0xff]  }
 0x305   :  { %7760 = vmatprep.subr.bf16.mxu0 %v10362_v37  ;;  %7102 = vmatprep.mubr.bf16.mxu1 %v8008_v50  ;;  %v10444_v37 = vld [vmem:[%s14268_s1 + $0x1cf0] ss:$8 sps:$4 sm:$0xff]   ;;  %v10449_v50 = vld [vmem:[%s14268_s1 + $0xd04] ss:$8 sps:$4 sm:$0xff]  }
 0x306   :  { %7790 = vmatprep.mubr.bf16.mxu0 %v8040_v51  ;;  %v10452_v51 = vld [vmem:[%s14268_s1 + $0x1d04] ss:$8 sps:$4 sm:$0xff]  }
 0x307   :  { %7073 = vmatpush1.bf16.msra.mxu1 %v10357_v52  ;;  %v13604_v52 = vld [vmem:[%s14269_s0 + $0x68] sm:$0xff] }
 0x308   :  { %7761 = vmatpush1.bf16.msra.mxu0 %v10360_v38  ;;  %7074 = vmatprep.subr.bf16.mxu1 %v10365_v39  ;;  %v8007_v38 = vcombine.low %v13384_v44, %v13393_v34  ;;  %v8039_v39 = vcombine.low %v13398_v48, %v13403_v49  ;;  %v10447_v44 = vld [vmem:[%s14268_s1 + $0xd00] ss:$8 sps:$4 sm:$0xff]   ;;  %v10455_v48 = vld [vmem:[%s14268_s1 + $0xd14] ss:$8 sps:$4 sm:$0xff]  }
 0x309   :  { %7762 = vmatprep.subr.bf16.mxu0 %v10368_v42  ;;  %v13613_v42 = vld [vmem:[%s14269_s0 + $0x168] sm:$0xff]  ;;  %v10458_v49 = vld [vmem:[%s14268_s1 + $0x1d14] ss:$8 sps:$4 sm:$0xff]  }
 0x30a   :  { %v10450_v34 = vld [vmem:[%s14268_s1 + $0x1d00] ss:$8 sps:$4 sm:$0xff]  }
 0x30b   :  { %7075 = vmatpush1.bf16.msra.mxu1 %v10363_v56  ;;  %v13618_v56 = vld [vmem:[%s14269_s0 + $0xe8] sm:$0xff] }
 0x30c   :  { %7763 = vmatpush1.bf16.msra.mxu0 %v10366_v57  ;;  %7076 = vmatprep.subr.bf16.mxu1 %v10371_v58  ;;  %v13623_v57 = vld [vmem:[%s14269_s0 + $0x1e8] sm:$0xff]  ;;  %v8010_v58 = vcombine.high %v13604_v52, %v13613_v42 }
 0x30d   :  { %7764 = vmatprep.subr.bf16.mxu0 %v10374_v59  ;;  %v8042_v59 = vcombine.high %v13618_v56, %v13623_v57 }
 0x30f   :  { %7077 = vmatpush1.bf16.msra.mxu1 %v10369_v60  ;;  %v10453_v60 = vld [vmem:[%s14268_s1 + $0xd10] ss:$8 sps:$4 sm:$0xff]  }
 0x310   :  { %7765 = vmatpush1.bf16.msra.mxu0 %v10372_v35  ;;  %7078 = vmatprep.subr.bf16.mxu1 %v10377_v45  ;;  %v10456_v35 = vld [vmem:[%s14268_s1 + $0x1d10] ss:$8 sps:$4 sm:$0xff]   ;;  %v10461_v45 = vld [vmem:[%s14268_s1 + $0xd24] ss:$8 sps:$4 sm:$0xff]  }
 0x311   :  { %7766 = vmatprep.subr.bf16.mxu0 %v10380_v46  ;;  %v10464_v46 = vld [vmem:[%s14268_s1 + $0x1d24] ss:$8 sps:$4 sm:$0xff]  }
 0x313   :  { %7079 = vmatpush1.bf16.msra.mxu1 %v10375_v0  ;;  %v10459_v0 = vld [vmem:[%s14268_s1 + $0xd20] ss:$8 sps:$4 sm:$0xff]  }
 0x314   :  { %7767 = vmatpush1.bf16.msra.mxu0 %v10378_v1  ;;  %7080 = vmatprep.subr.bf16.mxu1 %v10383_v2  ;;  %v10462_v1 = vld [vmem:[%s14268_s1 + $0x1d20] ss:$8 sps:$4 sm:$0xff]   ;;  %v10467_v2 = vld [vmem:[%s14268_s1 + $0xd34] ss:$8 sps:$4 sm:$0xff]  }
 0x315   :  { %7768 = vmatprep.subr.bf16.mxu0 %v10386_v3  ;;  %v10470_v3 = vld [vmem:[%s14268_s1 + $0x1d34] ss:$8 sps:$4 sm:$0xff]  }
 0x317   :  { %7081 = vmatpush1.bf16.msra.mxu1 %v10381_v4  ;;  %v10465_v4 = vld [vmem:[%s14268_s1 + $0xd30] ss:$8 sps:$4 sm:$0xff]  }
 0x318   :  { %7769 = vmatpush1.bf16.msra.mxu0 %v10384_v43  ;;  %7082 = vmatprep.subr.bf16.mxu1 %v10389_v53  ;;  %v10468_v43 = vld [vmem:[%s14268_s1 + $0x1d30] ss:$8 sps:$4 sm:$0xff]   ;;  %v10473_v53 = vld [vmem:[%s14268_s1 + $0xd44] ss:$8 sps:$4 sm:$0xff]  }
 0x319   :  { %7770 = vmatprep.subr.bf16.mxu0 %v10392_v54  ;;  %v10476_v54 = vld [vmem:[%s14268_s1 + $0x1d44] ss:$8 sps:$4 sm:$0xff]  }
 0x31b   :  { %7083 = vmatpush1.bf16.msra.mxu1 %v10387_v8  ;;  %v10471_v8 = vld [vmem:[%s14268_s1 + $0xd40] ss:$8 sps:$4 sm:$0xff]  }
 0x31c   :  { %7771 = vmatpush1.bf16.msra.mxu0 %v10390_v9  ;;  %7084 = vmatprep.subr.bf16.mxu1 %v10395_v10  ;;  %v10474_v9 = vld [vmem:[%s14268_s1 + $0x1d40] ss:$8 sps:$4 sm:$0xff]   ;;  %v10479_v10 = vld [vmem:[%s14268_s1 + $0xd54] ss:$8 sps:$4 sm:$0xff]  }
 0x31d   :  { %7772 = vmatprep.subr.bf16.mxu0 %v10398_v11  ;;  %v10482_v11 = vld [vmem:[%s14268_s1 + $0x1d54] ss:$8 sps:$4 sm:$0xff]  }
 0x31f   :  { %7085 = vmatpush1.bf16.msra.mxu1 %v10393_v12  ;;  %v10477_v12 = vld [vmem:[%s14268_s1 + $0xd50] ss:$8 sps:$4 sm:$0xff]  }
 0x320   :  { %7773 = vmatpush1.bf16.msra.mxu0 %v10396_v47  ;;  %7086 = vmatprep.subr.bf16.mxu1 %v10401_v61  ;;  %v10480_v47 = vld [vmem:[%s14268_s1 + $0x1d50] ss:$8 sps:$4 sm:$0xff]   ;;  %v10485_v61 = vld [vmem:[%s14268_s1 + $0xd64] ss:$8 sps:$4 sm:$0xff]  }
 0x321   :  { %7774 = vmatprep.subr.bf16.mxu0 %v10404_v62  ;;  %v10488_v62 = vld [vmem:[%s14268_s1 + $0x1d64] ss:$8 sps:$4 sm:$0xff]  }
 0x323   :  { %7087 = vmatpush1.bf16.msra.mxu1 %v10399_v16  ;;  %v10483_v16 = vld [vmem:[%s14268_s1 + $0xd60] ss:$8 sps:$4 sm:$0xff]  }
 0x324   :  { %7775 = vmatpush1.bf16.msra.mxu0 %v10402_v17  ;;  %7088 = vmatprep.subr.bf16.mxu1 %v10407_v18  ;;  %v10486_v17 = vld [vmem:[%s14268_s1 + $0x1d60] ss:$8 sps:$4 sm:$0xff]   ;;  %v10491_v18 = vld [vmem:[%s14268_s1 + $0xd74] ss:$8 sps:$4 sm:$0xff]  }
 0x325   :  { %7776 = vmatprep.subr.bf16.mxu0 %v10410_v19  ;;  %v10494_v19 = vld [vmem:[%s14268_s1 + $0x1d74] ss:$8 sps:$4 sm:$0xff]  }
 0x327   :  { %7089 = vmatpush1.bf16.msra.mxu1 %v10405_v20  ;;  %v10489_v20 = vld [vmem:[%s14268_s1 + $0xd70] ss:$8 sps:$4 sm:$0xff]  }
 0x328   :  { %7777 = vmatpush1.bf16.msra.mxu0 %v10408_v55  ;;  %7090 = vmatprep.subr.bf16.mxu1 %v10413_v5  ;;  %v10492_v55 = vld [vmem:[%s14268_s1 + $0x1d70] ss:$8 sps:$4 sm:$0xff]   ;;  %v10497_v5 = vld [vmem:[%s14268_s1 + $0xd84] ss:$8 sps:$4 sm:$0xff]  }
 0x329   :  { %7778 = vmatprep.subr.bf16.mxu0 %v10416_v6  ;;  %v10500_v6 = vld [vmem:[%s14268_s1 + $0x1d84] ss:$8 sps:$4 sm:$0xff]  }
 0x32b   :  { %7091 = vmatpush1.bf16.msra.mxu1 %v10411_v21  ;;  %v10495_v21 = vld [vmem:[%s14268_s1 + $0xd80] ss:$8 sps:$4 sm:$0xff]  }
 0x32c   :  { %7779 = vmatpush1.bf16.msra.mxu0 %v10414_v22  ;;  %7092 = vmatprep.subr.bf16.mxu1 %v10419_v63  ;;  %v10498_v22 = vld [vmem:[%s14268_s1 + $0x1d80] ss:$8 sps:$4 sm:$0xff]   ;;  %v10503_v63 = vld [vmem:[%s14268_s1 + $0xd94] ss:$8 sps:$4 sm:$0xff]  }
 0x32d   :  { %7780 = vmatprep.subr.bf16.mxu0 %v10422_v13  ;;  %v10506_v13 = vld [vmem:[%s14268_s1 + $0x1d94] ss:$8 sps:$4 sm:$0xff]  }
 0x32f   :  { %7093 = vmatpush1.bf16.msra.mxu1 %v10417_v14  ;;  %v10501_v14 = vld [vmem:[%s14268_s1 + $0xd90] ss:$8 sps:$4 sm:$0xff]  }
 0x330   :  { %7781 = vmatpush1.bf16.msra.mxu0 %v10420_v15  ;;  %7094 = vmatprep.subr.bf16.mxu1 %v10425_v32  ;;  %v10504_v15 = vld [vmem:[%s14268_s1 + $0x1d90] ss:$8 sps:$4 sm:$0xff]   ;;  %v10509_v32 = vld [vmem:[%s14268_s1 + $0xda4] ss:$8 sps:$4 sm:$0xff]  }
 0x331   :  { %7782 = vmatprep.subr.bf16.mxu0 %v10428_v33  ;;  %v10512_v33 = vld [vmem:[%s14268_s1 + $0x1da4] ss:$8 sps:$4 sm:$0xff]  }
 0x333   :  { %7095 = vmatpush1.bf16.msra.mxu1 %v10423_v24  ;;  %v10507_v24 = vld [vmem:[%s14268_s1 + $0xda0] ss:$8 sps:$4 sm:$0xff]  }
 0x334   :  { %7783 = vmatpush1.bf16.msra.mxu0 %v10426_v25  ;;  %7096 = vmatprep.subr.bf16.mxu1 %v10431_v7  ;;  %v10510_v25 = vld [vmem:[%s14268_s1 + $0x1da0] ss:$8 sps:$4 sm:$0xff]   ;;  %v10515_v7 = vld [vmem:[%s14268_s1 + $0xdb4] ss:$8 sps:$4 sm:$0xff]  }
 0x335   :  { %7784 = vmatprep.subr.bf16.mxu0 %v10434_v23  ;;  %v10518_v23 = vld [vmem:[%s14268_s1 + $0x1db4] ss:$8 sps:$4 sm:$0xff]  }
 0x337   :  { %7097 = vmatpush1.bf16.msra.mxu1 %v10429_v26  ;;  %v10513_v26 = vld [vmem:[%s14268_s1 + $0xdb0] ss:$8 sps:$4 sm:$0xff]  }
 0x338   :  { %7785 = vmatpush1.bf16.msra.mxu0 %v10432_v27  ;;  %7098 = vmatprep.subr.bf16.mxu1 %v10437_v40  ;;  %v10516_v27 = vld [vmem:[%s14268_s1 + $0x1db0] ss:$8 sps:$4 sm:$0xff]   ;;  %v10521_v40 = vld [vmem:[%s14268_s1 + $0xdc4] ss:$8 sps:$4 sm:$0xff]  }
 0x339   :  { %7786 = vmatprep.subr.bf16.mxu0 %v10440_v41  ;;  %v10524_v41 = vld [vmem:[%s14268_s1 + $0x1dc4] ss:$8 sps:$4 sm:$0xff]  }
 0x33b   :  { %7099 = vmatpush1.bf16.msra.mxu1 %v10435_v28  ;;  %v10519_v28 = vld [vmem:[%s14268_s1 + $0xdc0] ss:$8 sps:$4 sm:$0xff]  }
 0x33c   :  { %7787 = vmatpush1.bf16.msra.mxu0 %v10438_v31  ;;  %7100 = vmatprep.subr.bf16.mxu1 %v10443_v36  ;;  %v10522_v31 = vld [vmem:[%s14268_s1 + $0x1dc0] ss:$8 sps:$4 sm:$0xff]   ;;  %v10527_v36 = vld [vmem:[%s14268_s1 + $0xdd4] ss:$8 sps:$4 sm:$0xff]  }
 0x33d   :  { %7788 = vmatprep.subr.bf16.mxu0 %v10446_v29  ;;  %v10530_v29 = vld [vmem:[%s14268_s1 + $0x1dd4] ss:$8 sps:$4 sm:$0xff]  }
 0x33f   :  { %7101 = vmatpush1.bf16.msra.mxu1 %v10441_v30  ;;  %v10525_v30 = vld [vmem:[%s14268_s1 + $0xdd0] ss:$8 sps:$4 sm:$0xff]  }
 0x340   :  { %7789 = vmatpush1.bf16.msra.mxu0 %v10444_v37  ;;  %7113 = vmatprep.subr.bf16.mxu1 %v10449_v50  ;;  %v10528_v37 = vld [vmem:[%s14268_s1 + $0x1dd0] ss:$8 sps:$4 sm:$0xff]   ;;  %v10533_v50 = vld [vmem:[%s14268_s1 + $0xde4] ss:$8 sps:$4 sm:$0xff]  }
 0x341   :  { %7801 = vmatprep.subr.bf16.mxu0 %v10452_v51  ;;  %v10536_v51 = vld [vmem:[%s14268_s1 + $0x1de4] ss:$8 sps:$4 sm:$0xff]  }
 0x342   :  { %7103 = vmatmul.mubr.bf16.vlgmr.msra.gmra.mrb[0].mxu1 %v8007_v38  ;;  %v10531_v38 = vld [vmem:[%s14268_s1 + $0xde0] ss:$8 sps:$4 sm:$0xff]  }
 0x343   :  { %7791 = vmatmul.mubr.bf16.vlgmr.msra.gmra.mrb[0].mxu0 %v8039_v39  ;;  %7114 = vmatpush1.bf16.msra.mxu1 %v10447_v44  ;;  %v10534_v39 = vld [vmem:[%s14268_s1 + $0x1de0] ss:$8 sps:$4 sm:$0xff]   ;;  %v10539_v44 = vld [vmem:[%s14268_s1 + $0xdf4] ss:$8 sps:$4 sm:$0xff]  }
 0x344   :  { %7802 = vmatpush1.bf16.msra.mxu0 %v10450_v34  ;;  %7115 = vmatprep.subr.bf16.mxu1 %v10455_v48  ;;  %v10542_v34 = vld [vmem:[%s14268_s1 + $0x1df4] ss:$8 sps:$4 sm:$0xff]   ;;  %v10537_v48 = vld [vmem:[%s14268_s1 + $0xdf0] ss:$8 sps:$4 sm:$0xff]  }
 0x345   :  { %7803 = vmatprep.subr.bf16.mxu0 %v10458_v49  ;;  %7145 = vmatprep.mubr.bf16.mxu1 %v8010_v58  ;;  %v10540_v49 = vld [vmem:[%s14268_s1 + $0x1df0] ss:$8 sps:$4 sm:$0xff]   ;;  %v10545_v58 = vld [vmem:[%s14268_s1 + $0xe04] ss:$8 sps:$4 sm:$0xff]  }
 0x346   :  { %7833 = vmatprep.mubr.bf16.mxu0 %v8042_v59  ;;  %v10548_v59 = vld [vmem:[%s14268_s1 + $0x1e04] ss:$8 sps:$4 sm:$0xff]  }
 0x347   :  { %7116 = vmatpush1.bf16.msra.mxu1 %v10453_v60  ;;  %v13824_v60 = vld [vmem:[%s14269_s0 + $0x70] sm:$0xff] }
 0x348   :  { %7804 = vmatpush1.bf16.msra.mxu0 %v10456_v35  ;;  %7117 = vmatprep.subr.bf16.mxu1 %v10461_v45  ;;  %v8009_v35 = vcombine.low %v13604_v52, %v13613_v42  ;;  %v8041_v45 = vcombine.low %v13618_v56, %v13623_v57  ;;  %v10543_v52 = vld [vmem:[%s14268_s1 + $0xe00] ss:$8 sps:$4 sm:$0xff]   ;;  %v10551_v56 = vld [vmem:[%s14268_s1 + $0xe14] ss:$8 sps:$4 sm:$0xff]  }
 0x349   :  { %7805 = vmatprep.subr.bf16.mxu0 %v10464_v46  ;;  %v13833_v46 = vld [vmem:[%s14269_s0 + $0x170] sm:$0xff]  ;;  %v10546_v42 = vld [vmem:[%s14268_s1 + $0x1e00] ss:$8 sps:$4 sm:$0xff]  }
 0x34a   :  { %v10554_v57 = vld [vmem:[%s14268_s1 + $0x1e14] ss:$8 sps:$4 sm:$0xff]  }
 0x34b   :  { %7118 = vmatpush1.bf16.msra.mxu1 %v10459_v0  ;;  %v13838_v0 = vld [vmem:[%s14269_s0 + $0xf0] sm:$0xff] }
 0x34c   :  { %7806 = vmatpush1.bf16.msra.mxu0 %v10462_v1  ;;  %7119 = vmatprep.subr.bf16.mxu1 %v10467_v2  ;;  %v13843_v1 = vld [vmem:[%s14269_s0 + $0x1f0] sm:$0xff]  ;;  %v8012_v2 = vcombine.high %v13824_v60, %v13833_v46 }
 0x34d   :  { %7807 = vmatprep.subr.bf16.mxu0 %v10470_v3  ;;  %v8044_v3 = vcombine.high %v13838_v0, %v13843_v1 }
 0x34f   :  { %7120 = vmatpush1.bf16.msra.mxu1 %v10465_v4  ;;  %v10549_v4 = vld [vmem:[%s14268_s1 + $0xe10] ss:$8 sps:$4 sm:$0xff]  }
 0x350   :  { %7808 = vmatpush1.bf16.msra.mxu0 %v10468_v43  ;;  %7121 = vmatprep.subr.bf16.mxu1 %v10473_v53  ;;  %v10552_v43 = vld [vmem:[%s14268_s1 + $0x1e10] ss:$8 sps:$4 sm:$0xff]   ;;  %v10557_v53 = vld [vmem:[%s14268_s1 + $0xe24] ss:$8 sps:$4 sm:$0xff]  }
 0x351   :  { %7809 = vmatprep.subr.bf16.mxu0 %v10476_v54  ;;  %v10560_v54 = vld [vmem:[%s14268_s1 + $0x1e24] ss:$8 sps:$4 sm:$0xff]  }
 0x353   :  { %7122 = vmatpush1.bf16.msra.mxu1 %v10471_v8  ;;  %v10555_v8 = vld [vmem:[%s14268_s1 + $0xe20] ss:$8 sps:$4 sm:$0xff]  }
 0x354   :  { %7810 = vmatpush1.bf16.msra.mxu0 %v10474_v9  ;;  %7123 = vmatprep.subr.bf16.mxu1 %v10479_v10  ;;  %v10558_v9 = vld [vmem:[%s14268_s1 + $0x1e20] ss:$8 sps:$4 sm:$0xff]   ;;  %v10563_v10 = vld [vmem:[%s14268_s1 + $0xe34] ss:$8 sps:$4 sm:$0xff]  }
 0x355   :  { %7811 = vmatprep.subr.bf16.mxu0 %v10482_v11  ;;  %v10566_v11 = vld [vmem:[%s14268_s1 + $0x1e34] ss:$8 sps:$4 sm:$0xff]  }
 0x357   :  { %7124 = vmatpush1.bf16.msra.mxu1 %v10477_v12  ;;  %v10561_v12 = vld [vmem:[%s14268_s1 + $0xe30] ss:$8 sps:$4 sm:$0xff]  }
 0x358   :  { %7812 = vmatpush1.bf16.msra.mxu0 %v10480_v47  ;;  %7125 = vmatprep.subr.bf16.mxu1 %v10485_v61  ;;  %v10564_v47 = vld [vmem:[%s14268_s1 + $0x1e30] ss:$8 sps:$4 sm:$0xff]   ;;  %v10569_v61 = vld [vmem:[%s14268_s1 + $0xe44] ss:$8 sps:$4 sm:$0xff]  }
 0x359   :  { %7813 = vmatprep.subr.bf16.mxu0 %v10488_v62  ;;  %v10572_v62 = vld [vmem:[%s14268_s1 + $0x1e44] ss:$8 sps:$4 sm:$0xff]  }
 0x35b   :  { %7126 = vmatpush1.bf16.msra.mxu1 %v10483_v16  ;;  %v10567_v16 = vld [vmem:[%s14268_s1 + $0xe40] ss:$8 sps:$4 sm:$0xff]  }
 0x35c   :  { %7814 = vmatpush1.bf16.msra.mxu0 %v10486_v17  ;;  %7127 = vmatprep.subr.bf16.mxu1 %v10491_v18  ;;  %v10570_v17 = vld [vmem:[%s14268_s1 + $0x1e40] ss:$8 sps:$4 sm:$0xff]   ;;  %v10575_v18 = vld [vmem:[%s14268_s1 + $0xe54] ss:$8 sps:$4 sm:$0xff]  }
 0x35d   :  { %7815 = vmatprep.subr.bf16.mxu0 %v10494_v19  ;;  %v10578_v19 = vld [vmem:[%s14268_s1 + $0x1e54] ss:$8 sps:$4 sm:$0xff]  }
 0x35f   :  { %7128 = vmatpush1.bf16.msra.mxu1 %v10489_v20  ;;  %v10573_v20 = vld [vmem:[%s14268_s1 + $0xe50] ss:$8 sps:$4 sm:$0xff]  }
 0x360   :  { %7816 = vmatpush1.bf16.msra.mxu0 %v10492_v55  ;;  %7129 = vmatprep.subr.bf16.mxu1 %v10497_v5  ;;  %v10576_v55 = vld [vmem:[%s14268_s1 + $0x1e50] ss:$8 sps:$4 sm:$0xff]   ;;  %v10581_v5 = vld [vmem:[%s14268_s1 + $0xe64] ss:$8 sps:$4 sm:$0xff]  }
 0x361   :  { %7817 = vmatprep.subr.bf16.mxu0 %v10500_v6  ;;  %v10584_v6 = vld [vmem:[%s14268_s1 + $0x1e64] ss:$8 sps:$4 sm:$0xff]  }
 0x363   :  { %7130 = vmatpush1.bf16.msra.mxu1 %v10495_v21  ;;  %v10579_v21 = vld [vmem:[%s14268_s1 + $0xe60] ss:$8 sps:$4 sm:$0xff]  }
 0x364   :  { %7818 = vmatpush1.bf16.msra.mxu0 %v10498_v22  ;;  %7131 = vmatprep.subr.bf16.mxu1 %v10503_v63  ;;  %v10582_v22 = vld [vmem:[%s14268_s1 + $0x1e60] ss:$8 sps:$4 sm:$0xff]   ;;  %v10587_v63 = vld [vmem:[%s14268_s1 + $0xe74] ss:$8 sps:$4 sm:$0xff]  }
 0x365   :  { %7819 = vmatprep.subr.bf16.mxu0 %v10506_v13  ;;  %v10590_v13 = vld [vmem:[%s14268_s1 + $0x1e74] ss:$8 sps:$4 sm:$0xff]  }
 0x367   :  { %7132 = vmatpush1.bf16.msra.mxu1 %v10501_v14  ;;  %v10585_v14 = vld [vmem:[%s14268_s1 + $0xe70] ss:$8 sps:$4 sm:$0xff]  }
 0x368   :  { %7820 = vmatpush1.bf16.msra.mxu0 %v10504_v15  ;;  %7133 = vmatprep.subr.bf16.mxu1 %v10509_v32  ;;  %v10588_v15 = vld [vmem:[%s14268_s1 + $0x1e70] ss:$8 sps:$4 sm:$0xff]   ;;  %v10593_v32 = vld [vmem:[%s14268_s1 + $0xe84] ss:$8 sps:$4 sm:$0xff]  }
 0x369   :  { %7821 = vmatprep.subr.bf16.mxu0 %v10512_v33  ;;  %v10596_v33 = vld [vmem:[%s14268_s1 + $0x1e84] ss:$8 sps:$4 sm:$0xff]  }
 0x36b   :  { %7134 = vmatpush1.bf16.msra.mxu1 %v10507_v24  ;;  %v10591_v24 = vld [vmem:[%s14268_s1 + $0xe80] ss:$8 sps:$4 sm:$0xff]  }
 0x36c   :  { %7822 = vmatpush1.bf16.msra.mxu0 %v10510_v25  ;;  %7135 = vmatprep.subr.bf16.mxu1 %v10515_v7  ;;  %v10594_v25 = vld [vmem:[%s14268_s1 + $0x1e80] ss:$8 sps:$4 sm:$0xff]   ;;  %v10599_v7 = vld [vmem:[%s14268_s1 + $0xe94] ss:$8 sps:$4 sm:$0xff]  }
 0x36d   :  { %7823 = vmatprep.subr.bf16.mxu0 %v10518_v23  ;;  %v10602_v23 = vld [vmem:[%s14268_s1 + $0x1e94] ss:$8 sps:$4 sm:$0xff]  }
 0x36f   :  { %7136 = vmatpush1.bf16.msra.mxu1 %v10513_v26  ;;  %v10597_v26 = vld [vmem:[%s14268_s1 + $0xe90] ss:$8 sps:$4 sm:$0xff]  }
 0x370   :  { %7824 = vmatpush1.bf16.msra.mxu0 %v10516_v27  ;;  %7137 = vmatprep.subr.bf16.mxu1 %v10521_v40  ;;  %v10600_v27 = vld [vmem:[%s14268_s1 + $0x1e90] ss:$8 sps:$4 sm:$0xff]   ;;  %v10605_v40 = vld [vmem:[%s14268_s1 + $0xea4] ss:$8 sps:$4 sm:$0xff]  }
 0x371   :  { %7825 = vmatprep.subr.bf16.mxu0 %v10524_v41  ;;  %v10608_v41 = vld [vmem:[%s14268_s1 + $0x1ea4] ss:$8 sps:$4 sm:$0xff]  }
 0x373   :  { %7138 = vmatpush1.bf16.msra.mxu1 %v10519_v28  ;;  %v10603_v28 = vld [vmem:[%s14268_s1 + $0xea0] ss:$8 sps:$4 sm:$0xff]  }
 0x374   :  { %7826 = vmatpush1.bf16.msra.mxu0 %v10522_v31  ;;  %7139 = vmatprep.subr.bf16.mxu1 %v10527_v36  ;;  %v10606_v31 = vld [vmem:[%s14268_s1 + $0x1ea0] ss:$8 sps:$4 sm:$0xff]   ;;  %v10611_v36 = vld [vmem:[%s14268_s1 + $0xeb4] ss:$8 sps:$4 sm:$0xff]  }
 0x375   :  { %7827 = vmatprep.subr.bf16.mxu0 %v10530_v29  ;;  %v10614_v29 = vld [vmem:[%s14268_s1 + $0x1eb4] ss:$8 sps:$4 sm:$0xff]  }
 0x377   :  { %7140 = vmatpush1.bf16.msra.mxu1 %v10525_v30  ;;  %v10609_v30 = vld [vmem:[%s14268_s1 + $0xeb0] ss:$8 sps:$4 sm:$0xff]  }
 0x378   :  { %7828 = vmatpush1.bf16.msra.mxu0 %v10528_v37  ;;  %7141 = vmatprep.subr.bf16.mxu1 %v10533_v50  ;;  %v10612_v37 = vld [vmem:[%s14268_s1 + $0x1eb0] ss:$8 sps:$4 sm:$0xff]   ;;  %v10617_v50 = vld [vmem:[%s14268_s1 + $0xec4] ss:$8 sps:$4 sm:$0xff]  }
 0x379   :  { %7829 = vmatprep.subr.bf16.mxu0 %v10536_v51  ;;  %v10620_v51 = vld [vmem:[%s14268_s1 + $0x1ec4] ss:$8 sps:$4 sm:$0xff]  }
 0x37b   :  { %7142 = vmatpush1.bf16.msra.mxu1 %v10531_v38  ;;  %v10615_v38 = vld [vmem:[%s14268_s1 + $0xec0] ss:$8 sps:$4 sm:$0xff]  }
 0x37c   :  { %7830 = vmatpush1.bf16.msra.mxu0 %v10534_v39  ;;  %7143 = vmatprep.subr.bf16.mxu1 %v10539_v44  ;;  %v10618_v39 = vld [vmem:[%s14268_s1 + $0x1ec0] ss:$8 sps:$4 sm:$0xff]   ;;  %v10623_v44 = vld [vmem:[%s14268_s1 + $0xed4] ss:$8 sps:$4 sm:$0xff]  }
 0x37d   :  { %7831 = vmatprep.subr.bf16.mxu0 %v10542_v34  ;;  %v10626_v34 = vld [vmem:[%s14268_s1 + $0x1ed4] ss:$8 sps:$4 sm:$0xff]  }
 0x37f   :  { %7144 = vmatpush1.bf16.msra.mxu1 %v10537_v48  ;;  %v10621_v48 = vld [vmem:[%s14268_s1 + $0xed0] ss:$8 sps:$4 sm:$0xff]  }
 0x380   :  { %7832 = vmatpush1.bf16.msra.mxu0 %v10540_v49  ;;  %7156 = vmatprep.subr.bf16.mxu1 %v10545_v58  ;;  %v10624_v49 = vld [vmem:[%s14268_s1 + $0x1ed0] ss:$8 sps:$4 sm:$0xff]   ;;  %v10629_v58 = vld [vmem:[%s14268_s1 + $0xee4] ss:$8 sps:$4 sm:$0xff]  }
 0x381   :  { %7844 = vmatprep.subr.bf16.mxu0 %v10548_v59  ;;  %v10632_v59 = vld [vmem:[%s14268_s1 + $0x1ee4] ss:$8 sps:$4 sm:$0xff]  }
 0x382   :  { %7146 = vmatmul.mubr.bf16.vlgmr.msra.gmra.mrb[0].mxu1 %v8009_v35  ;;  %v10627_v35 = vld [vmem:[%s14268_s1 + $0xee0] ss:$8 sps:$4 sm:$0xff]  }
 0x383   :  { %7834 = vmatmul.mubr.bf16.vlgmr.msra.gmra.mrb[0].mxu0 %v8041_v45  ;;  %7157 = vmatpush1.bf16.msra.mxu1 %v10543_v52  ;;  %v10630_v45 = vld [vmem:[%s14268_s1 + $0x1ee0] ss:$8 sps:$4 sm:$0xff]   ;;  %v10635_v52 = vld [vmem:[%s14268_s1 + $0xef4] ss:$8 sps:$4 sm:$0xff]  }
 0x384   :  { %7845 = vmatpush1.bf16.msra.mxu0 %v10546_v42  ;;  %7158 = vmatprep.subr.bf16.mxu1 %v10551_v56  ;;  %v10638_v42 = vld [vmem:[%s14268_s1 + $0x1ef4] ss:$8 sps:$4 sm:$0xff]   ;;  %v10633_v56 = vld [vmem:[%s14268_s1 + $0xef0] ss:$8 sps:$4 sm:$0xff]  }
 0x385   :  { %7846 = vmatprep.subr.bf16.mxu0 %v10554_v57  ;;  %7188 = vmatprep.mubr.bf16.mxu1 %v8012_v2  ;;  %v10636_v57 = vld [vmem:[%s14268_s1 + $0x1ef0] ss:$8 sps:$4 sm:$0xff]   ;;  %v10641_v2 = vld [vmem:[%s14268_s1 + $0xf04] ss:$8 sps:$4 sm:$0xff]  }
 0x386   :  { %7876 = vmatprep.mubr.bf16.mxu0 %v8044_v3  ;;  %v10644_v3 = vld [vmem:[%s14268_s1 + $0x1f04] ss:$8 sps:$4 sm:$0xff]  }
 0x387   :  { %7159 = vmatpush1.bf16.msra.mxu1 %v10549_v4  ;;  %v14044_v4 = vld [vmem:[%s14269_s0 + $0x78] sm:$0xff] }
 0x388   :  { %7847 = vmatpush1.bf16.msra.mxu0 %v10552_v43  ;;  %7160 = vmatprep.subr.bf16.mxu1 %v10557_v53  ;;  %v8011_v43 = vcombine.low %v13824_v60, %v13833_v46  ;;  %v8043_v53 = vcombine.low %v13838_v0, %v13843_v1  ;;  %v10639_v60 = vld [vmem:[%s14268_s1 + $0xf00] ss:$8 sps:$4 sm:$0xff]   ;;  %v10647_v0 = vld [vmem:[%s14268_s1 + $0xf14] ss:$8 sps:$4 sm:$0xff]  }
 0x389   :  { %7848 = vmatprep.subr.bf16.mxu0 %v10560_v54  ;;  %v14053_v54 = vld [vmem:[%s14269_s0 + $0x178] sm:$0xff]  ;;  %v10642_v46 = vld [vmem:[%s14268_s1 + $0x1f00] ss:$8 sps:$4 sm:$0xff]  }
 0x38a   :  { %v10650_v1 = vld [vmem:[%s14268_s1 + $0x1f14] ss:$8 sps:$4 sm:$0xff]  }
 0x38b   :  { %7161 = vmatpush1.bf16.msra.mxu1 %v10555_v8  ;;  %v14058_v8 = vld [vmem:[%s14269_s0 + $0xf8] sm:$0xff] }
 0x38c   :  { %7849 = vmatpush1.bf16.msra.mxu0 %v10558_v9  ;;  %7162 = vmatprep.subr.bf16.mxu1 %v10563_v10  ;;  %v14063_v9 = vld [vmem:[%s14269_s0 + $0x1f8] sm:$0xff]  ;;  %v8014_v10 = vcombine.high %v14044_v4, %v14053_v54 }
 0x38d   :  { %7850 = vmatprep.subr.bf16.mxu0 %v10566_v11  ;;  %v8046_v11 = vcombine.high %v14058_v8, %v14063_v9 }
 0x38f   :  { %7163 = vmatpush1.bf16.msra.mxu1 %v10561_v12  ;;  %v10645_v12 = vld [vmem:[%s14268_s1 + $0xf10] ss:$8 sps:$4 sm:$0xff]  }
 0x390   :  { %7851 = vmatpush1.bf16.msra.mxu0 %v10564_v47  ;;  %7164 = vmatprep.subr.bf16.mxu1 %v10569_v61  ;;  %v10648_v47 = vld [vmem:[%s14268_s1 + $0x1f10] ss:$8 sps:$4 sm:$0xff]   ;;  %v10653_v61 = vld [vmem:[%s14268_s1 + $0xf24] ss:$8 sps:$4 sm:$0xff]  }
 0x391   :  { %7852 = vmatprep.subr.bf16.mxu0 %v10572_v62  ;;  %v10656_v62 = vld [vmem:[%s14268_s1 + $0x1f24] ss:$8 sps:$4 sm:$0xff]  }
 0x393   :  { %7165 = vmatpush1.bf16.msra.mxu1 %v10567_v16  ;;  %v10651_v16 = vld [vmem:[%s14268_s1 + $0xf20] ss:$8 sps:$4 sm:$0xff]  }
 0x394   :  { %7853 = vmatpush1.bf16.msra.mxu0 %v10570_v17  ;;  %7166 = vmatprep.subr.bf16.mxu1 %v10575_v18  ;;  %v10654_v17 = vld [vmem:[%s14268_s1 + $0x1f20] ss:$8 sps:$4 sm:$0xff]   ;;  %v10659_v18 = vld [vmem:[%s14268_s1 + $0xf34] ss:$8 sps:$4 sm:$0xff]  }
 0x395   :  { %7854 = vmatprep.subr.bf16.mxu0 %v10578_v19  ;;  %v10662_v19 = vld [vmem:[%s14268_s1 + $0x1f34] ss:$8 sps:$4 sm:$0xff]  }
 0x397   :  { %7167 = vmatpush1.bf16.msra.mxu1 %v10573_v20  ;;  %v10657_v20 = vld [vmem:[%s14268_s1 + $0xf30] ss:$8 sps:$4 sm:$0xff]  }
 0x398   :  { %7855 = vmatpush1.bf16.msra.mxu0 %v10576_v55  ;;  %7168 = vmatprep.subr.bf16.mxu1 %v10581_v5  ;;  %v10660_v55 = vld [vmem:[%s14268_s1 + $0x1f30] ss:$8 sps:$4 sm:$0xff]   ;;  %v10665_v5 = vld [vmem:[%s14268_s1 + $0xf44] ss:$8 sps:$4 sm:$0xff]  }
 0x399   :  { %7856 = vmatprep.subr.bf16.mxu0 %v10584_v6  ;;  %v10668_v6 = vld [vmem:[%s14268_s1 + $0x1f44] ss:$8 sps:$4 sm:$0xff]  }
 0x39b   :  { %7169 = vmatpush1.bf16.msra.mxu1 %v10579_v21  ;;  %v10663_v21 = vld [vmem:[%s14268_s1 + $0xf40] ss:$8 sps:$4 sm:$0xff]  }
 0x39c   :  { %7857 = vmatpush1.bf16.msra.mxu0 %v10582_v22  ;;  %7170 = vmatprep.subr.bf16.mxu1 %v10587_v63  ;;  %v10666_v22 = vld [vmem:[%s14268_s1 + $0x1f40] ss:$8 sps:$4 sm:$0xff]   ;;  %v10671_v63 = vld [vmem:[%s14268_s1 + $0xf54] ss:$8 sps:$4 sm:$0xff]  }
 0x39d   :  { %7858 = vmatprep.subr.bf16.mxu0 %v10590_v13  ;;  %v10674_v13 = vld [vmem:[%s14268_s1 + $0x1f54] ss:$8 sps:$4 sm:$0xff]  }
 0x39f   :  { %7171 = vmatpush1.bf16.msra.mxu1 %v10585_v14  ;;  %v10669_v14 = vld [vmem:[%s14268_s1 + $0xf50] ss:$8 sps:$4 sm:$0xff]  }
 0x3a0   :  { %7859 = vmatpush1.bf16.msra.mxu0 %v10588_v15  ;;  %7172 = vmatprep.subr.bf16.mxu1 %v10593_v32  ;;  %v10672_v15 = vld [vmem:[%s14268_s1 + $0x1f50] ss:$8 sps:$4 sm:$0xff]   ;;  %v10677_v32 = vld [vmem:[%s14268_s1 + $0xf64] ss:$8 sps:$4 sm:$0xff]  }
 0x3a1   :  { %7860 = vmatprep.subr.bf16.mxu0 %v10596_v33  ;;  %v10680_v33 = vld [vmem:[%s14268_s1 + $0x1f64] ss:$8 sps:$4 sm:$0xff]  }
 0x3a3   :  { %7173 = vmatpush1.bf16.msra.mxu1 %v10591_v24  ;;  %v10675_v24 = vld [vmem:[%s14268_s1 + $0xf60] ss:$8 sps:$4 sm:$0xff]  }
 0x3a4   :  { %7861 = vmatpush1.bf16.msra.mxu0 %v10594_v25  ;;  %7174 = vmatprep.subr.bf16.mxu1 %v10599_v7  ;;  %v10678_v25 = vld [vmem:[%s14268_s1 + $0x1f60] ss:$8 sps:$4 sm:$0xff]   ;;  %v10683_v7 = vld [vmem:[%s14268_s1 + $0xf74] ss:$8 sps:$4 sm:$0xff]  }
 0x3a5   :  { %7862 = vmatprep.subr.bf16.mxu0 %v10602_v23  ;;  %v10686_v23 = vld [vmem:[%s14268_s1 + $0x1f74] ss:$8 sps:$4 sm:$0xff]  }
 0x3a7   :  { %7175 = vmatpush1.bf16.msra.mxu1 %v10597_v26  ;;  %v10681_v26 = vld [vmem:[%s14268_s1 + $0xf70] ss:$8 sps:$4 sm:$0xff]  }
 0x3a8   :  { %7863 = vmatpush1.bf16.msra.mxu0 %v10600_v27  ;;  %7176 = vmatprep.subr.bf16.mxu1 %v10605_v40  ;;  %v10684_v27 = vld [vmem:[%s14268_s1 + $0x1f70] ss:$8 sps:$4 sm:$0xff]   ;;  %v10689_v40 = vld [vmem:[%s14268_s1 + $0xf84] ss:$8 sps:$4 sm:$0xff]  }
 0x3a9   :  { %7864 = vmatprep.subr.bf16.mxu0 %v10608_v41  ;;  %v10692_v41 = vld [vmem:[%s14268_s1 + $0x1f84] ss:$8 sps:$4 sm:$0xff]  }
 0x3ab   :  { %7177 = vmatpush1.bf16.msra.mxu1 %v10603_v28  ;;  %v10687_v28 = vld [vmem:[%s14268_s1 + $0xf80] ss:$8 sps:$4 sm:$0xff]  }
 0x3ac   :  { %7865 = vmatpush1.bf16.msra.mxu0 %v10606_v31  ;;  %7178 = vmatprep.subr.bf16.mxu1 %v10611_v36  ;;  %v10690_v31 = vld [vmem:[%s14268_s1 + $0x1f80] ss:$8 sps:$4 sm:$0xff]   ;;  %v10695_v36 = vld [vmem:[%s14268_s1 + $0xf94] ss:$8 sps:$4 sm:$0xff]  }
 0x3ad   :  { %7866 = vmatprep.subr.bf16.mxu0 %v10614_v29  ;;  %v10698_v29 = vld [vmem:[%s14268_s1 + $0x1f94] ss:$8 sps:$4 sm:$0xff]  }
 0x3af   :  { %7179 = vmatpush1.bf16.msra.mxu1 %v10609_v30  ;;  %v10693_v30 = vld [vmem:[%s14268_s1 + $0xf90] ss:$8 sps:$4 sm:$0xff]  }
 0x3b0   :  { %7867 = vmatpush1.bf16.msra.mxu0 %v10612_v37  ;;  %7180 = vmatprep.subr.bf16.mxu1 %v10617_v50  ;;  %v10696_v37 = vld [vmem:[%s14268_s1 + $0x1f90] ss:$8 sps:$4 sm:$0xff]   ;;  %v10701_v50 = vld [vmem:[%s14268_s1 + $0xfa4] ss:$8 sps:$4 sm:$0xff]  }
 0x3b1   :  { %7868 = vmatprep.subr.bf16.mxu0 %v10620_v51  ;;  %v10704_v51 = vld [vmem:[%s14268_s1 + $0x1fa4] ss:$8 sps:$4 sm:$0xff]  }
 0x3b3   :  { %7181 = vmatpush1.bf16.msra.mxu1 %v10615_v38  ;;  %v10699_v38 = vld [vmem:[%s14268_s1 + $0xfa0] ss:$8 sps:$4 sm:$0xff]  }
 0x3b4   :  { %7869 = vmatpush1.bf16.msra.mxu0 %v10618_v39  ;;  %7182 = vmatprep.subr.bf16.mxu1 %v10623_v44  ;;  %v10702_v39 = vld [vmem:[%s14268_s1 + $0x1fa0] ss:$8 sps:$4 sm:$0xff]   ;;  %v10707_v44 = vld [vmem:[%s14268_s1 + $0xfb4] ss:$8 sps:$4 sm:$0xff]  }
 0x3b5   :  { %7870 = vmatprep.subr.bf16.mxu0 %v10626_v34  ;;  %v10710_v34 = vld [vmem:[%s14268_s1 + $0x1fb4] ss:$8 sps:$4 sm:$0xff]  }
 0x3b7   :  { %7183 = vmatpush1.bf16.msra.mxu1 %v10621_v48  ;;  %v10705_v48 = vld [vmem:[%s14268_s1 + $0xfb0] ss:$8 sps:$4 sm:$0xff]  }
 0x3b8   :  { %7871 = vmatpush1.bf16.msra.mxu0 %v10624_v49  ;;  %7184 = vmatprep.subr.bf16.mxu1 %v10629_v58  ;;  %v10708_v49 = vld [vmem:[%s14268_s1 + $0x1fb0] ss:$8 sps:$4 sm:$0xff]   ;;  %v10713_v58 = vld [vmem:[%s14268_s1 + $0xfc4] ss:$8 sps:$4 sm:$0xff]  }
 0x3b9   :  { %7872 = vmatprep.subr.bf16.mxu0 %v10632_v59  ;;  %v10716_v59 = vld [vmem:[%s14268_s1 + $0x1fc4] ss:$8 sps:$4 sm:$0xff]  }
 0x3bb   :  { %7185 = vmatpush1.bf16.msra.mxu1 %v10627_v35  ;;  %v10711_v35 = vld [vmem:[%s14268_s1 + $0xfc0] ss:$8 sps:$4 sm:$0xff]  }
 0x3bc   :  { %7873 = vmatpush1.bf16.msra.mxu0 %v10630_v45  ;;  %7186 = vmatprep.subr.bf16.mxu1 %v10635_v52  ;;  %v10714_v45 = vld [vmem:[%s14268_s1 + $0x1fc0] ss:$8 sps:$4 sm:$0xff]   ;;  %v10719_v52 = vld [vmem:[%s14268_s1 + $0xfd4] ss:$8 sps:$4 sm:$0xff]  }
 0x3bd   :  { %7874 = vmatprep.subr.bf16.mxu0 %v10638_v42  ;;  %v10722_v42 = vld [vmem:[%s14268_s1 + $0x1fd4] ss:$8 sps:$4 sm:$0xff]  }
 0x3bf   :  { %7187 = vmatpush1.bf16.msra.mxu1 %v10633_v56  ;;  %v10717_v56 = vld [vmem:[%s14268_s1 + $0xfd0] ss:$8 sps:$4 sm:$0xff]  }
 0x3c0   :  { %7875 = vmatpush1.bf16.msra.mxu0 %v10636_v57  ;;  %7199 = vmatprep.subr.bf16.mxu1 %v10641_v2  ;;  %v10720_v57 = vld [vmem:[%s14268_s1 + $0x1fd0] ss:$8 sps:$4 sm:$0xff]   ;;  %v10725_v2 = vld [vmem:[%s14268_s1 + $0xfe4] ss:$8 sps:$4 sm:$0xff]  }
 0x3c1   :  { %7887 = vmatprep.subr.bf16.mxu0 %v10644_v3  ;;  %v10728_v3 = vld [vmem:[%s14268_s1 + $0x1fe4] ss:$8 sps:$4 sm:$0xff]  }
 0x3c2   :  { %7189 = vmatmul.mubr.bf16.vlgmr.msra.gmra.mrb[0].mxu1 %v8011_v43  ;;  %v10723_v43 = vld [vmem:[%s14268_s1 + $0xfe0] ss:$8 sps:$4 sm:$0xff]  }
 0x3c3   :  { %7877 = vmatmul.mubr.bf16.vlgmr.msra.gmra.mrb[0].mxu0 %v8043_v53  ;;  %7200 = vmatpush1.bf16.msra.mxu1 %v10639_v60  ;;  %v10726_v53 = vld [vmem:[%s14268_s1 + $0x1fe0] ss:$8 sps:$4 sm:$0xff]   ;;  %v10731_v60 = vld [vmem:[%s14268_s1 + $0xff4] ss:$8 sps:$4 sm:$0xff]  }
 0x3c4   :  { %7888 = vmatpush1.bf16.msra.mxu0 %v10642_v46  ;;  %7201 = vmatprep.subr.bf16.mxu1 %v10647_v0  ;;  %v10734_v46 = vld [vmem:[%s14268_s1 + $0x1ff4] ss:$8 sps:$4 sm:$0xff]   ;;  %v10729_v0 = vld [vmem:[%s14268_s1 + $0xff0] ss:$8 sps:$4 sm:$0xff]  }
 0x3c5   :  { %7889 = vmatprep.subr.bf16.mxu0 %v10650_v1  ;;  %7231 = vmatprep.mubr.bf16.mxu1 %v8014_v10  ;;  %v10732_v1 = vld [vmem:[%s14268_s1 + $0x1ff0] ss:$8 sps:$4 sm:$0xff]   ;;  %v8013_v10 = vcombine.low %v14044_v4, %v14053_v54 }
 0x3c6   :  { %7919 = vmatprep.mubr.bf16.mxu0 %v8046_v11  ;;  %v8045_v11 = vcombine.low %v14058_v8, %v14063_v9 }
 0x3c7   :  { %7202 = vmatpush1.bf16.msra.mxu1 %v10645_v12  ;;  %v7947_v12 = vlaneseq }
 0x3c8   :  { %7890 = vmatpush1.bf16.msra.mxu0 %v10648_v47  ;;  %7203 = vmatprep.subr.bf16.mxu1 %v10653_v61 }
 0x3c9   :  { %7891 = vmatprep.subr.bf16.mxu0 %v10656_v62  ;;  %v7948_v47 = vshrl.u32 %v7947_v12, 7  ;;  %v7945_v62 = vld [vmem:[%s14270_s2] sm:$0x3] }
 0x3cb   :  { %7204 = vmatpush1.bf16.msra.mxu1 %v10651_v16  ;;  %v7949_v61 = vsub.s32 0, %v7948_v47  ;;  %v7953_v16 = vsub.s32 1, %v7948_v47 }
 0x3cc   :  { %7892 = vmatpush1.bf16.msra.mxu0 %v10654_v17  ;;  %7205 = vmatprep.subr.bf16.mxu1 %v10659_v18 }
 0x3cd   :  { %7893 = vmatprep.subr.bf16.mxu0 %v10662_v19  ;;  %v7950_v17 = vrot.slane %v7945_v62, %v7949_v61 }
 0x3cf   :  { %7206 = vmatpush1.bf16.msra.mxu1 %v10657_v20  ;;  %v7954_v20 = vrot.slane %v7945_v62, %v7953_v16 }
 0x3d0   :  { %7894 = vmatpush1.bf16.msra.mxu0 %v10660_v55  ;;  %7207 = vmatprep.subr.bf16.mxu1 %v10665_v5 }
 0x3d1   :  { %7895 = vmatprep.subr.bf16.mxu0 %v10668_v6 }
 0x3d3   :  { %7208 = vmatpush1.bf16.msra.mxu1 %v10663_v21 }
 0x3d4   :  { %7896 = vmatpush1.bf16.msra.mxu0 %v10666_v22  ;;  %7209 = vmatprep.subr.bf16.mxu1 %v10671_v63 }
 0x3d5   :  { %7897 = vmatprep.subr.bf16.mxu0 %v10674_v13 }
 0x3d7   :  { %7210 = vmatpush1.bf16.msra.mxu1 %v10669_v14 }
 0x3d8   :  { %7898 = vmatpush1.bf16.msra.mxu0 %v10672_v15  ;;  %7211 = vmatprep.subr.bf16.mxu1 %v10677_v32 }
 0x3d9   :  { %7899 = vmatprep.subr.bf16.mxu0 %v10680_v33 }
 0x3db   :  { %7212 = vmatpush1.bf16.msra.mxu1 %v10675_v24 }
 0x3dc   :  { %7900 = vmatpush1.bf16.msra.mxu0 %v10678_v25  ;;  %7213 = vmatprep.subr.bf16.mxu1 %v10683_v7 }
 0x3dd   :  { %7901 = vmatprep.subr.bf16.mxu0 %v10686_v23 }
 0x3df   :  { %7214 = vmatpush1.bf16.msra.mxu1 %v10681_v26 }
 0x3e0   :  { %7902 = vmatpush1.bf16.msra.mxu0 %v10684_v27  ;;  %7215 = vmatprep.subr.bf16.mxu1 %v10689_v40 }
 0x3e1   :  { %7903 = vmatprep.subr.bf16.mxu0 %v10692_v41 }
 0x3e3   :  { %7216 = vmatpush1.bf16.msra.mxu1 %v10687_v28 }
 0x3e4   :  { %7904 = vmatpush1.bf16.msra.mxu0 %v10690_v31  ;;  %7217 = vmatprep.subr.bf16.mxu1 %v10695_v36 }
 0x3e5   :  { %7905 = vmatprep.subr.bf16.mxu0 %v10698_v29 }
 0x3e7   :  { %7218 = vmatpush1.bf16.msra.mxu1 %v10693_v30 }
 0x3e8   :  { %7906 = vmatpush1.bf16.msra.mxu0 %v10696_v37  ;;  %7219 = vmatprep.subr.bf16.mxu1 %v10701_v50 }
 0x3e9   :  { %7907 = vmatprep.subr.bf16.mxu0 %v10704_v51 }
 0x3eb   :  { %7220 = vmatpush1.bf16.msra.mxu1 %v10699_v38 }
 0x3ec   :  { %7908 = vmatpush1.bf16.msra.mxu0 %v10702_v39  ;;  %7221 = vmatprep.subr.bf16.mxu1 %v10707_v44 }
 0x3ed   :  { %7909 = vmatprep.subr.bf16.mxu0 %v10710_v34 }
 0x3ef   :  { %7222 = vmatpush1.bf16.msra.mxu1 %v10705_v48 }
 0x3f0   :  { %7910 = vmatpush1.bf16.msra.mxu0 %v10708_v49  ;;  %7223 = vmatprep.subr.bf16.mxu1 %v10713_v58 }
 0x3f1   :  { %7911 = vmatprep.subr.bf16.mxu0 %v10716_v59 }
 0x3f3   :  { %7224 = vmatpush1.bf16.msra.mxu1 %v10711_v35 }
 0x3f4   :  { %7912 = vmatpush1.bf16.msra.mxu0 %v10714_v45  ;;  %7225 = vmatprep.subr.bf16.mxu1 %v10719_v52 }
 0x3f5   :  { %7913 = vmatprep.subr.bf16.mxu0 %v10722_v42 }
 0x3f7   :  { %7226 = vmatpush1.bf16.msra.mxu1 %v10717_v56 }
 0x3f8   :  { %7914 = vmatpush1.bf16.msra.mxu0 %v10720_v57  ;;  %7227 = vmatprep.subr.bf16.mxu1 %v10725_v2 }
 0x3f9   :  { %7915 = vmatprep.subr.bf16.mxu0 %v10728_v3 }
 0x3fb   :  { %7228 = vmatpush1.bf16.msra.mxu1 %v10723_v43 }
 0x3fc   :  { %7916 = vmatpush1.bf16.msra.mxu0 %v10726_v53  ;;  %7229 = vmatprep.subr.bf16.mxu1 %v10731_v60 }
 0x3fd   :  { %7917 = vmatprep.subr.bf16.mxu0 %v10734_v46 }
 0x3ff   :  { %7230 = vmatpush1.bf16.msra.mxu1 %v10729_v0 }
 0x400   :  { %7918 = vmatpush1.bf16.msra.mxu0 %v10732_v1 }
 0x402   :  { %7232 = vmatmul.mubr.bf16.vlgmr.msra.gmra.mrb[0].mxu1 %v8013_v10 }
 0x403   :  { %7920 = vmatmul.mubr.bf16.vlgmr.msra.gmra.mrb[0].mxu0 %v8045_v11 }
 0x4d5   :  { %v7233_v18 = vpop.f32.mrb[0].mxu1 }
 0x4d6   :  { %v7921_v19 = vpop.f32.mrb[0].mxu0  ;;  %v7235_v54 = vpop.f32.mrb[1].mxu1 }
 0x4d7   :  { %v9075_v4 = vadd.f32 %v7921_v19, %v7233_v18  ;;  %v7923_v55 = vpop.f32.mrb[1].mxu0  ;;  %v7237_v9 = vpop.f32.mrb[2].mxu1 }
 0x4d8   :  { %v9076_v8 = vadd.f32 %v7923_v55, %v7235_v54  ;;  %v7925_v5 = vpop.f32.mrb[2].mxu0  ;;  %v7239_v22 = vpop.f32.mrb[3].mxu1 }
 0x4d9   :  { %v7957_v6 = vadd.f32 %v9075_v4, %v7950_v17  ;;  %v9077_v21 = vadd.f32 %v7925_v5, %v7237_v9  ;;  %v7927_v63 = vpop.f32.mrb[3].mxu0 }
 0x4da   :  { %v7958_v13 = vadd.f32 %v9076_v8, %v7954_v20  ;;  %v9078_v14 = vadd.f32 %v7927_v63, %v7239_v22 }
 0x4db   :  { %v7961_v15 = vmax.f32 %v7957_v6, 0.0  ;;  %v7959_v32 = vadd.f32 %v9077_v21, %v7950_v17 }
 0x4dc   :  { %v7962_v33 = vmax.f32 %v7958_v13, 0.0  ;;  %v7960_v24 = vadd.f32 %v9078_v14, %v7954_v20 }
 0x4dd   :  { %v7963_v25 = vmax.f32 %v7959_v32, 0.0 }
 0x4de   :  { %v9073_v7 = vpack.c.bf16 %v7962_v33, %v7961_v15  ;;  %v7964_v23 = vmax.f32 %v7960_v24, 0.0 }
 0x4e0   :  { %7977 = vst [vmem:[%s14271_s3] sm:$0xff] %v9073_v7  ;;  %v9074_v26 = vpack.c.bf16 %v7964_v23, %v7963_v25 }
 0x4e2   :  { %7978 = vst [vmem:[%s14271_s3 + $0x8] sm:$0xff] %v9074_v26 }

</bundles_post_ra>
